<compile_context>
chip_gen: v5e
topology: v5e:2x2
jax: 0.10.0
libtpu: 0.0.40
codegen_flags: <defaults>
</compile_context>

<pallas_src>
import math

import jax
import jax.numpy as jnp
from jax.experimental import pallas as pl
from jax.experimental.pallas import tpu as pltpu

# ----------------------------- config -----------------------------
SRC_INPUT_SIZE = 4
TGT_INPUT_SIZE = 4
D_MODEL = 32
D_FF = 64
D_K = 8
D_V = 8
N_HEADS = 4
N_LAYERS = 2        # encoder layers; decoder has 1 layer (as in the module)
PRED_LEN = 8        # stored but unused in forward (matches module)
SEED = 0

B = 2
S_SRC = 12
S_TGT = 8


# ----------------------------- fused forward -----------------------------
def transformer_forward(params, enc_inputs, dec_inputs):
    """Single fused Pallas kernel: embeddings + encoder stack + decoder layer."""
    leaves, treedef = jax.tree_util.tree_flatten(params)
    batch, s_src, src_in = enc_inputs.shape
    _, s_tgt, tgt_in = dec_inputs.shape
    scale = 1.0 / math.sqrt(D_K)

    def kernel(enc_ref, dec_ref, *refs):
        wrefs = refs[:-1]
        out_ref = refs[-1]
        P = jax.tree_util.tree_unflatten(treedef, list(wrefs))

        def ln(x, g, b):
            mu = jnp.mean(x, axis=-1, keepdims=True)
            var = jnp.mean((x - mu) ** 2, axis=-1, keepdims=True)
            return (x - mu) * jax.lax.rsqrt(var + 1e-5) * g + b

        def mha(xq, xkv, ap, causal):
            # xq: (Sq, D_MODEL), xkv: (Sk, D_MODEL); weights are plain f32 arrays.
            q = jnp.dot(xq, ap["wq"], preferred_element_type=jnp.float32) + ap["bq"]
            k = jnp.dot(xkv, ap["wk"], preferred_element_type=jnp.float32) + ap["bk"]
            v = jnp.dot(xkv, ap["wv"], preferred_element_type=jnp.float32) + ap["bv"]
            sq, sk = xq.shape[0], xkv.shape[0]
            # Output projection folded into the per-head loop:
            #   concat_h(ctx_h) @ Wo == sum_h ctx_h @ Wo[h*dv:(h+1)*dv, :]
            out = ap["bo"]
            for h in range(N_HEADS):
                qh = q[:, h * D_K:(h + 1) * D_K]
                kh = k[:, h * D_K:(h + 1) * D_K]
                vh = v[:, h * D_V:(h + 1) * D_V]
                # contract last dims directly -> no materialized transpose of k
                s = jax.lax.dot_general(
                    qh, kh, (((1,), (1,)), ((), ())),
                    preferred_element_type=jnp.float32) * scale
                if causal:
                    row = jax.lax.broadcasted_iota(jnp.int32, (sq, sk), 0)
                    col = jax.lax.broadcasted_iota(jnp.int32, (sq, sk), 1)
                    s = jnp.where(col <= row, s, jnp.float32(-1e9))
                m = jnp.max(s, axis=-1, keepdims=True)
                e = jnp.exp(s - m)
                pr = e * pl.reciprocal(jnp.sum(e, axis=-1, keepdims=True), approx=True)
                ctx_h = jnp.dot(pr, vh, preferred_element_type=jnp.float32)
                out = out + jnp.dot(ctx_h, ap["wo"][h * D_V:(h + 1) * D_V, :],
                                    preferred_element_type=jnp.float32)
            return out

        def ffn(x, w1, b1, w2, b2):
            h = jnp.dot(x, w1, preferred_element_type=jnp.float32) + b1
            h = jnp.maximum(h, 0.0)   # keep f32 throughout (v5e-friendly)
            return jnp.dot(h, w2, preferred_element_type=jnp.float32) + b2

        # ---------------- encoder ----------------
        # TODO(synk): Encoder/Decoder sources not provided; no positional encoding applied.
        x = enc_ref[0].astype(jnp.float32)                         # (S_src, src_in)
        enc = jnp.dot(x, P["enc_emb_w"][...],
                      preferred_element_type=jnp.float32) + P["enc_emb_b"][...]
        for l in range(N_LAYERS):
            lp = jax.tree_util.tree_map(lambda r: r[l], P["enc_layers"])
            att = mha(enc, enc, lp["attn"], causal=False)
            enc = ln(att + enc, lp["ln1_g"], lp["ln1_b"])
            ff = ffn(enc, lp["w1"], lp["b1"], lp["w2"], lp["b2"])
            enc = ln(ff + enc, lp["ln2_g"], lp["ln2_b"])

        # ---------------- decoder (1 layer, as in the module) ----------------
        y = dec_ref[0].astype(jnp.float32)                         # (S_tgt, tgt_in)
        dec = jnp.dot(y, P["dec_emb_w"][...],
                      preferred_element_type=jnp.float32) + P["dec_emb_b"][...]
        dp = jax.tree_util.tree_map(lambda r: r[...], P["dec_layer"])
        att = mha(dec, dec, dp["self_attn"], causal=True)
        dec = ln(att + dec, dp["ln1_g"], dp["ln1_b"])
        att = mha(dec, enc, dp["cross_attn"], causal=False)
        dec = ln(att + dec, dp["ln2_g"], dp["ln2_b"])
        ff = ffn(dec, dp["w1"], dp["b1"], dp["w2"], dp["b2"])
        dec = ln(ff + dec, dp["ln3_g"], dp["ln3_b"])

        out_ref[0] = dec.astype(out_ref.dtype)

    def full_spec(shape):
        nd = len(shape)
        # Weights: full-array block, same block index for every grid step -> VMEM-resident.
        return pl.BlockSpec(shape, lambda b, _nd=nd: (0,) * _nd)

    in_specs = [
        pl.BlockSpec((1, s_src, src_in), lambda b: (b, 0, 0)),
        pl.BlockSpec((1, s_tgt, tgt_in), lambda b: (b, 0, 0)),
    ] + [full_spec(w.shape) for w in leaves]

    dec_out = pl.pallas_call(
        kernel,
        out_shape=jax.ShapeDtypeStruct((batch, s_tgt, D_MODEL), jnp.float32),
        grid=(batch,),
        in_specs=in_specs,
        out_specs=pl.BlockSpec((1, s_tgt, D_MODEL), lambda b: (b, 0, 0)),
        compiler_params=pltpu.CompilerParams(
            dimension_semantics=("parallel",)),   # v7x: one batch element per TensorCore
    )(enc_inputs, dec_inputs, *leaves)

    # TODO(synk): Encoder/Decoder auxiliary losses (loss_enc/loss_dec) are not defined in
    # the provided source; returning 0.0 placeholder for loss_enc + loss_dec.
    loss = jnp.float32(0.0)
    return dec_out, loss


# ----------------------------- deterministic parameter init -----------------------------
def init_linear(key, fan_in, fan_out):
    k1, k2 = jax.random.split(key)
    lim = 1.0 / math.sqrt(fan_in)
    w = jax.random.uniform(k1, (fan_in, fan_out), jnp.float32, -lim, lim)
    b = jax.random.uniform(k2, (1, fan_out), jnp.float32, -lim, lim)
    return w, b


def init_attn(key):
    ks = jax.random.split(key, 4)
    wq, bq = init_linear(ks[0], D_MODEL, N_HEADS * D_K)
    wk, bk = init_linear(ks[1], D_MODEL, N_HEADS * D_K)
    wv, bv = init_linear(ks[2], D_MODEL, N_HEADS * D_V)
    wo, bo = init_linear(ks[3], N_HEADS * D_V, D_MODEL)
    return dict(wq=wq, bq=bq, wk=wk, bk=bk, wv=wv, bv=bv, wo=wo, bo=bo)


def init_enc_layer(key):
    ks = jax.random.split(key, 3)
    w1, b1 = init_linear(ks[1], D_MODEL, D_FF)
    w2, b2 = init_linear(ks[2], D_FF, D_MODEL)
    return dict(
        attn=init_attn(ks[0]),
        w1=w1, b1=b1, w2=w2, b2=b2,
        ln1_g=jnp.ones((1, D_MODEL), jnp.float32), ln1_b=jnp.zeros((1, D_MODEL), jnp.float32),
        ln2_g=jnp.ones((1, D_MODEL), jnp.float32), ln2_b=jnp.zeros((1, D_MODEL), jnp.float32),
    )


def init_dec_layer(key):
    ks = jax.random.split(key, 4)
    w1, b1 = init_linear(ks[2], D_MODEL, D_FF)
    w2, b2 = init_linear(ks[3], D_FF, D_MODEL)
    return dict(
        self_attn=init_attn(ks[0]),
        cross_attn=init_attn(ks[1]),
        w1=w1, b1=b1, w2=w2, b2=b2,
        ln1_g=jnp.ones((1, D_MODEL), jnp.float32), ln1_b=jnp.zeros((1, D_MODEL), jnp.float32),
        ln2_g=jnp.ones((1, D_MODEL), jnp.float32), ln2_b=jnp.zeros((1, D_MODEL), jnp.float32),
        ln3_g=jnp.ones((1, D_MODEL), jnp.float32), ln3_b=jnp.zeros((1, D_MODEL), jnp.float32),
    )


def init_params(seed):
    key = jax.random.PRNGKey(seed)
    ks = jax.random.split(key, 3 + N_LAYERS)
    enc_emb_w, enc_emb_b = init_linear(ks[0], SRC_INPUT_SIZE, D_MODEL)
    dec_emb_w, dec_emb_b = init_linear(ks[1], TGT_INPUT_SIZE, D_MODEL)
    enc_layer_list = [init_enc_layer(ks[3 + i]) for i in range(N_LAYERS)]
    # Stack per-layer params along a leading layer axis so the fused kernel can index [l].
    enc_layers = jax.tree_util.tree_map(lambda *xs: jnp.stack(xs, axis=0), *enc_layer_list)
    dec_layer = init_dec_layer(ks[2])
    return dict(enc_emb_w=enc_emb_w, enc_emb_b=enc_emb_b,
                dec_emb_w=dec_emb_w, dec_emb_b=dec_emb_b,
                enc_layers=enc_layers, dec_layer=dec_layer)


# ----------------------------- main -----------------------------
if __name__ == "__main__":
    params = init_params(SEED)

    key = jax.random.PRNGKey(0)
    k_enc, k_dec = jax.random.split(key)
    enc_inputs = jax.random.normal(k_enc, (B, S_SRC, SRC_INPUT_SIZE), jnp.float32)
    dec_inputs = jax.random.normal(k_dec, (B, S_TGT, TGT_INPUT_SIZE), jnp.float32)

    fwd = jax.jit(transformer_forward)
    dec_out, total_loss = fwd(params, enc_inputs, dec_inputs)
    jax.block_until_ready((dec_out, total_loss))

    assert dec_out.shape == (B, S_TGT, D_MODEL)
    assert dec_out.dtype == jnp.float32
    assert bool(jnp.all(jnp.isfinite(dec_out)))
    print("KERNEL_OK")
</pallas_src>

<mosaic_0001>
module attributes {stable_mosaic.version = 11 : i64} {
  func.func @kernel(%arg0: i32, %arg1: memref<1x12x4xf32, #tpu.memory_space<vmem>>, %arg2: memref<1x8x4xf32, #tpu.memory_space<vmem>>, %arg3: memref<1x32xf32, #tpu.memory_space<vmem>>, %arg4: memref<4x32xf32, #tpu.memory_space<vmem>>, %arg5: memref<1x64xf32, #tpu.memory_space<vmem>>, %arg6: memref<1x32xf32, #tpu.memory_space<vmem>>, %arg7: memref<1x32xf32, #tpu.memory_space<vmem>>, %arg8: memref<1x32xf32, #tpu.memory_space<vmem>>, %arg9: memref<1x32xf32, #tpu.memory_space<vmem>>, %arg10: memref<1x32xf32, #tpu.memory_space<vmem>>, %arg11: memref<32x32xf32, #tpu.memory_space<vmem>>, %arg12: memref<32x32xf32, #tpu.memory_space<vmem>>, %arg13: memref<32x32xf32, #tpu.memory_space<vmem>>, %arg14: memref<32x32xf32, #tpu.memory_space<vmem>>, %arg15: memref<1x32xf32, #tpu.memory_space<vmem>>, %arg16: memref<1x32xf32, #tpu.memory_space<vmem>>, %arg17: memref<1x32xf32, #tpu.memory_space<vmem>>, %arg18: memref<1x32xf32, #tpu.memory_space<vmem>>, %arg19: memref<1x32xf32, #tpu.memory_space<vmem>>, %arg20: memref<1x32xf32, #tpu.memory_space<vmem>>, %arg21: memref<1x32xf32, #tpu.memory_space<vmem>>, %arg22: memref<1x32xf32, #tpu.memory_space<vmem>>, %arg23: memref<1x32xf32, #tpu.memory_space<vmem>>, %arg24: memref<1x32xf32, #tpu.memory_space<vmem>>, %arg25: memref<32x32xf32, #tpu.memory_space<vmem>>, %arg26: memref<32x32xf32, #tpu.memory_space<vmem>>, %arg27: memref<32x32xf32, #tpu.memory_space<vmem>>, %arg28: memref<32x32xf32, #tpu.memory_space<vmem>>, %arg29: memref<32x64xf32, #tpu.memory_space<vmem>>, %arg30: memref<64x32xf32, #tpu.memory_space<vmem>>, %arg31: memref<1x32xf32, #tpu.memory_space<vmem>>, %arg32: memref<4x32xf32, #tpu.memory_space<vmem>>, %arg33: memref<2x1x32xf32, #tpu.memory_space<vmem>>, %arg34: memref<2x1x32xf32, #tpu.memory_space<vmem>>, %arg35: memref<2x1x32xf32, #tpu.memory_space<vmem>>, %arg36: memref<2x1x32xf32, #tpu.memory_space<vmem>>, %arg37: memref<2x32x32xf32, #tpu.memory_space<vmem>>, %arg38: memref<2x32x32xf32, #tpu.memory_space<vmem>>, %arg39: memref<2x32x32xf32, #tpu.memory_space<vmem>>, %arg40: memref<2x32x32xf32, #tpu.memory_space<vmem>>, %arg41: memref<2x1x64xf32, #tpu.memory_space<vmem>>, %arg42: memref<2x1x32xf32, #tpu.memory_space<vmem>>, %arg43: memref<2x1x32xf32, #tpu.memory_space<vmem>>, %arg44: memref<2x1x32xf32, #tpu.memory_space<vmem>>, %arg45: memref<2x1x32xf32, #tpu.memory_space<vmem>>, %arg46: memref<2x1x32xf32, #tpu.memory_space<vmem>>, %arg47: memref<2x32x64xf32, #tpu.memory_space<vmem>>, %arg48: memref<2x64x32xf32, #tpu.memory_space<vmem>>, %arg49: memref<1x8x32xf32, #tpu.memory_space<vmem>>) attributes {dimension_semantics = [#tpu.dimension_semantics<parallel>], iteration_bounds = array<i64: 2>, scalar_prefetch = 0 : i64, scratch_operands = 0 : i64, tpu.core_type = #tpu.core_type<tc>, window_params = [{transform_indices = @transform_0, window_bounds = array<i64: 1, 12, 4>}, {transform_indices = @transform_1, window_bounds = array<i64: 1, 8, 4>}, {pipeline_mode = #tpu.pipeline_mode<synchronous>, transform_indices = @transform_2, window_bounds = array<i64: 1, 32>}, {pipeline_mode = #tpu.pipeline_mode<synchronous>, transform_indices = @transform_3, window_bounds = array<i64: 4, 32>}, {pipeline_mode = #tpu.pipeline_mode<synchronous>, transform_indices = @transform_4, window_bounds = array<i64: 1, 64>}, {pipeline_mode = #tpu.pipeline_mode<synchronous>, transform_indices = @transform_5, window_bounds = array<i64: 1, 32>}, {pipeline_mode = #tpu.pipeline_mode<synchronous>, transform_indices = @transform_6, window_bounds = array<i64: 1, 32>}, {pipeline_mode = #tpu.pipeline_mode<synchronous>, transform_indices = @transform_7, window_bounds = array<i64: 1, 32>}, {pipeline_mode = #tpu.pipeline_mode<synchronous>, transform_indices = @transform_8, window_bounds = array<i64: 1, 32>}, {pipeline_mode = #tpu.pipeline_mode<synchronous>, transform_indices = @transform_9, window_bounds = array<i64: 1, 32>}, {pipeline_mode = #tpu.pipeline_mode<synchronous>, transform_indices = @transform_10, window_bounds = array<i64: 32, 32>}, {pipeline_mode = #tpu.pipeline_mode<synchronous>, transform_indices = @transform_11, window_bounds = array<i64: 32, 32>}, {pipeline_mode = #tpu.pipeline_mode<synchronous>, transform_indices = @transform_12, window_bounds = array<i64: 32, 32>}, {pipeline_mode = #tpu.pipeline_mode<synchronous>, transform_indices = @transform_13, window_bounds = array<i64: 32, 32>}, {pipeline_mode = #tpu.pipeline_mode<synchronous>, transform_indices = @transform_14, window_bounds = array<i64: 1, 32>}, {pipeline_mode = #tpu.pipeline_mode<synchronous>, transform_indices = @transform_15, window_bounds = array<i64: 1, 32>}, {pipeline_mode = #tpu.pipeline_mode<synchronous>, transform_indices = @transform_16, window_bounds = array<i64: 1, 32>}, {pipeline_mode = #tpu.pipeline_mode<synchronous>, transform_indices = @transform_17, window_bounds = array<i64: 1, 32>}, {pipeline_mode = #tpu.pipeline_mode<synchronous>, transform_indices = @transform_18, window_bounds = array<i64: 1, 32>}, {pipeline_mode = #tpu.pipeline_mode<synchronous>, transform_indices = @transform_19, window_bounds = array<i64: 1, 32>}, {pipeline_mode = #tpu.pipeline_mode<synchronous>, transform_indices = @transform_20, window_bounds = array<i64: 1, 32>}, {pipeline_mode = #tpu.pipeline_mode<synchronous>, transform_indices = @transform_21, window_bounds = array<i64: 1, 32>}, {pipeline_mode = #tpu.pipeline_mode<synchronous>, transform_indices = @transform_22, window_bounds = array<i64: 1, 32>}, {pipeline_mode = #tpu.pipeline_mode<synchronous>, transform_indices = @transform_23, window_bounds = array<i64: 1, 32>}, {pipeline_mode = #tpu.pipeline_mode<synchronous>, transform_indices = @transform_24, window_bounds = array<i64: 32, 32>}, {pipeline_mode = #tpu.pipeline_mode<synchronous>, transform_indices = @transform_25, window_bounds = array<i64: 32, 32>}, {pipeline_mode = #tpu.pipeline_mode<synchronous>, transform_indices = @transform_26, window_bounds = array<i64: 32, 32>}, {pipeline_mode = #tpu.pipeline_mode<synchronous>, transform_indices = @transform_27, window_bounds = array<i64: 32, 32>}, {pipeline_mode = #tpu.pipeline_mode<synchronous>, transform_indices = @transform_28, window_bounds = array<i64: 32, 64>}, {pipeline_mode = #tpu.pipeline_mode<synchronous>, transform_indices = @transform_29, window_bounds = array<i64: 64, 32>}, {pipeline_mode = #tpu.pipeline_mode<synchronous>, transform_indices = @transform_30, window_bounds = array<i64: 1, 32>}, {pipeline_mode = #tpu.pipeline_mode<synchronous>, transform_indices = @transform_31, window_bounds = array<i64: 4, 32>}, {pipeline_mode = #tpu.pipeline_mode<synchronous>, transform_indices = @transform_32, window_bounds = array<i64: 2, 1, 32>}, {pipeline_mode = #tpu.pipeline_mode<synchronous>, transform_indices = @transform_33, window_bounds = array<i64: 2, 1, 32>}, {pipeline_mode = #tpu.pipeline_mode<synchronous>, transform_indices = @transform_34, window_bounds = array<i64: 2, 1, 32>}, {pipeline_mode = #tpu.pipeline_mode<synchronous>, transform_indices = @transform_35, window_bounds = array<i64: 2, 1, 32>}, {pipeline_mode = #tpu.pipeline_mode<synchronous>, transform_indices = @transform_36, window_bounds = array<i64: 2, 32, 32>}, {pipeline_mode = #tpu.pipeline_mode<synchronous>, transform_indices = @transform_37, window_bounds = array<i64: 2, 32, 32>}, {pipeline_mode = #tpu.pipeline_mode<synchronous>, transform_indices = @transform_38, window_bounds = array<i64: 2, 32, 32>}, {pipeline_mode = #tpu.pipeline_mode<synchronous>, transform_indices = @transform_39, window_bounds = array<i64: 2, 32, 32>}, {pipeline_mode = #tpu.pipeline_mode<synchronous>, transform_indices = @transform_40, window_bounds = array<i64: 2, 1, 64>}, {pipeline_mode = #tpu.pipeline_mode<synchronous>, transform_indices = @transform_41, window_bounds = array<i64: 2, 1, 32>}, {pipeline_mode = #tpu.pipeline_mode<synchronous>, transform_indices = @transform_42, window_bounds = array<i64: 2, 1, 32>}, {pipeline_mode = #tpu.pipeline_mode<synchronous>, transform_indices = @transform_43, window_bounds = array<i64: 2, 1, 32>}, {pipeline_mode = #tpu.pipeline_mode<synchronous>, transform_indices = @transform_44, window_bounds = array<i64: 2, 1, 32>}, {pipeline_mode = #tpu.pipeline_mode<synchronous>, transform_indices = @transform_45, window_bounds = array<i64: 2, 1, 32>}, {pipeline_mode = #tpu.pipeline_mode<synchronous>, transform_indices = @transform_46, window_bounds = array<i64: 2, 32, 64>}, {pipeline_mode = #tpu.pipeline_mode<synchronous>, transform_indices = @transform_47, window_bounds = array<i64: 2, 64, 32>}, {transform_indices = @transform_48, window_bounds = array<i64: 1, 8, 32>}]} {
    %c0 = arith.constant 0 : index
    %c0_0 = arith.constant 0 : index
    %c0_1 = arith.constant 0 : index
    %0 = vector.load %arg1[%c0, %c0_0, %c0_1] : memref<1x12x4xf32, #tpu.memory_space<vmem>>, vector<1x12x4xf32>
    %1 = vector.shape_cast %0 : vector<1x12x4xf32> to vector<12x4xf32>
    %c0_2 = arith.constant 0 : index
    %c0_3 = arith.constant 0 : index
    %2 = vector.load %arg32[%c0_2, %c0_3] : memref<4x32xf32, #tpu.memory_space<vmem>>, vector<4x32xf32>
    %cst = arith.constant dense<0.000000e+00> : vector<12x32xf32>
    %3 = tpu.matmul %1, %2, %cst {dimension_numbers = #tpu.dot_dimension_numbers<[1], [0], [0], [1], [0, 0, 1, 1], [], []>} : vector<12x4xf32>, vector<4x32xf32>, vector<12x32xf32> -> vector<12x32xf32>
    %c0_4 = arith.constant 0 : index
    %c0_5 = arith.constant 0 : index
    %4 = vector.load %arg31[%c0_4, %c0_5] : memref<1x32xf32, #tpu.memory_space<vmem>>, vector<1x32xf32>
    %5 = vector.broadcast %4 : vector<1x32xf32> to vector<12x32xf32>
    %6 = arith.addf %3, %5 : vector<12x32xf32>
    %c0_6 = arith.constant 0 : index
    %c0_7 = arith.constant 0 : index
    %c0_8 = arith.constant 0 : index
    %7 = vector.load %arg33[%c0_6, %c0_7, %c0_8] : memref<2x1x32xf32, #tpu.memory_space<vmem>>, vector<1x1x32xf32>
    %8 = vector.shape_cast %7 : vector<1x1x32xf32> to vector<1x32xf32>
    %c0_9 = arith.constant 0 : index
    %c0_10 = arith.constant 0 : index
    %c0_11 = arith.constant 0 : index
    %9 = vector.load %arg34[%c0_9, %c0_10, %c0_11] : memref<2x1x32xf32, #tpu.memory_space<vmem>>, vector<1x1x32xf32>
    %10 = vector.shape_cast %9 : vector<1x1x32xf32> to vector<1x32xf32>
    %c0_12 = arith.constant 0 : index
    %c0_13 = arith.constant 0 : index
    %c0_14 = arith.constant 0 : index
    %11 = vector.load %arg35[%c0_12, %c0_13, %c0_14] : memref<2x1x32xf32, #tpu.memory_space<vmem>>, vector<1x1x32xf32>
    %12 = vector.shape_cast %11 : vector<1x1x32xf32> to vector<1x32xf32>
    %c0_15 = arith.constant 0 : index
    %c0_16 = arith.constant 0 : index
    %c0_17 = arith.constant 0 : index
    %13 = vector.load %arg36[%c0_15, %c0_16, %c0_17] : memref<2x1x32xf32, #tpu.memory_space<vmem>>, vector<1x1x32xf32>
    %14 = vector.shape_cast %13 : vector<1x1x32xf32> to vector<1x32xf32>
    %c0_18 = arith.constant 0 : index
    %c0_19 = arith.constant 0 : index
    %c0_20 = arith.constant 0 : index
    %15 = vector.load %arg37[%c0_18, %c0_19, %c0_20] : memref<2x32x32xf32, #tpu.memory_space<vmem>>, vector<1x32x32xf32>
    %16 = vector.shape_cast %15 : vector<1x32x32xf32> to vector<32x32xf32>
    %c0_21 = arith.constant 0 : index
    %c0_22 = arith.constant 0 : index
    %c0_23 = arith.constant 0 : index
    %17 = vector.load %arg38[%c0_21, %c0_22, %c0_23] : memref<2x32x32xf32, #tpu.memory_space<vmem>>, vector<1x32x32xf32>
    %18 = vector.shape_cast %17 : vector<1x32x32xf32> to vector<32x32xf32>
    %c0_24 = arith.constant 0 : index
    %c0_25 = arith.constant 0 : index
    %c0_26 = arith.constant 0 : index
    %19 = vector.load %arg39[%c0_24, %c0_25, %c0_26] : memref<2x32x32xf32, #tpu.memory_space<vmem>>, vector<1x32x32xf32>
    %20 = vector.shape_cast %19 : vector<1x32x32xf32> to vector<32x32xf32>
    %c0_27 = arith.constant 0 : index
    %c0_28 = arith.constant 0 : index
    %c0_29 = arith.constant 0 : index
    %21 = vector.load %arg40[%c0_27, %c0_28, %c0_29] : memref<2x32x32xf32, #tpu.memory_space<vmem>>, vector<1x32x32xf32>
    %22 = vector.shape_cast %21 : vector<1x32x32xf32> to vector<32x32xf32>
    %c0_30 = arith.constant 0 : index
    %c0_31 = arith.constant 0 : index
    %c0_32 = arith.constant 0 : index
    %23 = vector.load %arg41[%c0_30, %c0_31, %c0_32] : memref<2x1x64xf32, #tpu.memory_space<vmem>>, vector<1x1x64xf32>
    %24 = vector.shape_cast %23 : vector<1x1x64xf32> to vector<1x64xf32>
    %c0_33 = arith.constant 0 : index
    %c0_34 = arith.constant 0 : index
    %c0_35 = arith.constant 0 : index
    %25 = vector.load %arg42[%c0_33, %c0_34, %c0_35] : memref<2x1x32xf32, #tpu.memory_space<vmem>>, vector<1x1x32xf32>
    %26 = vector.shape_cast %25 : vector<1x1x32xf32> to vector<1x32xf32>
    %c0_36 = arith.constant 0 : index
    %c0_37 = arith.constant 0 : index
    %c0_38 = arith.constant 0 : index
    %27 = vector.load %arg43[%c0_36, %c0_37, %c0_38] : memref<2x1x32xf32, #tpu.memory_space<vmem>>, vector<1x1x32xf32>
    %28 = vector.shape_cast %27 : vector<1x1x32xf32> to vector<1x32xf32>
    %c0_39 = arith.constant 0 : index
    %c0_40 = arith.constant 0 : index
    %c0_41 = arith.constant 0 : index
    %29 = vector.load %arg44[%c0_39, %c0_40, %c0_41] : memref<2x1x32xf32, #tpu.memory_space<vmem>>, vector<1x1x32xf32>
    %30 = vector.shape_cast %29 : vector<1x1x32xf32> to vector<1x32xf32>
    %c0_42 = arith.constant 0 : index
    %c0_43 = arith.constant 0 : index
    %c0_44 = arith.constant 0 : index
    %31 = vector.load %arg45[%c0_42, %c0_43, %c0_44] : memref<2x1x32xf32, #tpu.memory_space<vmem>>, vector<1x1x32xf32>
    %32 = vector.shape_cast %31 : vector<1x1x32xf32> to vector<1x32xf32>
    %c0_45 = arith.constant 0 : index
    %c0_46 = arith.constant 0 : index
    %c0_47 = arith.constant 0 : index
    %33 = vector.load %arg46[%c0_45, %c0_46, %c0_47] : memref<2x1x32xf32, #tpu.memory_space<vmem>>, vector<1x1x32xf32>
    %34 = vector.shape_cast %33 : vector<1x1x32xf32> to vector<1x32xf32>
    %c0_48 = arith.constant 0 : index
    %c0_49 = arith.constant 0 : index
    %c0_50 = arith.constant 0 : index
    %35 = vector.load %arg47[%c0_48, %c0_49, %c0_50] : memref<2x32x64xf32, #tpu.memory_space<vmem>>, vector<1x32x64xf32>
    %36 = vector.shape_cast %35 : vector<1x32x64xf32> to vector<32x64xf32>
    %c0_51 = arith.constant 0 : index
    %c0_52 = arith.constant 0 : index
    %c0_53 = arith.constant 0 : index
    %37 = vector.load %arg48[%c0_51, %c0_52, %c0_53] : memref<2x64x32xf32, #tpu.memory_space<vmem>>, vector<1x64x32xf32>
    %38 = vector.shape_cast %37 : vector<1x64x32xf32> to vector<64x32xf32>
    %cst_54 = arith.constant dense<0.000000e+00> : vector<12x32xf32>
    %39 = tpu.matmul %6, %20, %cst_54 {dimension_numbers = #tpu.dot_dimension_numbers<[1], [0], [0], [1], [0, 0, 1, 1], [], []>} : vector<12x32xf32>, vector<32x32xf32>, vector<12x32xf32> -> vector<12x32xf32>
    %40 = vector.broadcast %12 : vector<1x32xf32> to vector<12x32xf32>
    %41 = arith.addf %39, %40 : vector<12x32xf32>
    %cst_55 = arith.constant dense<0.000000e+00> : vector<12x32xf32>
    %42 = tpu.matmul %6, %16, %cst_55 {dimension_numbers = #tpu.dot_dimension_numbers<[1], [0], [0], [1], [0, 0, 1, 1], [], []>} : vector<12x32xf32>, vector<32x32xf32>, vector<12x32xf32> -> vector<12x32xf32>
    %43 = vector.broadcast %8 : vector<1x32xf32> to vector<12x32xf32>
    %44 = arith.addf %42, %43 : vector<12x32xf32>
    %cst_56 = arith.constant dense<0.000000e+00> : vector<12x32xf32>
    %45 = tpu.matmul %6, %22, %cst_56 {dimension_numbers = #tpu.dot_dimension_numbers<[1], [0], [0], [1], [0, 0, 1, 1], [], []>} : vector<12x32xf32>, vector<32x32xf32>, vector<12x32xf32> -> vector<12x32xf32>
    %46 = vector.broadcast %14 : vector<1x32xf32> to vector<12x32xf32>
    %47 = arith.addf %45, %46 : vector<12x32xf32>
    %48 = vector.extract_strided_slice %41 {offsets = [0, 0], sizes = [12, 8], strides = [1, 1]} : vector<12x32xf32> to vector<12x8xf32>
    %49 = vector.extract_strided_slice %44 {offsets = [0, 0], sizes = [12, 8], strides = [1, 1]} : vector<12x32xf32> to vector<12x8xf32>
    %50 = vector.extract_strided_slice %47 {offsets = [0, 0], sizes = [12, 8], strides = [1, 1]} : vector<12x32xf32> to vector<12x8xf32>
    %cst_57 = arith.constant dense<0.000000e+00> : vector<12x12xf32>
    %51 = tpu.matmul %48, %49, %cst_57 {dimension_numbers = #tpu.dot_dimension_numbers<[1], [1], [0], [0], [0, 0, 1, 0], [], []>} : vector<12x8xf32>, vector<12x8xf32>, vector<12x12xf32> -> vector<12x12xf32>
    %cst_58 = arith.constant 0.353553385 : f32
    %52 = vector.broadcast %cst_58 : f32 to vector<12x12xf32>
    %53 = arith.mulf %51, %52 : vector<12x12xf32>
    %cst_59 = arith.constant dense<0xFF800000> : vector<12xf32>
    %54 = vector.multi_reduction <maximumf>, %53, %cst_59 [1] : vector<12x12xf32> to vector<12xf32>
    %55 = vector.shape_cast %54 : vector<12xf32> to vector<12x1xf32>
    %56 = vector.broadcast %55 : vector<12x1xf32> to vector<12x12xf32>
    %57 = arith.subf %53, %56 : vector<12x12xf32>
    %58 = math.exp %57 : vector<12x12xf32>
    %cst_60 = arith.constant dense<0.000000e+00> : vector<12xf32>
    %59 = vector.multi_reduction <add>, %58, %cst_60 [1] : vector<12x12xf32> to vector<12xf32>
    %60 = vector.shape_cast %59 : vector<12xf32> to vector<12x1xf32>
    %61 = tpu.reciprocal %60 {approx = true} : vector<12x1xf32> -> vector<12x1xf32>
    %62 = vector.broadcast %61 : vector<12x1xf32> to vector<12x12xf32>
    %63 = arith.mulf %58, %62 : vector<12x12xf32>
    %cst_61 = arith.constant dense<0.000000e+00> : vector<12x8xf32>
    %64 = tpu.matmul %63, %50, %cst_61 {dimension_numbers = #tpu.dot_dimension_numbers<[1], [0], [0], [1], [0, 0, 1, 1], [], []>} : vector<12x12xf32>, vector<12x8xf32>, vector<12x8xf32> -> vector<12x8xf32>
    %65 = vector.extract_strided_slice %18 {offsets = [0, 0], sizes = [8, 32], strides = [1, 1]} : vector<32x32xf32> to vector<8x32xf32>
    %cst_62 = arith.constant dense<0.000000e+00> : vector<12x32xf32>
    %66 = tpu.matmul %64, %65, %cst_62 {dimension_numbers = #tpu.dot_dimension_numbers<[1], [0], [0], [1], [0, 0, 1, 1], [], []>} : vector<12x8xf32>, vector<8x32xf32>, vector<12x32xf32> -> vector<12x32xf32>
    %67 = vector.broadcast %10 : vector<1x32xf32> to vector<12x32xf32>
    %68 = arith.addf %67, %66 : vector<12x32xf32>
    %69 = vector.extract_strided_slice %41 {offsets = [0, 8], sizes = [12, 8], strides = [1, 1]} : vector<12x32xf32> to vector<12x8xf32>
    %70 = vector.extract_strided_slice %44 {offsets = [0, 8], sizes = [12, 8], strides = [1, 1]} : vector<12x32xf32> to vector<12x8xf32>
    %71 = vector.extract_strided_slice %47 {offsets = [0, 8], sizes = [12, 8], strides = [1, 1]} : vector<12x32xf32> to vector<12x8xf32>
    %cst_63 = arith.constant dense<0.000000e+00> : vector<12x12xf32>
    %72 = tpu.matmul %69, %70, %cst_63 {dimension_numbers = #tpu.dot_dimension_numbers<[1], [1], [0], [0], [0, 0, 1, 0], [], []>} : vector<12x8xf32>, vector<12x8xf32>, vector<12x12xf32> -> vector<12x12xf32>
    %cst_64 = arith.constant 0.353553385 : f32
    %73 = vector.broadcast %cst_64 : f32 to vector<12x12xf32>
    %74 = arith.mulf %72, %73 : vector<12x12xf32>
    %cst_65 = arith.constant dense<0xFF800000> : vector<12xf32>
    %75 = vector.multi_reduction <maximumf>, %74, %cst_65 [1] : vector<12x12xf32> to vector<12xf32>
    %76 = vector.shape_cast %75 : vector<12xf32> to vector<12x1xf32>
    %77 = vector.broadcast %76 : vector<12x1xf32> to vector<12x12xf32>
    %78 = arith.subf %74, %77 : vector<12x12xf32>
    %79 = math.exp %78 : vector<12x12xf32>
    %cst_66 = arith.constant dense<0.000000e+00> : vector<12xf32>
    %80 = vector.multi_reduction <add>, %79, %cst_66 [1] : vector<12x12xf32> to vector<12xf32>
    %81 = vector.shape_cast %80 : vector<12xf32> to vector<12x1xf32>
    %82 = tpu.reciprocal %81 {approx = true} : vector<12x1xf32> -> vector<12x1xf32>
    %83 = vector.broadcast %82 : vector<12x1xf32> to vector<12x12xf32>
    %84 = arith.mulf %79, %83 : vector<12x12xf32>
    %cst_67 = arith.constant dense<0.000000e+00> : vector<12x8xf32>
    %85 = tpu.matmul %84, %71, %cst_67 {dimension_numbers = #tpu.dot_dimension_numbers<[1], [0], [0], [1], [0, 0, 1, 1], [], []>} : vector<12x12xf32>, vector<12x8xf32>, vector<12x8xf32> -> vector<12x8xf32>
    %86 = vector.extract_strided_slice %18 {offsets = [8, 0], sizes = [8, 32], strides = [1, 1]} : vector<32x32xf32> to vector<8x32xf32>
    %cst_68 = arith.constant dense<0.000000e+00> : vector<12x32xf32>
    %87 = tpu.matmul %85, %86, %cst_68 {dimension_numbers = #tpu.dot_dimension_numbers<[1], [0], [0], [1], [0, 0, 1, 1], [], []>} : vector<12x8xf32>, vector<8x32xf32>, vector<12x32xf32> -> vector<12x32xf32>
    %88 = arith.addf %68, %87 : vector<12x32xf32>
    %89 = vector.extract_strided_slice %41 {offsets = [0, 16], sizes = [12, 8], strides = [1, 1]} : vector<12x32xf32> to vector<12x8xf32>
    %90 = vector.extract_strided_slice %44 {offsets = [0, 16], sizes = [12, 8], strides = [1, 1]} : vector<12x32xf32> to vector<12x8xf32>
    %91 = vector.extract_strided_slice %47 {offsets = [0, 16], sizes = [12, 8], strides = [1, 1]} : vector<12x32xf32> to vector<12x8xf32>
    %cst_69 = arith.constant dense<0.000000e+00> : vector<12x12xf32>
    %92 = tpu.matmul %89, %90, %cst_69 {dimension_numbers = #tpu.dot_dimension_numbers<[1], [1], [0], [0], [0, 0, 1, 0], [], []>} : vector<12x8xf32>, vector<12x8xf32>, vector<12x12xf32> -> vector<12x12xf32>
    %cst_70 = arith.constant 0.353553385 : f32
    %93 = vector.broadcast %cst_70 : f32 to vector<12x12xf32>
    %94 = arith.mulf %92, %93 : vector<12x12xf32>
    %cst_71 = arith.constant dense<0xFF800000> : vector<12xf32>
    %95 = vector.multi_reduction <maximumf>, %94, %cst_71 [1] : vector<12x12xf32> to vector<12xf32>
    %96 = vector.shape_cast %95 : vector<12xf32> to vector<12x1xf32>
    %97 = vector.broadcast %96 : vector<12x1xf32> to vector<12x12xf32>
    %98 = arith.subf %94, %97 : vector<12x12xf32>
    %99 = math.exp %98 : vector<12x12xf32>
    %cst_72 = arith.constant dense<0.000000e+00> : vector<12xf32>
    %100 = vector.multi_reduction <add>, %99, %cst_72 [1] : vector<12x12xf32> to vector<12xf32>
    %101 = vector.shape_cast %100 : vector<12xf32> to vector<12x1xf32>
    %102 = tpu.reciprocal %101 {approx = true} : vector<12x1xf32> -> vector<12x1xf32>
    %103 = vector.broadcast %102 : vector<12x1xf32> to vector<12x12xf32>
    %104 = arith.mulf %99, %103 : vector<12x12xf32>
    %cst_73 = arith.constant dense<0.000000e+00> : vector<12x8xf32>
    %105 = tpu.matmul %104, %91, %cst_73 {dimension_numbers = #tpu.dot_dimension_numbers<[1], [0], [0], [1], [0, 0, 1, 1], [], []>} : vector<12x12xf32>, vector<12x8xf32>, vector<12x8xf32> -> vector<12x8xf32>
    %106 = vector.extract_strided_slice %18 {offsets = [16, 0], sizes = [8, 32], strides = [1, 1]} : vector<32x32xf32> to vector<8x32xf32>
    %cst_74 = arith.constant dense<0.000000e+00> : vector<12x32xf32>
    %107 = tpu.matmul %105, %106, %cst_74 {dimension_numbers = #tpu.dot_dimension_numbers<[1], [0], [0], [1], [0, 0, 1, 1], [], []>} : vector<12x8xf32>, vector<8x32xf32>, vector<12x32xf32> -> vector<12x32xf32>
    %108 = arith.addf %88, %107 : vector<12x32xf32>
    %109 = vector.extract_strided_slice %41 {offsets = [0, 24], sizes = [12, 8], strides = [1, 1]} : vector<12x32xf32> to vector<12x8xf32>
    %110 = vector.extract_strided_slice %44 {offsets = [0, 24], sizes = [12, 8], strides = [1, 1]} : vector<12x32xf32> to vector<12x8xf32>
    %111 = vector.extract_strided_slice %47 {offsets = [0, 24], sizes = [12, 8], strides = [1, 1]} : vector<12x32xf32> to vector<12x8xf32>
    %cst_75 = arith.constant dense<0.000000e+00> : vector<12x12xf32>
    %112 = tpu.matmul %109, %110, %cst_75 {dimension_numbers = #tpu.dot_dimension_numbers<[1], [1], [0], [0], [0, 0, 1, 0], [], []>} : vector<12x8xf32>, vector<12x8xf32>, vector<12x12xf32> -> vector<12x12xf32>
    %cst_76 = arith.constant 0.353553385 : f32
    %113 = vector.broadcast %cst_76 : f32 to vector<12x12xf32>
    %114 = arith.mulf %112, %113 : vector<12x12xf32>
    %cst_77 = arith.constant dense<0xFF800000> : vector<12xf32>
    %115 = vector.multi_reduction <maximumf>, %114, %cst_77 [1] : vector<12x12xf32> to vector<12xf32>
    %116 = vector.shape_cast %115 : vector<12xf32> to vector<12x1xf32>
    %117 = vector.broadcast %116 : vector<12x1xf32> to vector<12x12xf32>
    %118 = arith.subf %114, %117 : vector<12x12xf32>
    %119 = math.exp %118 : vector<12x12xf32>
    %cst_78 = arith.constant dense<0.000000e+00> : vector<12xf32>
    %120 = vector.multi_reduction <add>, %119, %cst_78 [1] : vector<12x12xf32> to vector<12xf32>
    %121 = vector.shape_cast %120 : vector<12xf32> to vector<12x1xf32>
    %122 = tpu.reciprocal %121 {approx = true} : vector<12x1xf32> -> vector<12x1xf32>
    %123 = vector.broadcast %122 : vector<12x1xf32> to vector<12x12xf32>
    %124 = arith.mulf %119, %123 : vector<12x12xf32>
    %cst_79 = arith.constant dense<0.000000e+00> : vector<12x8xf32>
    %125 = tpu.matmul %124, %111, %cst_79 {dimension_numbers = #tpu.dot_dimension_numbers<[1], [0], [0], [1], [0, 0, 1, 1], [], []>} : vector<12x12xf32>, vector<12x8xf32>, vector<12x8xf32> -> vector<12x8xf32>
    %126 = vector.extract_strided_slice %18 {offsets = [24, 0], sizes = [8, 32], strides = [1, 1]} : vector<32x32xf32> to vector<8x32xf32>
    %cst_80 = arith.constant dense<0.000000e+00> : vector<12x32xf32>
    %127 = tpu.matmul %125, %126, %cst_80 {dimension_numbers = #tpu.dot_dimension_numbers<[1], [0], [0], [1], [0, 0, 1, 1], [], []>} : vector<12x8xf32>, vector<8x32xf32>, vector<12x32xf32> -> vector<12x32xf32>
    %128 = arith.addf %108, %127 : vector<12x32xf32>
    %129 = arith.addf %128, %6 : vector<12x32xf32>
    %cst_81 = arith.constant dense<0.000000e+00> : vector<12xf32>
    %130 = vector.multi_reduction <add>, %129, %cst_81 [1] : vector<12x32xf32> to vector<12xf32>
    %131 = vector.shape_cast %130 : vector<12xf32> to vector<12x1xf32>
    %cst_82 = arith.constant 3.200000e+01 : f32
    %132 = vector.broadcast %cst_82 : f32 to vector<12x1xf32>
    %133 = arith.divf %131, %132 : vector<12x1xf32>
    %134 = vector.broadcast %133 : vector<12x1xf32> to vector<12x32xf32>
    %135 = arith.subf %129, %134 : vector<12x32xf32>
    %136 = arith.mulf %135, %135 : vector<12x32xf32>
    %cst_83 = arith.constant dense<0.000000e+00> : vector<12xf32>
    %137 = vector.multi_reduction <add>, %136, %cst_83 [1] : vector<12x32xf32> to vector<12xf32>
    %138 = vector.shape_cast %137 : vector<12xf32> to vector<12x1xf32>
    %cst_84 = arith.constant 3.200000e+01 : f32
    %139 = vector.broadcast %cst_84 : f32 to vector<12x1xf32>
    %140 = arith.divf %138, %139 : vector<12x1xf32>
    %141 = vector.broadcast %133 : vector<12x1xf32> to vector<12x32xf32>
    %142 = arith.subf %129, %141 : vector<12x32xf32>
    %cst_85 = arith.constant 9.99999974E-6 : f32
    %143 = vector.broadcast %cst_85 : f32 to vector<12x1xf32>
    %144 = arith.addf %140, %143 : vector<12x1xf32>
    %145 = math.rsqrt %144 : vector<12x1xf32>
    %146 = vector.broadcast %145 : vector<12x1xf32> to vector<12x32xf32>
    %147 = arith.mulf %142, %146 : vector<12x32xf32>
    %148 = vector.broadcast %30 : vector<1x32xf32> to vector<12x32xf32>
    %149 = arith.mulf %147, %148 : vector<12x32xf32>
    %150 = vector.broadcast %28 : vector<1x32xf32> to vector<12x32xf32>
    %151 = arith.addf %149, %150 : vector<12x32xf32>
    %cst_86 = arith.constant dense<0.000000e+00> : vector<12x64xf32>
    %152 = tpu.matmul %151, %36, %cst_86 {dimension_numbers = #tpu.dot_dimension_numbers<[1], [0], [0], [1], [0, 0, 1, 1], [], []>} : vector<12x32xf32>, vector<32x64xf32>, vector<12x64xf32> -> vector<12x64xf32>
    %153 = vector.broadcast %24 : vector<1x64xf32> to vector<12x64xf32>
    %154 = arith.addf %152, %153 : vector<12x64xf32>
    %cst_87 = arith.constant 0.000000e+00 : f32
    %155 = vector.broadcast %cst_87 : f32 to vector<12x64xf32>
    %156 = arith.maximumf %154, %155 : vector<12x64xf32>
    %cst_88 = arith.constant dense<0.000000e+00> : vector<12x32xf32>
    %157 = tpu.matmul %156, %38, %cst_88 {dimension_numbers = #tpu.dot_dimension_numbers<[1], [0], [0], [1], [0, 0, 1, 1], [], []>} : vector<12x64xf32>, vector<64x32xf32>, vector<12x32xf32> -> vector<12x32xf32>
    %158 = vector.broadcast %26 : vector<1x32xf32> to vector<12x32xf32>
    %159 = arith.addf %157, %158 : vector<12x32xf32>
    %160 = arith.addf %159, %151 : vector<12x32xf32>
    %cst_89 = arith.constant dense<0.000000e+00> : vector<12xf32>
    %161 = vector.multi_reduction <add>, %160, %cst_89 [1] : vector<12x32xf32> to vector<12xf32>
    %162 = vector.shape_cast %161 : vector<12xf32> to vector<12x1xf32>
    %cst_90 = arith.constant 3.200000e+01 : f32
    %163 = vector.broadcast %cst_90 : f32 to vector<12x1xf32>
    %164 = arith.divf %162, %163 : vector<12x1xf32>
    %165 = vector.broadcast %164 : vector<12x1xf32> to vector<12x32xf32>
    %166 = arith.subf %160, %165 : vector<12x32xf32>
    %167 = arith.mulf %166, %166 : vector<12x32xf32>
    %cst_91 = arith.constant dense<0.000000e+00> : vector<12xf32>
    %168 = vector.multi_reduction <add>, %167, %cst_91 [1] : vector<12x32xf32> to vector<12xf32>
    %169 = vector.shape_cast %168 : vector<12xf32> to vector<12x1xf32>
    %cst_92 = arith.constant 3.200000e+01 : f32
    %170 = vector.broadcast %cst_92 : f32 to vector<12x1xf32>
    %171 = arith.divf %169, %170 : vector<12x1xf32>
    %172 = vector.broadcast %164 : vector<12x1xf32> to vector<12x32xf32>
    %173 = arith.subf %160, %172 : vector<12x32xf32>
    %cst_93 = arith.constant 9.99999974E-6 : f32
    %174 = vector.broadcast %cst_93 : f32 to vector<12x1xf32>
    %175 = arith.addf %171, %174 : vector<12x1xf32>
    %176 = math.rsqrt %175 : vector<12x1xf32>
    %177 = vector.broadcast %176 : vector<12x1xf32> to vector<12x32xf32>
    %178 = arith.mulf %173, %177 : vector<12x32xf32>
    %179 = vector.broadcast %34 : vector<1x32xf32> to vector<12x32xf32>
    %180 = arith.mulf %178, %179 : vector<12x32xf32>
    %181 = vector.broadcast %32 : vector<1x32xf32> to vector<12x32xf32>
    %182 = arith.addf %180, %181 : vector<12x32xf32>
    %c1 = arith.constant 1 : index
    %c0_94 = arith.constant 0 : index
    %c0_95 = arith.constant 0 : index
    %183 = vector.load %arg33[%c1, %c0_94, %c0_95] : memref<2x1x32xf32, #tpu.memory_space<vmem>>, vector<1x1x32xf32>
    %184 = vector.shape_cast %183 : vector<1x1x32xf32> to vector<1x32xf32>
    %c1_96 = arith.constant 1 : index
    %c0_97 = arith.constant 0 : index
    %c0_98 = arith.constant 0 : index
    %185 = vector.load %arg34[%c1_96, %c0_97, %c0_98] : memref<2x1x32xf32, #tpu.memory_space<vmem>>, vector<1x1x32xf32>
    %186 = vector.shape_cast %185 : vector<1x1x32xf32> to vector<1x32xf32>
    %c1_99 = arith.constant 1 : index
    %c0_100 = arith.constant 0 : index
    %c0_101 = arith.constant 0 : index
    %187 = vector.load %arg35[%c1_99, %c0_100, %c0_101] : memref<2x1x32xf32, #tpu.memory_space<vmem>>, vector<1x1x32xf32>
    %188 = vector.shape_cast %187 : vector<1x1x32xf32> to vector<1x32xf32>
    %c1_102 = arith.constant 1 : index
    %c0_103 = arith.constant 0 : index
    %c0_104 = arith.constant 0 : index
    %189 = vector.load %arg36[%c1_102, %c0_103, %c0_104] : memref<2x1x32xf32, #tpu.memory_space<vmem>>, vector<1x1x32xf32>
    %190 = vector.shape_cast %189 : vector<1x1x32xf32> to vector<1x32xf32>
    %c1_105 = arith.constant 1 : index
    %c0_106 = arith.constant 0 : index
    %c0_107 = arith.constant 0 : index
    %191 = vector.load %arg37[%c1_105, %c0_106, %c0_107] : memref<2x32x32xf32, #tpu.memory_space<vmem>>, vector<1x32x32xf32>
    %192 = vector.shape_cast %191 : vector<1x32x32xf32> to vector<32x32xf32>
    %c1_108 = arith.constant 1 : index
    %c0_109 = arith.constant 0 : index
    %c0_110 = arith.constant 0 : index
    %193 = vector.load %arg38[%c1_108, %c0_109, %c0_110] : memref<2x32x32xf32, #tpu.memory_space<vmem>>, vector<1x32x32xf32>
    %194 = vector.shape_cast %193 : vector<1x32x32xf32> to vector<32x32xf32>
    %c1_111 = arith.constant 1 : index
    %c0_112 = arith.constant 0 : index
    %c0_113 = arith.constant 0 : index
    %195 = vector.load %arg39[%c1_111, %c0_112, %c0_113] : memref<2x32x32xf32, #tpu.memory_space<vmem>>, vector<1x32x32xf32>
    %196 = vector.shape_cast %195 : vector<1x32x32xf32> to vector<32x32xf32>
    %c1_114 = arith.constant 1 : index
    %c0_115 = arith.constant 0 : index
    %c0_116 = arith.constant 0 : index
    %197 = vector.load %arg40[%c1_114, %c0_115, %c0_116] : memref<2x32x32xf32, #tpu.memory_space<vmem>>, vector<1x32x32xf32>
    %198 = vector.shape_cast %197 : vector<1x32x32xf32> to vector<32x32xf32>
    %c1_117 = arith.constant 1 : index
    %c0_118 = arith.constant 0 : index
    %c0_119 = arith.constant 0 : index
    %199 = vector.load %arg41[%c1_117, %c0_118, %c0_119] : memref<2x1x64xf32, #tpu.memory_space<vmem>>, vector<1x1x64xf32>
    %200 = vector.shape_cast %199 : vector<1x1x64xf32> to vector<1x64xf32>
    %c1_120 = arith.constant 1 : index
    %c0_121 = arith.constant 0 : index
    %c0_122 = arith.constant 0 : index
    %201 = vector.load %arg42[%c1_120, %c0_121, %c0_122] : memref<2x1x32xf32, #tpu.memory_space<vmem>>, vector<1x1x32xf32>
    %202 = vector.shape_cast %201 : vector<1x1x32xf32> to vector<1x32xf32>
    %c1_123 = arith.constant 1 : index
    %c0_124 = arith.constant 0 : index
    %c0_125 = arith.constant 0 : index
    %203 = vector.load %arg43[%c1_123, %c0_124, %c0_125] : memref<2x1x32xf32, #tpu.memory_space<vmem>>, vector<1x1x32xf32>
    %204 = vector.shape_cast %203 : vector<1x1x32xf32> to vector<1x32xf32>
    %c1_126 = arith.constant 1 : index
    %c0_127 = arith.constant 0 : index
    %c0_128 = arith.constant 0 : index
    %205 = vector.load %arg44[%c1_126, %c0_127, %c0_128] : memref<2x1x32xf32, #tpu.memory_space<vmem>>, vector<1x1x32xf32>
    %206 = vector.shape_cast %205 : vector<1x1x32xf32> to vector<1x32xf32>
    %c1_129 = arith.constant 1 : index
    %c0_130 = arith.constant 0 : index
    %c0_131 = arith.constant 0 : index
    %207 = vector.load %arg45[%c1_129, %c0_130, %c0_131] : memref<2x1x32xf32, #tpu.memory_space<vmem>>, vector<1x1x32xf32>
    %208 = vector.shape_cast %207 : vector<1x1x32xf32> to vector<1x32xf32>
    %c1_132 = arith.constant 1 : index
    %c0_133 = arith.constant 0 : index
    %c0_134 = arith.constant 0 : index
    %209 = vector.load %arg46[%c1_132, %c0_133, %c0_134] : memref<2x1x32xf32, #tpu.memory_space<vmem>>, vector<1x1x32xf32>
    %210 = vector.shape_cast %209 : vector<1x1x32xf32> to vector<1x32xf32>
    %c1_135 = arith.constant 1 : index
    %c0_136 = arith.constant 0 : index
    %c0_137 = arith.constant 0 : index
    %211 = vector.load %arg47[%c1_135, %c0_136, %c0_137] : memref<2x32x64xf32, #tpu.memory_space<vmem>>, vector<1x32x64xf32>
    %212 = vector.shape_cast %211 : vector<1x32x64xf32> to vector<32x64xf32>
    %c1_138 = arith.constant 1 : index
    %c0_139 = arith.constant 0 : index
    %c0_140 = arith.constant 0 : index
    %213 = vector.load %arg48[%c1_138, %c0_139, %c0_140] : memref<2x64x32xf32, #tpu.memory_space<vmem>>, vector<1x64x32xf32>
    %214 = vector.shape_cast %213 : vector<1x64x32xf32> to vector<64x32xf32>
    %cst_141 = arith.constant dense<0.000000e+00> : vector<12x32xf32>
    %215 = tpu.matmul %182, %196, %cst_141 {dimension_numbers = #tpu.dot_dimension_numbers<[1], [0], [0], [1], [0, 0, 1, 1], [], []>} : vector<12x32xf32>, vector<32x32xf32>, vector<12x32xf32> -> vector<12x32xf32>
    %216 = vector.broadcast %188 : vector<1x32xf32> to vector<12x32xf32>
    %217 = arith.addf %215, %216 : vector<12x32xf32>
    %cst_142 = arith.constant dense<0.000000e+00> : vector<12x32xf32>
    %218 = tpu.matmul %182, %192, %cst_142 {dimension_numbers = #tpu.dot_dimension_numbers<[1], [0], [0], [1], [0, 0, 1, 1], [], []>} : vector<12x32xf32>, vector<32x32xf32>, vector<12x32xf32> -> vector<12x32xf32>
    %219 = vector.broadcast %184 : vector<1x32xf32> to vector<12x32xf32>
    %220 = arith.addf %218, %219 : vector<12x32xf32>
    %cst_143 = arith.constant dense<0.000000e+00> : vector<12x32xf32>
    %221 = tpu.matmul %182, %198, %cst_143 {dimension_numbers = #tpu.dot_dimension_numbers<[1], [0], [0], [1], [0, 0, 1, 1], [], []>} : vector<12x32xf32>, vector<32x32xf32>, vector<12x32xf32> -> vector<12x32xf32>
    %222 = vector.broadcast %190 : vector<1x32xf32> to vector<12x32xf32>
    %223 = arith.addf %221, %222 : vector<12x32xf32>
    %224 = vector.extract_strided_slice %217 {offsets = [0, 0], sizes = [12, 8], strides = [1, 1]} : vector<12x32xf32> to vector<12x8xf32>
    %225 = vector.extract_strided_slice %220 {offsets = [0, 0], sizes = [12, 8], strides = [1, 1]} : vector<12x32xf32> to vector<12x8xf32>
    %226 = vector.extract_strided_slice %223 {offsets = [0, 0], sizes = [12, 8], strides = [1, 1]} : vector<12x32xf32> to vector<12x8xf32>
    %cst_144 = arith.constant dense<0.000000e+00> : vector<12x12xf32>
    %227 = tpu.matmul %224, %225, %cst_144 {dimension_numbers = #tpu.dot_dimension_numbers<[1], [1], [0], [0], [0, 0, 1, 0], [], []>} : vector<12x8xf32>, vector<12x8xf32>, vector<12x12xf32> -> vector<12x12xf32>
    %cst_145 = arith.constant 0.353553385 : f32
    %228 = vector.broadcast %cst_145 : f32 to vector<12x12xf32>
    %229 = arith.mulf %227, %228 : vector<12x12xf32>
    %cst_146 = arith.constant dense<0xFF800000> : vector<12xf32>
    %230 = vector.multi_reduction <maximumf>, %229, %cst_146 [1] : vector<12x12xf32> to vector<12xf32>
    %231 = vector.shape_cast %230 : vector<12xf32> to vector<12x1xf32>
    %232 = vector.broadcast %231 : vector<12x1xf32> to vector<12x12xf32>
    %233 = arith.subf %229, %232 : vector<12x12xf32>
    %234 = math.exp %233 : vector<12x12xf32>
    %cst_147 = arith.constant dense<0.000000e+00> : vector<12xf32>
    %235 = vector.multi_reduction <add>, %234, %cst_147 [1] : vector<12x12xf32> to vector<12xf32>
    %236 = vector.shape_cast %235 : vector<12xf32> to vector<12x1xf32>
    %237 = tpu.reciprocal %236 {approx = true} : vector<12x1xf32> -> vector<12x1xf32>
    %238 = vector.broadcast %237 : vector<12x1xf32> to vector<12x12xf32>
    %239 = arith.mulf %234, %238 : vector<12x12xf32>
    %cst_148 = arith.constant dense<0.000000e+00> : vector<12x8xf32>
    %240 = tpu.matmul %239, %226, %cst_148 {dimension_numbers = #tpu.dot_dimension_numbers<[1], [0], [0], [1], [0, 0, 1, 1], [], []>} : vector<12x12xf32>, vector<12x8xf32>, vector<12x8xf32> -> vector<12x8xf32>
    %241 = vector.extract_strided_slice %194 {offsets = [0, 0], sizes = [8, 32], strides = [1, 1]} : vector<32x32xf32> to vector<8x32xf32>
    %cst_149 = arith.constant dense<0.000000e+00> : vector<12x32xf32>
    %242 = tpu.matmul %240, %241, %cst_149 {dimension_numbers = #tpu.dot_dimension_numbers<[1], [0], [0], [1], [0, 0, 1, 1], [], []>} : vector<12x8xf32>, vector<8x32xf32>, vector<12x32xf32> -> vector<12x32xf32>
    %243 = vector.broadcast %186 : vector<1x32xf32> to vector<12x32xf32>
    %244 = arith.addf %243, %242 : vector<12x32xf32>
    %245 = vector.extract_strided_slice %217 {offsets = [0, 8], sizes = [12, 8], strides = [1, 1]} : vector<12x32xf32> to vector<12x8xf32>
    %246 = vector.extract_strided_slice %220 {offsets = [0, 8], sizes = [12, 8], strides = [1, 1]} : vector<12x32xf32> to vector<12x8xf32>
    %247 = vector.extract_strided_slice %223 {offsets = [0, 8], sizes = [12, 8], strides = [1, 1]} : vector<12x32xf32> to vector<12x8xf32>
    %cst_150 = arith.constant dense<0.000000e+00> : vector<12x12xf32>
    %248 = tpu.matmul %245, %246, %cst_150 {dimension_numbers = #tpu.dot_dimension_numbers<[1], [1], [0], [0], [0, 0, 1, 0], [], []>} : vector<12x8xf32>, vector<12x8xf32>, vector<12x12xf32> -> vector<12x12xf32>
    %cst_151 = arith.constant 0.353553385 : f32
    %249 = vector.broadcast %cst_151 : f32 to vector<12x12xf32>
    %250 = arith.mulf %248, %249 : vector<12x12xf32>
    %cst_152 = arith.constant dense<0xFF800000> : vector<12xf32>
    %251 = vector.multi_reduction <maximumf>, %250, %cst_152 [1] : vector<12x12xf32> to vector<12xf32>
    %252 = vector.shape_cast %251 : vector<12xf32> to vector<12x1xf32>
    %253 = vector.broadcast %252 : vector<12x1xf32> to vector<12x12xf32>
    %254 = arith.subf %250, %253 : vector<12x12xf32>
    %255 = math.exp %254 : vector<12x12xf32>
    %cst_153 = arith.constant dense<0.000000e+00> : vector<12xf32>
    %256 = vector.multi_reduction <add>, %255, %cst_153 [1] : vector<12x12xf32> to vector<12xf32>
    %257 = vector.shape_cast %256 : vector<12xf32> to vector<12x1xf32>
    %258 = tpu.reciprocal %257 {approx = true} : vector<12x1xf32> -> vector<12x1xf32>
    %259 = vector.broadcast %258 : vector<12x1xf32> to vector<12x12xf32>
    %260 = arith.mulf %255, %259 : vector<12x12xf32>
    %cst_154 = arith.constant dense<0.000000e+00> : vector<12x8xf32>
    %261 = tpu.matmul %260, %247, %cst_154 {dimension_numbers = #tpu.dot_dimension_numbers<[1], [0], [0], [1], [0, 0, 1, 1], [], []>} : vector<12x12xf32>, vector<12x8xf32>, vector<12x8xf32> -> vector<12x8xf32>
    %262 = vector.extract_strided_slice %194 {offsets = [8, 0], sizes = [8, 32], strides = [1, 1]} : vector<32x32xf32> to vector<8x32xf32>
    %cst_155 = arith.constant dense<0.000000e+00> : vector<12x32xf32>
    %263 = tpu.matmul %261, %262, %cst_155 {dimension_numbers = #tpu.dot_dimension_numbers<[1], [0], [0], [1], [0, 0, 1, 1], [], []>} : vector<12x8xf32>, vector<8x32xf32>, vector<12x32xf32> -> vector<12x32xf32>
    %264 = arith.addf %244, %263 : vector<12x32xf32>
    %265 = vector.extract_strided_slice %217 {offsets = [0, 16], sizes = [12, 8], strides = [1, 1]} : vector<12x32xf32> to vector<12x8xf32>
    %266 = vector.extract_strided_slice %220 {offsets = [0, 16], sizes = [12, 8], strides = [1, 1]} : vector<12x32xf32> to vector<12x8xf32>
    %267 = vector.extract_strided_slice %223 {offsets = [0, 16], sizes = [12, 8], strides = [1, 1]} : vector<12x32xf32> to vector<12x8xf32>
    %cst_156 = arith.constant dense<0.000000e+00> : vector<12x12xf32>
    %268 = tpu.matmul %265, %266, %cst_156 {dimension_numbers = #tpu.dot_dimension_numbers<[1], [1], [0], [0], [0, 0, 1, 0], [], []>} : vector<12x8xf32>, vector<12x8xf32>, vector<12x12xf32> -> vector<12x12xf32>
    %cst_157 = arith.constant 0.353553385 : f32
    %269 = vector.broadcast %cst_157 : f32 to vector<12x12xf32>
    %270 = arith.mulf %268, %269 : vector<12x12xf32>
    %cst_158 = arith.constant dense<0xFF800000> : vector<12xf32>
    %271 = vector.multi_reduction <maximumf>, %270, %cst_158 [1] : vector<12x12xf32> to vector<12xf32>
    %272 = vector.shape_cast %271 : vector<12xf32> to vector<12x1xf32>
    %273 = vector.broadcast %272 : vector<12x1xf32> to vector<12x12xf32>
    %274 = arith.subf %270, %273 : vector<12x12xf32>
    %275 = math.exp %274 : vector<12x12xf32>
    %cst_159 = arith.constant dense<0.000000e+00> : vector<12xf32>
    %276 = vector.multi_reduction <add>, %275, %cst_159 [1] : vector<12x12xf32> to vector<12xf32>
    %277 = vector.shape_cast %276 : vector<12xf32> to vector<12x1xf32>
    %278 = tpu.reciprocal %277 {approx = true} : vector<12x1xf32> -> vector<12x1xf32>
    %279 = vector.broadcast %278 : vector<12x1xf32> to vector<12x12xf32>
    %280 = arith.mulf %275, %279 : vector<12x12xf32>
    %cst_160 = arith.constant dense<0.000000e+00> : vector<12x8xf32>
    %281 = tpu.matmul %280, %267, %cst_160 {dimension_numbers = #tpu.dot_dimension_numbers<[1], [0], [0], [1], [0, 0, 1, 1], [], []>} : vector<12x12xf32>, vector<12x8xf32>, vector<12x8xf32> -> vector<12x8xf32>
    %282 = vector.extract_strided_slice %194 {offsets = [16, 0], sizes = [8, 32], strides = [1, 1]} : vector<32x32xf32> to vector<8x32xf32>
    %cst_161 = arith.constant dense<0.000000e+00> : vector<12x32xf32>
    %283 = tpu.matmul %281, %282, %cst_161 {dimension_numbers = #tpu.dot_dimension_numbers<[1], [0], [0], [1], [0, 0, 1, 1], [], []>} : vector<12x8xf32>, vector<8x32xf32>, vector<12x32xf32> -> vector<12x32xf32>
    %284 = arith.addf %264, %283 : vector<12x32xf32>
    %285 = vector.extract_strided_slice %217 {offsets = [0, 24], sizes = [12, 8], strides = [1, 1]} : vector<12x32xf32> to vector<12x8xf32>
    %286 = vector.extract_strided_slice %220 {offsets = [0, 24], sizes = [12, 8], strides = [1, 1]} : vector<12x32xf32> to vector<12x8xf32>
    %287 = vector.extract_strided_slice %223 {offsets = [0, 24], sizes = [12, 8], strides = [1, 1]} : vector<12x32xf32> to vector<12x8xf32>
    %cst_162 = arith.constant dense<0.000000e+00> : vector<12x12xf32>
    %288 = tpu.matmul %285, %286, %cst_162 {dimension_numbers = #tpu.dot_dimension_numbers<[1], [1], [0], [0], [0, 0, 1, 0], [], []>} : vector<12x8xf32>, vector<12x8xf32>, vector<12x12xf32> -> vector<12x12xf32>
    %cst_163 = arith.constant 0.353553385 : f32
    %289 = vector.broadcast %cst_163 : f32 to vector<12x12xf32>
    %290 = arith.mulf %288, %289 : vector<12x12xf32>
    %cst_164 = arith.constant dense<0xFF800000> : vector<12xf32>
    %291 = vector.multi_reduction <maximumf>, %290, %cst_164 [1] : vector<12x12xf32> to vector<12xf32>
    %292 = vector.shape_cast %291 : vector<12xf32> to vector<12x1xf32>
    %293 = vector.broadcast %292 : vector<12x1xf32> to vector<12x12xf32>
    %294 = arith.subf %290, %293 : vector<12x12xf32>
    %295 = math.exp %294 : vector<12x12xf32>
    %cst_165 = arith.constant dense<0.000000e+00> : vector<12xf32>
    %296 = vector.multi_reduction <add>, %295, %cst_165 [1] : vector<12x12xf32> to vector<12xf32>
    %297 = vector.shape_cast %296 : vector<12xf32> to vector<12x1xf32>
    %298 = tpu.reciprocal %297 {approx = true} : vector<12x1xf32> -> vector<12x1xf32>
    %299 = vector.broadcast %298 : vector<12x1xf32> to vector<12x12xf32>
    %300 = arith.mulf %295, %299 : vector<12x12xf32>
    %cst_166 = arith.constant dense<0.000000e+00> : vector<12x8xf32>
    %301 = tpu.matmul %300, %287, %cst_166 {dimension_numbers = #tpu.dot_dimension_numbers<[1], [0], [0], [1], [0, 0, 1, 1], [], []>} : vector<12x12xf32>, vector<12x8xf32>, vector<12x8xf32> -> vector<12x8xf32>
    %302 = vector.extract_strided_slice %194 {offsets = [24, 0], sizes = [8, 32], strides = [1, 1]} : vector<32x32xf32> to vector<8x32xf32>
    %cst_167 = arith.constant dense<0.000000e+00> : vector<12x32xf32>
    %303 = tpu.matmul %301, %302, %cst_167 {dimension_numbers = #tpu.dot_dimension_numbers<[1], [0], [0], [1], [0, 0, 1, 1], [], []>} : vector<12x8xf32>, vector<8x32xf32>, vector<12x32xf32> -> vector<12x32xf32>
    %304 = arith.addf %284, %303 : vector<12x32xf32>
    %305 = arith.addf %304, %182 : vector<12x32xf32>
    %cst_168 = arith.constant dense<0.000000e+00> : vector<12xf32>
    %306 = vector.multi_reduction <add>, %305, %cst_168 [1] : vector<12x32xf32> to vector<12xf32>
    %307 = vector.shape_cast %306 : vector<12xf32> to vector<12x1xf32>
    %cst_169 = arith.constant 3.200000e+01 : f32
    %308 = vector.broadcast %cst_169 : f32 to vector<12x1xf32>
    %309 = arith.divf %307, %308 : vector<12x1xf32>
    %310 = vector.broadcast %309 : vector<12x1xf32> to vector<12x32xf32>
    %311 = arith.subf %305, %310 : vector<12x32xf32>
    %312 = arith.mulf %311, %311 : vector<12x32xf32>
    %cst_170 = arith.constant dense<0.000000e+00> : vector<12xf32>
    %313 = vector.multi_reduction <add>, %312, %cst_170 [1] : vector<12x32xf32> to vector<12xf32>
    %314 = vector.shape_cast %313 : vector<12xf32> to vector<12x1xf32>
    %cst_171 = arith.constant 3.200000e+01 : f32
    %315 = vector.broadcast %cst_171 : f32 to vector<12x1xf32>
    %316 = arith.divf %314, %315 : vector<12x1xf32>
    %317 = vector.broadcast %309 : vector<12x1xf32> to vector<12x32xf32>
    %318 = arith.subf %305, %317 : vector<12x32xf32>
    %cst_172 = arith.constant 9.99999974E-6 : f32
    %319 = vector.broadcast %cst_172 : f32 to vector<12x1xf32>
    %320 = arith.addf %316, %319 : vector<12x1xf32>
    %321 = math.rsqrt %320 : vector<12x1xf32>
    %322 = vector.broadcast %321 : vector<12x1xf32> to vector<12x32xf32>
    %323 = arith.mulf %318, %322 : vector<12x32xf32>
    %324 = vector.broadcast %206 : vector<1x32xf32> to vector<12x32xf32>
    %325 = arith.mulf %323, %324 : vector<12x32xf32>
    %326 = vector.broadcast %204 : vector<1x32xf32> to vector<12x32xf32>
    %327 = arith.addf %325, %326 : vector<12x32xf32>
    %cst_173 = arith.constant dense<0.000000e+00> : vector<12x64xf32>
    %328 = tpu.matmul %327, %212, %cst_173 {dimension_numbers = #tpu.dot_dimension_numbers<[1], [0], [0], [1], [0, 0, 1, 1], [], []>} : vector<12x32xf32>, vector<32x64xf32>, vector<12x64xf32> -> vector<12x64xf32>
    %329 = vector.broadcast %200 : vector<1x64xf32> to vector<12x64xf32>
    %330 = arith.addf %328, %329 : vector<12x64xf32>
    %cst_174 = arith.constant 0.000000e+00 : f32
    %331 = vector.broadcast %cst_174 : f32 to vector<12x64xf32>
    %332 = arith.maximumf %330, %331 : vector<12x64xf32>
    %cst_175 = arith.constant dense<0.000000e+00> : vector<12x32xf32>
    %333 = tpu.matmul %332, %214, %cst_175 {dimension_numbers = #tpu.dot_dimension_numbers<[1], [0], [0], [1], [0, 0, 1, 1], [], []>} : vector<12x64xf32>, vector<64x32xf32>, vector<12x32xf32> -> vector<12x32xf32>
    %334 = vector.broadcast %202 : vector<1x32xf32> to vector<12x32xf32>
    %335 = arith.addf %333, %334 : vector<12x32xf32>
    %336 = arith.addf %335, %327 : vector<12x32xf32>
    %cst_176 = arith.constant dense<0.000000e+00> : vector<12xf32>
    %337 = vector.multi_reduction <add>, %336, %cst_176 [1] : vector<12x32xf32> to vector<12xf32>
    %338 = vector.shape_cast %337 : vector<12xf32> to vector<12x1xf32>
    %cst_177 = arith.constant 3.200000e+01 : f32
    %339 = vector.broadcast %cst_177 : f32 to vector<12x1xf32>
    %340 = arith.divf %338, %339 : vector<12x1xf32>
    %341 = vector.broadcast %340 : vector<12x1xf32> to vector<12x32xf32>
    %342 = arith.subf %336, %341 : vector<12x32xf32>
    %343 = arith.mulf %342, %342 : vector<12x32xf32>
    %cst_178 = arith.constant dense<0.000000e+00> : vector<12xf32>
    %344 = vector.multi_reduction <add>, %343, %cst_178 [1] : vector<12x32xf32> to vector<12xf32>
    %345 = vector.shape_cast %344 : vector<12xf32> to vector<12x1xf32>
    %cst_179 = arith.constant 3.200000e+01 : f32
    %346 = vector.broadcast %cst_179 : f32 to vector<12x1xf32>
    %347 = arith.divf %345, %346 : vector<12x1xf32>
    %348 = vector.broadcast %340 : vector<12x1xf32> to vector<12x32xf32>
    %349 = arith.subf %336, %348 : vector<12x32xf32>
    %cst_180 = arith.constant 9.99999974E-6 : f32
    %350 = vector.broadcast %cst_180 : f32 to vector<12x1xf32>
    %351 = arith.addf %347, %350 : vector<12x1xf32>
    %352 = math.rsqrt %351 : vector<12x1xf32>
    %353 = vector.broadcast %352 : vector<12x1xf32> to vector<12x32xf32>
    %354 = arith.mulf %349, %353 : vector<12x32xf32>
    %355 = vector.broadcast %210 : vector<1x32xf32> to vector<12x32xf32>
    %356 = arith.mulf %354, %355 : vector<12x32xf32>
    %357 = vector.broadcast %208 : vector<1x32xf32> to vector<12x32xf32>
    %358 = arith.addf %356, %357 : vector<12x32xf32>
    %c0_181 = arith.constant 0 : index
    %c0_182 = arith.constant 0 : index
    %c0_183 = arith.constant 0 : index
    %359 = vector.load %arg2[%c0_181, %c0_182, %c0_183] : memref<1x8x4xf32, #tpu.memory_space<vmem>>, vector<1x8x4xf32>
    %360 = vector.shape_cast %359 : vector<1x8x4xf32> to vector<8x4xf32>
    %c0_184 = arith.constant 0 : index
    %c0_185 = arith.constant 0 : index
    %361 = vector.load %arg4[%c0_184, %c0_185] : memref<4x32xf32, #tpu.memory_space<vmem>>, vector<4x32xf32>
    %cst_186 = arith.constant dense<0.000000e+00> : vector<8x32xf32>
    %362 = tpu.matmul %360, %361, %cst_186 {dimension_numbers = #tpu.dot_dimension_numbers<[1], [0], [0], [1], [0, 0, 1, 1], [], []>} : vector<8x4xf32>, vector<4x32xf32>, vector<8x32xf32> -> vector<8x32xf32>
    %c0_187 = arith.constant 0 : index
    %c0_188 = arith.constant 0 : index
    %363 = vector.load %arg3[%c0_187, %c0_188] : memref<1x32xf32, #tpu.memory_space<vmem>>, vector<1x32xf32>
    %364 = vector.broadcast %363 : vector<1x32xf32> to vector<8x32xf32>
    %365 = arith.addf %362, %364 : vector<8x32xf32>
    %c0_189 = arith.constant 0 : index
    %c0_190 = arith.constant 0 : index
    %366 = vector.load %arg5[%c0_189, %c0_190] : memref<1x64xf32, #tpu.memory_space<vmem>>, vector<1x64xf32>
    %c0_191 = arith.constant 0 : index
    %c0_192 = arith.constant 0 : index
    %367 = vector.load %arg6[%c0_191, %c0_192] : memref<1x32xf32, #tpu.memory_space<vmem>>, vector<1x32xf32>
    %c0_193 = arith.constant 0 : index
    %c0_194 = arith.constant 0 : index
    %368 = vector.load %arg7[%c0_193, %c0_194] : memref<1x32xf32, #tpu.memory_space<vmem>>, vector<1x32xf32>
    %c0_195 = arith.constant 0 : index
    %c0_196 = arith.constant 0 : index
    %369 = vector.load %arg8[%c0_195, %c0_196] : memref<1x32xf32, #tpu.memory_space<vmem>>, vector<1x32xf32>
    %c0_197 = arith.constant 0 : index
    %c0_198 = arith.constant 0 : index
    %370 = vector.load %arg9[%c0_197, %c0_198] : memref<1x32xf32, #tpu.memory_space<vmem>>, vector<1x32xf32>
    %c0_199 = arith.constant 0 : index
    %c0_200 = arith.constant 0 : index
    %371 = vector.load %arg10[%c0_199, %c0_200] : memref<1x32xf32, #tpu.memory_space<vmem>>, vector<1x32xf32>
    %c0_201 = arith.constant 0 : index
    %c0_202 = arith.constant 0 : index
    %372 = vector.load %arg11[%c0_201, %c0_202] : memref<32x32xf32, #tpu.memory_space<vmem>>, vector<32x32xf32>
    %c0_203 = arith.constant 0 : index
    %c0_204 = arith.constant 0 : index
    %373 = vector.load %arg12[%c0_203, %c0_204] : memref<32x32xf32, #tpu.memory_space<vmem>>, vector<32x32xf32>
    %c0_205 = arith.constant 0 : index
    %c0_206 = arith.constant 0 : index
    %374 = vector.load %arg13[%c0_205, %c0_206] : memref<32x32xf32, #tpu.memory_space<vmem>>, vector<32x32xf32>
    %c0_207 = arith.constant 0 : index
    %c0_208 = arith.constant 0 : index
    %375 = vector.load %arg14[%c0_207, %c0_208] : memref<32x32xf32, #tpu.memory_space<vmem>>, vector<32x32xf32>
    %c0_209 = arith.constant 0 : index
    %c0_210 = arith.constant 0 : index
    %376 = vector.load %arg15[%c0_209, %c0_210] : memref<1x32xf32, #tpu.memory_space<vmem>>, vector<1x32xf32>
    %c0_211 = arith.constant 0 : index
    %c0_212 = arith.constant 0 : index
    %377 = vector.load %arg16[%c0_211, %c0_212] : memref<1x32xf32, #tpu.memory_space<vmem>>, vector<1x32xf32>
    %c0_213 = arith.constant 0 : index
    %c0_214 = arith.constant 0 : index
    %378 = vector.load %arg17[%c0_213, %c0_214] : memref<1x32xf32, #tpu.memory_space<vmem>>, vector<1x32xf32>
    %c0_215 = arith.constant 0 : index
    %c0_216 = arith.constant 0 : index
    %379 = vector.load %arg18[%c0_215, %c0_216] : memref<1x32xf32, #tpu.memory_space<vmem>>, vector<1x32xf32>
    %c0_217 = arith.constant 0 : index
    %c0_218 = arith.constant 0 : index
    %380 = vector.load %arg19[%c0_217, %c0_218] : memref<1x32xf32, #tpu.memory_space<vmem>>, vector<1x32xf32>
    %c0_219 = arith.constant 0 : index
    %c0_220 = arith.constant 0 : index
    %381 = vector.load %arg20[%c0_219, %c0_220] : memref<1x32xf32, #tpu.memory_space<vmem>>, vector<1x32xf32>
    %c0_221 = arith.constant 0 : index
    %c0_222 = arith.constant 0 : index
    %382 = vector.load %arg21[%c0_221, %c0_222] : memref<1x32xf32, #tpu.memory_space<vmem>>, vector<1x32xf32>
    %c0_223 = arith.constant 0 : index
    %c0_224 = arith.constant 0 : index
    %383 = vector.load %arg22[%c0_223, %c0_224] : memref<1x32xf32, #tpu.memory_space<vmem>>, vector<1x32xf32>
    %c0_225 = arith.constant 0 : index
    %c0_226 = arith.constant 0 : index
    %384 = vector.load %arg23[%c0_225, %c0_226] : memref<1x32xf32, #tpu.memory_space<vmem>>, vector<1x32xf32>
    %c0_227 = arith.constant 0 : index
    %c0_228 = arith.constant 0 : index
    %385 = vector.load %arg24[%c0_227, %c0_228] : memref<1x32xf32, #tpu.memory_space<vmem>>, vector<1x32xf32>
    %c0_229 = arith.constant 0 : index
    %c0_230 = arith.constant 0 : index
    %386 = vector.load %arg25[%c0_229, %c0_230] : memref<32x32xf32, #tpu.memory_space<vmem>>, vector<32x32xf32>
    %c0_231 = arith.constant 0 : index
    %c0_232 = arith.constant 0 : index
    %387 = vector.load %arg26[%c0_231, %c0_232] : memref<32x32xf32, #tpu.memory_space<vmem>>, vector<32x32xf32>
    %c0_233 = arith.constant 0 : index
    %c0_234 = arith.constant 0 : index
    %388 = vector.load %arg27[%c0_233, %c0_234] : memref<32x32xf32, #tpu.memory_space<vmem>>, vector<32x32xf32>
    %c0_235 = arith.constant 0 : index
    %c0_236 = arith.constant 0 : index
    %389 = vector.load %arg28[%c0_235, %c0_236] : memref<32x32xf32, #tpu.memory_space<vmem>>, vector<32x32xf32>
    %c0_237 = arith.constant 0 : index
    %c0_238 = arith.constant 0 : index
    %390 = vector.load %arg29[%c0_237, %c0_238] : memref<32x64xf32, #tpu.memory_space<vmem>>, vector<32x64xf32>
    %c0_239 = arith.constant 0 : index
    %c0_240 = arith.constant 0 : index
    %391 = vector.load %arg30[%c0_239, %c0_240] : memref<64x32xf32, #tpu.memory_space<vmem>>, vector<64x32xf32>
    %cst_241 = arith.constant dense<0.000000e+00> : vector<8x32xf32>
    %392 = tpu.matmul %365, %388, %cst_241 {dimension_numbers = #tpu.dot_dimension_numbers<[1], [0], [0], [1], [0, 0, 1, 1], [], []>} : vector<8x32xf32>, vector<32x32xf32>, vector<8x32xf32> -> vector<8x32xf32>
    %393 = vector.broadcast %384 : vector<1x32xf32> to vector<8x32xf32>
    %394 = arith.addf %392, %393 : vector<8x32xf32>
    %cst_242 = arith.constant dense<0.000000e+00> : vector<8x32xf32>
    %395 = tpu.matmul %365, %386, %cst_242 {dimension_numbers = #tpu.dot_dimension_numbers<[1], [0], [0], [1], [0, 0, 1, 1], [], []>} : vector<8x32xf32>, vector<32x32xf32>, vector<8x32xf32> -> vector<8x32xf32>
    %396 = vector.broadcast %382 : vector<1x32xf32> to vector<8x32xf32>
    %397 = arith.addf %395, %396 : vector<8x32xf32>
    %cst_243 = arith.constant dense<0.000000e+00> : vector<8x32xf32>
    %398 = tpu.matmul %365, %389, %cst_243 {dimension_numbers = #tpu.dot_dimension_numbers<[1], [0], [0], [1], [0, 0, 1, 1], [], []>} : vector<8x32xf32>, vector<32x32xf32>, vector<8x32xf32> -> vector<8x32xf32>
    %399 = vector.broadcast %385 : vector<1x32xf32> to vector<8x32xf32>
    %400 = arith.addf %398, %399 : vector<8x32xf32>
    %401 = vector.extract_strided_slice %394 {offsets = [0, 0], sizes = [8, 8], strides = [1, 1]} : vector<8x32xf32> to vector<8x8xf32>
    %402 = vector.extract_strided_slice %397 {offsets = [0, 0], sizes = [8, 8], strides = [1, 1]} : vector<8x32xf32> to vector<8x8xf32>
    %403 = vector.extract_strided_slice %400 {offsets = [0, 0], sizes = [8, 8], strides = [1, 1]} : vector<8x32xf32> to vector<8x8xf32>
    %cst_244 = arith.constant dense<0.000000e+00> : vector<8x8xf32>
    %404 = tpu.matmul %401, %402, %cst_244 {dimension_numbers = #tpu.dot_dimension_numbers<[1], [1], [0], [0], [0, 0, 1, 0], [], []>} : vector<8x8xf32>, vector<8x8xf32>, vector<8x8xf32> -> vector<8x8xf32>
    %cst_245 = arith.constant 0.353553385 : f32
    %405 = vector.broadcast %cst_245 : f32 to vector<8x8xf32>
    %406 = arith.mulf %404, %405 : vector<8x8xf32>
    %407 = tpu.iota {dimensions = array<i32: 0>} : vector<8x8xi32>
    %408 = tpu.iota {dimensions = array<i32: 1>} : vector<8x8xi32>
    %409 = arith.cmpi sle, %408, %407 : vector<8x8xi32>
    %cst_246 = arith.constant -1.000000e+09 : f32
    %410 = vector.broadcast %cst_246 : f32 to vector<8x8xf32>
    %411 = arith.select %409, %406, %410 : vector<8x8xi1>, vector<8x8xf32>
    %cst_247 = arith.constant dense<0xFF800000> : vector<8xf32>
    %412 = vector.multi_reduction <maximumf>, %411, %cst_247 [1] : vector<8x8xf32> to vector<8xf32>
    %413 = vector.shape_cast %412 : vector<8xf32> to vector<8x1xf32>
    %414 = vector.broadcast %413 : vector<8x1xf32> to vector<8x8xf32>
    %415 = arith.subf %411, %414 : vector<8x8xf32>
    %416 = math.exp %415 : vector<8x8xf32>
    %cst_248 = arith.constant dense<0.000000e+00> : vector<8xf32>
    %417 = vector.multi_reduction <add>, %416, %cst_248 [1] : vector<8x8xf32> to vector<8xf32>
    %418 = vector.shape_cast %417 : vector<8xf32> to vector<8x1xf32>
    %419 = tpu.reciprocal %418 {approx = true} : vector<8x1xf32> -> vector<8x1xf32>
    %420 = vector.broadcast %419 : vector<8x1xf32> to vector<8x8xf32>
    %421 = arith.mulf %416, %420 : vector<8x8xf32>
    %cst_249 = arith.constant dense<0.000000e+00> : vector<8x8xf32>
    %422 = tpu.matmul %421, %403, %cst_249 {dimension_numbers = #tpu.dot_dimension_numbers<[1], [0], [0], [1], [0, 0, 1, 1], [], []>} : vector<8x8xf32>, vector<8x8xf32>, vector<8x8xf32> -> vector<8x8xf32>
    %423 = vector.extract_strided_slice %387 {offsets = [0, 0], sizes = [8, 32], strides = [1, 1]} : vector<32x32xf32> to vector<8x32xf32>
    %cst_250 = arith.constant dense<0.000000e+00> : vector<8x32xf32>
    %424 = tpu.matmul %422, %423, %cst_250 {dimension_numbers = #tpu.dot_dimension_numbers<[1], [0], [0], [1], [0, 0, 1, 1], [], []>} : vector<8x8xf32>, vector<8x32xf32>, vector<8x32xf32> -> vector<8x32xf32>
    %425 = vector.broadcast %383 : vector<1x32xf32> to vector<8x32xf32>
    %426 = arith.addf %425, %424 : vector<8x32xf32>
    %427 = vector.extract_strided_slice %394 {offsets = [0, 8], sizes = [8, 8], strides = [1, 1]} : vector<8x32xf32> to vector<8x8xf32>
    %428 = vector.extract_strided_slice %397 {offsets = [0, 8], sizes = [8, 8], strides = [1, 1]} : vector<8x32xf32> to vector<8x8xf32>
    %429 = vector.extract_strided_slice %400 {offsets = [0, 8], sizes = [8, 8], strides = [1, 1]} : vector<8x32xf32> to vector<8x8xf32>
    %cst_251 = arith.constant dense<0.000000e+00> : vector<8x8xf32>
    %430 = tpu.matmul %427, %428, %cst_251 {dimension_numbers = #tpu.dot_dimension_numbers<[1], [1], [0], [0], [0, 0, 1, 0], [], []>} : vector<8x8xf32>, vector<8x8xf32>, vector<8x8xf32> -> vector<8x8xf32>
    %cst_252 = arith.constant 0.353553385 : f32
    %431 = vector.broadcast %cst_252 : f32 to vector<8x8xf32>
    %432 = arith.mulf %430, %431 : vector<8x8xf32>
    %433 = tpu.iota {dimensions = array<i32: 0>} : vector<8x8xi32>
    %434 = tpu.iota {dimensions = array<i32: 1>} : vector<8x8xi32>
    %435 = arith.cmpi sle, %434, %433 : vector<8x8xi32>
    %cst_253 = arith.constant -1.000000e+09 : f32
    %436 = vector.broadcast %cst_253 : f32 to vector<8x8xf32>
    %437 = arith.select %435, %432, %436 : vector<8x8xi1>, vector<8x8xf32>
    %cst_254 = arith.constant dense<0xFF800000> : vector<8xf32>
    %438 = vector.multi_reduction <maximumf>, %437, %cst_254 [1] : vector<8x8xf32> to vector<8xf32>
    %439 = vector.shape_cast %438 : vector<8xf32> to vector<8x1xf32>
    %440 = vector.broadcast %439 : vector<8x1xf32> to vector<8x8xf32>
    %441 = arith.subf %437, %440 : vector<8x8xf32>
    %442 = math.exp %441 : vector<8x8xf32>
    %cst_255 = arith.constant dense<0.000000e+00> : vector<8xf32>
    %443 = vector.multi_reduction <add>, %442, %cst_255 [1] : vector<8x8xf32> to vector<8xf32>
    %444 = vector.shape_cast %443 : vector<8xf32> to vector<8x1xf32>
    %445 = tpu.reciprocal %444 {approx = true} : vector<8x1xf32> -> vector<8x1xf32>
    %446 = vector.broadcast %445 : vector<8x1xf32> to vector<8x8xf32>
    %447 = arith.mulf %442, %446 : vector<8x8xf32>
    %cst_256 = arith.constant dense<0.000000e+00> : vector<8x8xf32>
    %448 = tpu.matmul %447, %429, %cst_256 {dimension_numbers = #tpu.dot_dimension_numbers<[1], [0], [0], [1], [0, 0, 1, 1], [], []>} : vector<8x8xf32>, vector<8x8xf32>, vector<8x8xf32> -> vector<8x8xf32>
    %449 = vector.extract_strided_slice %387 {offsets = [8, 0], sizes = [8, 32], strides = [1, 1]} : vector<32x32xf32> to vector<8x32xf32>
    %cst_257 = arith.constant dense<0.000000e+00> : vector<8x32xf32>
    %450 = tpu.matmul %448, %449, %cst_257 {dimension_numbers = #tpu.dot_dimension_numbers<[1], [0], [0], [1], [0, 0, 1, 1], [], []>} : vector<8x8xf32>, vector<8x32xf32>, vector<8x32xf32> -> vector<8x32xf32>
    %451 = arith.addf %426, %450 : vector<8x32xf32>
    %452 = vector.extract_strided_slice %394 {offsets = [0, 16], sizes = [8, 8], strides = [1, 1]} : vector<8x32xf32> to vector<8x8xf32>
    %453 = vector.extract_strided_slice %397 {offsets = [0, 16], sizes = [8, 8], strides = [1, 1]} : vector<8x32xf32> to vector<8x8xf32>
    %454 = vector.extract_strided_slice %400 {offsets = [0, 16], sizes = [8, 8], strides = [1, 1]} : vector<8x32xf32> to vector<8x8xf32>
    %cst_258 = arith.constant dense<0.000000e+00> : vector<8x8xf32>
    %455 = tpu.matmul %452, %453, %cst_258 {dimension_numbers = #tpu.dot_dimension_numbers<[1], [1], [0], [0], [0, 0, 1, 0], [], []>} : vector<8x8xf32>, vector<8x8xf32>, vector<8x8xf32> -> vector<8x8xf32>
    %cst_259 = arith.constant 0.353553385 : f32
    %456 = vector.broadcast %cst_259 : f32 to vector<8x8xf32>
    %457 = arith.mulf %455, %456 : vector<8x8xf32>
    %458 = tpu.iota {dimensions = array<i32: 0>} : vector<8x8xi32>
    %459 = tpu.iota {dimensions = array<i32: 1>} : vector<8x8xi32>
    %460 = arith.cmpi sle, %459, %458 : vector<8x8xi32>
    %cst_260 = arith.constant -1.000000e+09 : f32
    %461 = vector.broadcast %cst_260 : f32 to vector<8x8xf32>
    %462 = arith.select %460, %457, %461 : vector<8x8xi1>, vector<8x8xf32>
    %cst_261 = arith.constant dense<0xFF800000> : vector<8xf32>
    %463 = vector.multi_reduction <maximumf>, %462, %cst_261 [1] : vector<8x8xf32> to vector<8xf32>
    %464 = vector.shape_cast %463 : vector<8xf32> to vector<8x1xf32>
    %465 = vector.broadcast %464 : vector<8x1xf32> to vector<8x8xf32>
    %466 = arith.subf %462, %465 : vector<8x8xf32>
    %467 = math.exp %466 : vector<8x8xf32>
    %cst_262 = arith.constant dense<0.000000e+00> : vector<8xf32>
    %468 = vector.multi_reduction <add>, %467, %cst_262 [1] : vector<8x8xf32> to vector<8xf32>
    %469 = vector.shape_cast %468 : vector<8xf32> to vector<8x1xf32>
    %470 = tpu.reciprocal %469 {approx = true} : vector<8x1xf32> -> vector<8x1xf32>
    %471 = vector.broadcast %470 : vector<8x1xf32> to vector<8x8xf32>
    %472 = arith.mulf %467, %471 : vector<8x8xf32>
    %cst_263 = arith.constant dense<0.000000e+00> : vector<8x8xf32>
    %473 = tpu.matmul %472, %454, %cst_263 {dimension_numbers = #tpu.dot_dimension_numbers<[1], [0], [0], [1], [0, 0, 1, 1], [], []>} : vector<8x8xf32>, vector<8x8xf32>, vector<8x8xf32> -> vector<8x8xf32>
    %474 = vector.extract_strided_slice %387 {offsets = [16, 0], sizes = [8, 32], strides = [1, 1]} : vector<32x32xf32> to vector<8x32xf32>
    %cst_264 = arith.constant dense<0.000000e+00> : vector<8x32xf32>
    %475 = tpu.matmul %473, %474, %cst_264 {dimension_numbers = #tpu.dot_dimension_numbers<[1], [0], [0], [1], [0, 0, 1, 1], [], []>} : vector<8x8xf32>, vector<8x32xf32>, vector<8x32xf32> -> vector<8x32xf32>
    %476 = arith.addf %451, %475 : vector<8x32xf32>
    %477 = vector.extract_strided_slice %394 {offsets = [0, 24], sizes = [8, 8], strides = [1, 1]} : vector<8x32xf32> to vector<8x8xf32>
    %478 = vector.extract_strided_slice %397 {offsets = [0, 24], sizes = [8, 8], strides = [1, 1]} : vector<8x32xf32> to vector<8x8xf32>
    %479 = vector.extract_strided_slice %400 {offsets = [0, 24], sizes = [8, 8], strides = [1, 1]} : vector<8x32xf32> to vector<8x8xf32>
    %cst_265 = arith.constant dense<0.000000e+00> : vector<8x8xf32>
    %480 = tpu.matmul %477, %478, %cst_265 {dimension_numbers = #tpu.dot_dimension_numbers<[1], [1], [0], [0], [0, 0, 1, 0], [], []>} : vector<8x8xf32>, vector<8x8xf32>, vector<8x8xf32> -> vector<8x8xf32>
    %cst_266 = arith.constant 0.353553385 : f32
    %481 = vector.broadcast %cst_266 : f32 to vector<8x8xf32>
    %482 = arith.mulf %480, %481 : vector<8x8xf32>
    %483 = tpu.iota {dimensions = array<i32: 0>} : vector<8x8xi32>
    %484 = tpu.iota {dimensions = array<i32: 1>} : vector<8x8xi32>
    %485 = arith.cmpi sle, %484, %483 : vector<8x8xi32>
    %cst_267 = arith.constant -1.000000e+09 : f32
    %486 = vector.broadcast %cst_267 : f32 to vector<8x8xf32>
    %487 = arith.select %485, %482, %486 : vector<8x8xi1>, vector<8x8xf32>
    %cst_268 = arith.constant dense<0xFF800000> : vector<8xf32>
    %488 = vector.multi_reduction <maximumf>, %487, %cst_268 [1] : vector<8x8xf32> to vector<8xf32>
    %489 = vector.shape_cast %488 : vector<8xf32> to vector<8x1xf32>
    %490 = vector.broadcast %489 : vector<8x1xf32> to vector<8x8xf32>
    %491 = arith.subf %487, %490 : vector<8x8xf32>
    %492 = math.exp %491 : vector<8x8xf32>
    %cst_269 = arith.constant dense<0.000000e+00> : vector<8xf32>
    %493 = vector.multi_reduction <add>, %492, %cst_269 [1] : vector<8x8xf32> to vector<8xf32>
    %494 = vector.shape_cast %493 : vector<8xf32> to vector<8x1xf32>
    %495 = tpu.reciprocal %494 {approx = true} : vector<8x1xf32> -> vector<8x1xf32>
    %496 = vector.broadcast %495 : vector<8x1xf32> to vector<8x8xf32>
    %497 = arith.mulf %492, %496 : vector<8x8xf32>
    %cst_270 = arith.constant dense<0.000000e+00> : vector<8x8xf32>
    %498 = tpu.matmul %497, %479, %cst_270 {dimension_numbers = #tpu.dot_dimension_numbers<[1], [0], [0], [1], [0, 0, 1, 1], [], []>} : vector<8x8xf32>, vector<8x8xf32>, vector<8x8xf32> -> vector<8x8xf32>
    %499 = vector.extract_strided_slice %387 {offsets = [24, 0], sizes = [8, 32], strides = [1, 1]} : vector<32x32xf32> to vector<8x32xf32>
    %cst_271 = arith.constant dense<0.000000e+00> : vector<8x32xf32>
    %500 = tpu.matmul %498, %499, %cst_271 {dimension_numbers = #tpu.dot_dimension_numbers<[1], [0], [0], [1], [0, 0, 1, 1], [], []>} : vector<8x8xf32>, vector<8x32xf32>, vector<8x32xf32> -> vector<8x32xf32>
    %501 = arith.addf %476, %500 : vector<8x32xf32>
    %502 = arith.addf %501, %365 : vector<8x32xf32>
    %cst_272 = arith.constant dense<0.000000e+00> : vector<8xf32>
    %503 = vector.multi_reduction <add>, %502, %cst_272 [1] : vector<8x32xf32> to vector<8xf32>
    %504 = vector.shape_cast %503 : vector<8xf32> to vector<8x1xf32>
    %cst_273 = arith.constant 3.200000e+01 : f32
    %505 = vector.broadcast %cst_273 : f32 to vector<8x1xf32>
    %506 = arith.divf %504, %505 : vector<8x1xf32>
    %507 = vector.broadcast %506 : vector<8x1xf32> to vector<8x32xf32>
    %508 = arith.subf %502, %507 : vector<8x32xf32>
    %509 = arith.mulf %508, %508 : vector<8x32xf32>
    %cst_274 = arith.constant dense<0.000000e+00> : vector<8xf32>
    %510 = vector.multi_reduction <add>, %509, %cst_274 [1] : vector<8x32xf32> to vector<8xf32>
    %511 = vector.shape_cast %510 : vector<8xf32> to vector<8x1xf32>
    %cst_275 = arith.constant 3.200000e+01 : f32
    %512 = vector.broadcast %cst_275 : f32 to vector<8x1xf32>
    %513 = arith.divf %511, %512 : vector<8x1xf32>
    %514 = vector.broadcast %506 : vector<8x1xf32> to vector<8x32xf32>
    %515 = arith.subf %502, %514 : vector<8x32xf32>
    %cst_276 = arith.constant 9.99999974E-6 : f32
    %516 = vector.broadcast %cst_276 : f32 to vector<8x1xf32>
    %517 = arith.addf %513, %516 : vector<8x1xf32>
    %518 = math.rsqrt %517 : vector<8x1xf32>
    %519 = vector.broadcast %518 : vector<8x1xf32> to vector<8x32xf32>
    %520 = arith.mulf %515, %519 : vector<8x32xf32>
    %521 = vector.broadcast %377 : vector<1x32xf32> to vector<8x32xf32>
    %522 = arith.mulf %520, %521 : vector<8x32xf32>
    %523 = vector.broadcast %376 : vector<1x32xf32> to vector<8x32xf32>
    %524 = arith.addf %522, %523 : vector<8x32xf32>
    %cst_277 = arith.constant dense<0.000000e+00> : vector<8x32xf32>
    %525 = tpu.matmul %524, %374, %cst_277 {dimension_numbers = #tpu.dot_dimension_numbers<[1], [0], [0], [1], [0, 0, 1, 1], [], []>} : vector<8x32xf32>, vector<32x32xf32>, vector<8x32xf32> -> vector<8x32xf32>
    %526 = vector.broadcast %370 : vector<1x32xf32> to vector<8x32xf32>
    %527 = arith.addf %525, %526 : vector<8x32xf32>
    %cst_278 = arith.constant dense<0.000000e+00> : vector<12x32xf32>
    %528 = tpu.matmul %358, %372, %cst_278 {dimension_numbers = #tpu.dot_dimension_numbers<[1], [0], [0], [1], [0, 0, 1, 1], [], []>} : vector<12x32xf32>, vector<32x32xf32>, vector<12x32xf32> -> vector<12x32xf32>
    %529 = vector.broadcast %368 : vector<1x32xf32> to vector<12x32xf32>
    %530 = arith.addf %528, %529 : vector<12x32xf32>
    %cst_279 = arith.constant dense<0.000000e+00> : vector<12x32xf32>
    %531 = tpu.matmul %358, %375, %cst_279 {dimension_numbers = #tpu.dot_dimension_numbers<[1], [0], [0], [1], [0, 0, 1, 1], [], []>} : vector<12x32xf32>, vector<32x32xf32>, vector<12x32xf32> -> vector<12x32xf32>
    %532 = vector.broadcast %371 : vector<1x32xf32> to vector<12x32xf32>
    %533 = arith.addf %531, %532 : vector<12x32xf32>
    %534 = vector.extract_strided_slice %527 {offsets = [0, 0], sizes = [8, 8], strides = [1, 1]} : vector<8x32xf32> to vector<8x8xf32>
    %535 = vector.extract_strided_slice %530 {offsets = [0, 0], sizes = [12, 8], strides = [1, 1]} : vector<12x32xf32> to vector<12x8xf32>
    %536 = vector.extract_strided_slice %533 {offsets = [0, 0], sizes = [12, 8], strides = [1, 1]} : vector<12x32xf32> to vector<12x8xf32>
    %cst_280 = arith.constant dense<0.000000e+00> : vector<8x12xf32>
    %537 = tpu.matmul %534, %535, %cst_280 {dimension_numbers = #tpu.dot_dimension_numbers<[1], [1], [0], [0], [0, 0, 1, 0], [], []>} : vector<8x8xf32>, vector<12x8xf32>, vector<8x12xf32> -> vector<8x12xf32>
    %cst_281 = arith.constant 0.353553385 : f32
    %538 = vector.broadcast %cst_281 : f32 to vector<8x12xf32>
    %539 = arith.mulf %537, %538 : vector<8x12xf32>
    %cst_282 = arith.constant dense<0xFF800000> : vector<8xf32>
    %540 = vector.multi_reduction <maximumf>, %539, %cst_282 [1] : vector<8x12xf32> to vector<8xf32>
    %541 = vector.shape_cast %540 : vector<8xf32> to vector<8x1xf32>
    %542 = vector.broadcast %541 : vector<8x1xf32> to vector<8x12xf32>
    %543 = arith.subf %539, %542 : vector<8x12xf32>
    %544 = math.exp %543 : vector<8x12xf32>
    %cst_283 = arith.constant dense<0.000000e+00> : vector<8xf32>
    %545 = vector.multi_reduction <add>, %544, %cst_283 [1] : vector<8x12xf32> to vector<8xf32>
    %546 = vector.shape_cast %545 : vector<8xf32> to vector<8x1xf32>
    %547 = tpu.reciprocal %546 {approx = true} : vector<8x1xf32> -> vector<8x1xf32>
    %548 = vector.broadcast %547 : vector<8x1xf32> to vector<8x12xf32>
    %549 = arith.mulf %544, %548 : vector<8x12xf32>
    %cst_284 = arith.constant dense<0.000000e+00> : vector<8x8xf32>
    %550 = tpu.matmul %549, %536, %cst_284 {dimension_numbers = #tpu.dot_dimension_numbers<[1], [0], [0], [1], [0, 0, 1, 1], [], []>} : vector<8x12xf32>, vector<12x8xf32>, vector<8x8xf32> -> vector<8x8xf32>
    %551 = vector.extract_strided_slice %373 {offsets = [0, 0], sizes = [8, 32], strides = [1, 1]} : vector<32x32xf32> to vector<8x32xf32>
    %cst_285 = arith.constant dense<0.000000e+00> : vector<8x32xf32>
    %552 = tpu.matmul %550, %551, %cst_285 {dimension_numbers = #tpu.dot_dimension_numbers<[1], [0], [0], [1], [0, 0, 1, 1], [], []>} : vector<8x8xf32>, vector<8x32xf32>, vector<8x32xf32> -> vector<8x32xf32>
    %553 = vector.broadcast %369 : vector<1x32xf32> to vector<8x32xf32>
    %554 = arith.addf %553, %552 : vector<8x32xf32>
    %555 = vector.extract_strided_slice %527 {offsets = [0, 8], sizes = [8, 8], strides = [1, 1]} : vector<8x32xf32> to vector<8x8xf32>
    %556 = vector.extract_strided_slice %530 {offsets = [0, 8], sizes = [12, 8], strides = [1, 1]} : vector<12x32xf32> to vector<12x8xf32>
    %557 = vector.extract_strided_slice %533 {offsets = [0, 8], sizes = [12, 8], strides = [1, 1]} : vector<12x32xf32> to vector<12x8xf32>
    %cst_286 = arith.constant dense<0.000000e+00> : vector<8x12xf32>
    %558 = tpu.matmul %555, %556, %cst_286 {dimension_numbers = #tpu.dot_dimension_numbers<[1], [1], [0], [0], [0, 0, 1, 0], [], []>} : vector<8x8xf32>, vector<12x8xf32>, vector<8x12xf32> -> vector<8x12xf32>
    %cst_287 = arith.constant 0.353553385 : f32
    %559 = vector.broadcast %cst_287 : f32 to vector<8x12xf32>
    %560 = arith.mulf %558, %559 : vector<8x12xf32>
    %cst_288 = arith.constant dense<0xFF800000> : vector<8xf32>
    %561 = vector.multi_reduction <maximumf>, %560, %cst_288 [1] : vector<8x12xf32> to vector<8xf32>
    %562 = vector.shape_cast %561 : vector<8xf32> to vector<8x1xf32>
    %563 = vector.broadcast %562 : vector<8x1xf32> to vector<8x12xf32>
    %564 = arith.subf %560, %563 : vector<8x12xf32>
    %565 = math.exp %564 : vector<8x12xf32>
    %cst_289 = arith.constant dense<0.000000e+00> : vector<8xf32>
    %566 = vector.multi_reduction <add>, %565, %cst_289 [1] : vector<8x12xf32> to vector<8xf32>
    %567 = vector.shape_cast %566 : vector<8xf32> to vector<8x1xf32>
    %568 = tpu.reciprocal %567 {approx = true} : vector<8x1xf32> -> vector<8x1xf32>
    %569 = vector.broadcast %568 : vector<8x1xf32> to vector<8x12xf32>
    %570 = arith.mulf %565, %569 : vector<8x12xf32>
    %cst_290 = arith.constant dense<0.000000e+00> : vector<8x8xf32>
    %571 = tpu.matmul %570, %557, %cst_290 {dimension_numbers = #tpu.dot_dimension_numbers<[1], [0], [0], [1], [0, 0, 1, 1], [], []>} : vector<8x12xf32>, vector<12x8xf32>, vector<8x8xf32> -> vector<8x8xf32>
    %572 = vector.extract_strided_slice %373 {offsets = [8, 0], sizes = [8, 32], strides = [1, 1]} : vector<32x32xf32> to vector<8x32xf32>
    %cst_291 = arith.constant dense<0.000000e+00> : vector<8x32xf32>
    %573 = tpu.matmul %571, %572, %cst_291 {dimension_numbers = #tpu.dot_dimension_numbers<[1], [0], [0], [1], [0, 0, 1, 1], [], []>} : vector<8x8xf32>, vector<8x32xf32>, vector<8x32xf32> -> vector<8x32xf32>
    %574 = arith.addf %554, %573 : vector<8x32xf32>
    %575 = vector.extract_strided_slice %527 {offsets = [0, 16], sizes = [8, 8], strides = [1, 1]} : vector<8x32xf32> to vector<8x8xf32>
    %576 = vector.extract_strided_slice %530 {offsets = [0, 16], sizes = [12, 8], strides = [1, 1]} : vector<12x32xf32> to vector<12x8xf32>
    %577 = vector.extract_strided_slice %533 {offsets = [0, 16], sizes = [12, 8], strides = [1, 1]} : vector<12x32xf32> to vector<12x8xf32>
    %cst_292 = arith.constant dense<0.000000e+00> : vector<8x12xf32>
    %578 = tpu.matmul %575, %576, %cst_292 {dimension_numbers = #tpu.dot_dimension_numbers<[1], [1], [0], [0], [0, 0, 1, 0], [], []>} : vector<8x8xf32>, vector<12x8xf32>, vector<8x12xf32> -> vector<8x12xf32>
    %cst_293 = arith.constant 0.353553385 : f32
    %579 = vector.broadcast %cst_293 : f32 to vector<8x12xf32>
    %580 = arith.mulf %578, %579 : vector<8x12xf32>
    %cst_294 = arith.constant dense<0xFF800000> : vector<8xf32>
    %581 = vector.multi_reduction <maximumf>, %580, %cst_294 [1] : vector<8x12xf32> to vector<8xf32>
    %582 = vector.shape_cast %581 : vector<8xf32> to vector<8x1xf32>
    %583 = vector.broadcast %582 : vector<8x1xf32> to vector<8x12xf32>
    %584 = arith.subf %580, %583 : vector<8x12xf32>
    %585 = math.exp %584 : vector<8x12xf32>
    %cst_295 = arith.constant dense<0.000000e+00> : vector<8xf32>
    %586 = vector.multi_reduction <add>, %585, %cst_295 [1] : vector<8x12xf32> to vector<8xf32>
    %587 = vector.shape_cast %586 : vector<8xf32> to vector<8x1xf32>
    %588 = tpu.reciprocal %587 {approx = true} : vector<8x1xf32> -> vector<8x1xf32>
    %589 = vector.broadcast %588 : vector<8x1xf32> to vector<8x12xf32>
    %590 = arith.mulf %585, %589 : vector<8x12xf32>
    %cst_296 = arith.constant dense<0.000000e+00> : vector<8x8xf32>
    %591 = tpu.matmul %590, %577, %cst_296 {dimension_numbers = #tpu.dot_dimension_numbers<[1], [0], [0], [1], [0, 0, 1, 1], [], []>} : vector<8x12xf32>, vector<12x8xf32>, vector<8x8xf32> -> vector<8x8xf32>
    %592 = vector.extract_strided_slice %373 {offsets = [16, 0], sizes = [8, 32], strides = [1, 1]} : vector<32x32xf32> to vector<8x32xf32>
    %cst_297 = arith.constant dense<0.000000e+00> : vector<8x32xf32>
    %593 = tpu.matmul %591, %592, %cst_297 {dimension_numbers = #tpu.dot_dimension_numbers<[1], [0], [0], [1], [0, 0, 1, 1], [], []>} : vector<8x8xf32>, vector<8x32xf32>, vector<8x32xf32> -> vector<8x32xf32>
    %594 = arith.addf %574, %593 : vector<8x32xf32>
    %595 = vector.extract_strided_slice %527 {offsets = [0, 24], sizes = [8, 8], strides = [1, 1]} : vector<8x32xf32> to vector<8x8xf32>
    %596 = vector.extract_strided_slice %530 {offsets = [0, 24], sizes = [12, 8], strides = [1, 1]} : vector<12x32xf32> to vector<12x8xf32>
    %597 = vector.extract_strided_slice %533 {offsets = [0, 24], sizes = [12, 8], strides = [1, 1]} : vector<12x32xf32> to vector<12x8xf32>
    %cst_298 = arith.constant dense<0.000000e+00> : vector<8x12xf32>
    %598 = tpu.matmul %595, %596, %cst_298 {dimension_numbers = #tpu.dot_dimension_numbers<[1], [1], [0], [0], [0, 0, 1, 0], [], []>} : vector<8x8xf32>, vector<12x8xf32>, vector<8x12xf32> -> vector<8x12xf32>
    %cst_299 = arith.constant 0.353553385 : f32
    %599 = vector.broadcast %cst_299 : f32 to vector<8x12xf32>
    %600 = arith.mulf %598, %599 : vector<8x12xf32>
    %cst_300 = arith.constant dense<0xFF800000> : vector<8xf32>
    %601 = vector.multi_reduction <maximumf>, %600, %cst_300 [1] : vector<8x12xf32> to vector<8xf32>
    %602 = vector.shape_cast %601 : vector<8xf32> to vector<8x1xf32>
    %603 = vector.broadcast %602 : vector<8x1xf32> to vector<8x12xf32>
    %604 = arith.subf %600, %603 : vector<8x12xf32>
    %605 = math.exp %604 : vector<8x12xf32>
    %cst_301 = arith.constant dense<0.000000e+00> : vector<8xf32>
    %606 = vector.multi_reduction <add>, %605, %cst_301 [1] : vector<8x12xf32> to vector<8xf32>
    %607 = vector.shape_cast %606 : vector<8xf32> to vector<8x1xf32>
    %608 = tpu.reciprocal %607 {approx = true} : vector<8x1xf32> -> vector<8x1xf32>
    %609 = vector.broadcast %608 : vector<8x1xf32> to vector<8x12xf32>
    %610 = arith.mulf %605, %609 : vector<8x12xf32>
    %cst_302 = arith.constant dense<0.000000e+00> : vector<8x8xf32>
    %611 = tpu.matmul %610, %597, %cst_302 {dimension_numbers = #tpu.dot_dimension_numbers<[1], [0], [0], [1], [0, 0, 1, 1], [], []>} : vector<8x12xf32>, vector<12x8xf32>, vector<8x8xf32> -> vector<8x8xf32>
    %612 = vector.extract_strided_slice %373 {offsets = [24, 0], sizes = [8, 32], strides = [1, 1]} : vector<32x32xf32> to vector<8x32xf32>
    %cst_303 = arith.constant dense<0.000000e+00> : vector<8x32xf32>
    %613 = tpu.matmul %611, %612, %cst_303 {dimension_numbers = #tpu.dot_dimension_numbers<[1], [0], [0], [1], [0, 0, 1, 1], [], []>} : vector<8x8xf32>, vector<8x32xf32>, vector<8x32xf32> -> vector<8x32xf32>
    %614 = arith.addf %594, %613 : vector<8x32xf32>
    %615 = arith.addf %614, %524 : vector<8x32xf32>
    %cst_304 = arith.constant dense<0.000000e+00> : vector<8xf32>
    %616 = vector.multi_reduction <add>, %615, %cst_304 [1] : vector<8x32xf32> to vector<8xf32>
    %617 = vector.shape_cast %616 : vector<8xf32> to vector<8x1xf32>
    %cst_305 = arith.constant 3.200000e+01 : f32
    %618 = vector.broadcast %cst_305 : f32 to vector<8x1xf32>
    %619 = arith.divf %617, %618 : vector<8x1xf32>
    %620 = vector.broadcast %619 : vector<8x1xf32> to vector<8x32xf32>
    %621 = arith.subf %615, %620 : vector<8x32xf32>
    %622 = arith.mulf %621, %621 : vector<8x32xf32>
    %cst_306 = arith.constant dense<0.000000e+00> : vector<8xf32>
    %623 = vector.multi_reduction <add>, %622, %cst_306 [1] : vector<8x32xf32> to vector<8xf32>
    %624 = vector.shape_cast %623 : vector<8xf32> to vector<8x1xf32>
    %cst_307 = arith.constant 3.200000e+01 : f32
    %625 = vector.broadcast %cst_307 : f32 to vector<8x1xf32>
    %626 = arith.divf %624, %625 : vector<8x1xf32>
    %627 = vector.broadcast %619 : vector<8x1xf32> to vector<8x32xf32>
    %628 = arith.subf %615, %627 : vector<8x32xf32>
    %cst_308 = arith.constant 9.99999974E-6 : f32
    %629 = vector.broadcast %cst_308 : f32 to vector<8x1xf32>
    %630 = arith.addf %626, %629 : vector<8x1xf32>
    %631 = math.rsqrt %630 : vector<8x1xf32>
    %632 = vector.broadcast %631 : vector<8x1xf32> to vector<8x32xf32>
    %633 = arith.mulf %628, %632 : vector<8x32xf32>
    %634 = vector.broadcast %379 : vector<1x32xf32> to vector<8x32xf32>
    %635 = arith.mulf %633, %634 : vector<8x32xf32>
    %636 = vector.broadcast %378 : vector<1x32xf32> to vector<8x32xf32>
    %637 = arith.addf %635, %636 : vector<8x32xf32>
    %cst_309 = arith.constant dense<0.000000e+00> : vector<8x64xf32>
    %638 = tpu.matmul %637, %390, %cst_309 {dimension_numbers = #tpu.dot_dimension_numbers<[1], [0], [0], [1], [0, 0, 1, 1], [], []>} : vector<8x32xf32>, vector<32x64xf32>, vector<8x64xf32> -> vector<8x64xf32>
    %639 = vector.broadcast %366 : vector<1x64xf32> to vector<8x64xf32>
    %640 = arith.addf %638, %639 : vector<8x64xf32>
    %cst_310 = arith.constant 0.000000e+00 : f32
    %641 = vector.broadcast %cst_310 : f32 to vector<8x64xf32>
    %642 = arith.maximumf %640, %641 : vector<8x64xf32>
    %cst_311 = arith.constant dense<0.000000e+00> : vector<8x32xf32>
    %643 = tpu.matmul %642, %391, %cst_311 {dimension_numbers = #tpu.dot_dimension_numbers<[1], [0], [0], [1], [0, 0, 1, 1], [], []>} : vector<8x64xf32>, vector<64x32xf32>, vector<8x32xf32> -> vector<8x32xf32>
    %644 = vector.broadcast %367 : vector<1x32xf32> to vector<8x32xf32>
    %645 = arith.addf %643, %644 : vector<8x32xf32>
    %646 = arith.addf %645, %637 : vector<8x32xf32>
    %cst_312 = arith.constant dense<0.000000e+00> : vector<8xf32>
    %647 = vector.multi_reduction <add>, %646, %cst_312 [1] : vector<8x32xf32> to vector<8xf32>
    %648 = vector.shape_cast %647 : vector<8xf32> to vector<8x1xf32>
    %cst_313 = arith.constant 3.200000e+01 : f32
    %649 = vector.broadcast %cst_313 : f32 to vector<8x1xf32>
    %650 = arith.divf %648, %649 : vector<8x1xf32>
    %651 = vector.broadcast %650 : vector<8x1xf32> to vector<8x32xf32>
    %652 = arith.subf %646, %651 : vector<8x32xf32>
    %653 = arith.mulf %652, %652 : vector<8x32xf32>
    %cst_314 = arith.constant dense<0.000000e+00> : vector<8xf32>
    %654 = vector.multi_reduction <add>, %653, %cst_314 [1] : vector<8x32xf32> to vector<8xf32>
    %655 = vector.shape_cast %654 : vector<8xf32> to vector<8x1xf32>
    %cst_315 = arith.constant 3.200000e+01 : f32
    %656 = vector.broadcast %cst_315 : f32 to vector<8x1xf32>
    %657 = arith.divf %655, %656 : vector<8x1xf32>
    %658 = vector.broadcast %650 : vector<8x1xf32> to vector<8x32xf32>
    %659 = arith.subf %646, %658 : vector<8x32xf32>
    %cst_316 = arith.constant 9.99999974E-6 : f32
    %660 = vector.broadcast %cst_316 : f32 to vector<8x1xf32>
    %661 = arith.addf %657, %660 : vector<8x1xf32>
    %662 = math.rsqrt %661 : vector<8x1xf32>
    %663 = vector.broadcast %662 : vector<8x1xf32> to vector<8x32xf32>
    %664 = arith.mulf %659, %663 : vector<8x32xf32>
    %665 = vector.broadcast %381 : vector<1x32xf32> to vector<8x32xf32>
    %666 = arith.mulf %664, %665 : vector<8x32xf32>
    %667 = vector.broadcast %380 : vector<1x32xf32> to vector<8x32xf32>
    %668 = arith.addf %666, %667 : vector<8x32xf32>
    %c0_317 = arith.constant 0 : index
    %c0_318 = arith.constant 0 : index
    %c0_319 = arith.constant 0 : index
    %669 = vector.load %arg49[%c0_317, %c0_318, %c0_319] : memref<1x8x32xf32, #tpu.memory_space<vmem>>, vector<1x8x32xf32>
    %670 = vector.shape_cast %669 : vector<1x8x32xf32> to vector<8x32xf32>
    %671 = vector.shape_cast %668 : vector<8x32xf32> to vector<1x8x32xf32>
    tpu.vector_store %arg49[%c0_317, %c0_318, %c0_319], %671 {strides = array<i32>} : memref<1x8x32xf32, #tpu.memory_space<vmem>>, vector<1x8x32xf32>,
    return
  }
  func.func @transform_0(%arg0: i32) -> (i32, i32, i32) {
    %c0_i32 = arith.constant 0 : i32
    %c0_i32_0 = arith.constant 0 : i32
    %c0_i32_1 = arith.constant 0 : i32
    return %arg0, %c0_i32, %c0_i32_0 : i32, i32, i32
  }
  func.func @transform_1(%arg0: i32) -> (i32, i32, i32) {
    %c0_i32 = arith.constant 0 : i32
    %c0_i32_0 = arith.constant 0 : i32
    %c0_i32_1 = arith.constant 0 : i32
    return %arg0, %c0_i32, %c0_i32_0 : i32, i32, i32
  }
  func.func @transform_2(%arg0: i32) -> (i32, i32) {
    %c0_i32 = arith.constant 0 : i32
    %c0_i32_0 = arith.constant 0 : i32
    %c0_i32_1 = arith.constant 0 : i32
    return %c0_i32, %c0_i32_0 : i32, i32
  }
  func.func @transform_3(%arg0: i32) -> (i32, i32) {
    %c0_i32 = arith.constant 0 : i32
    %c0_i32_0 = arith.constant 0 : i32
    %c0_i32_1 = arith.constant 0 : i32
    return %c0_i32, %c0_i32_0 : i32, i32
  }
  func.func @transform_4(%arg0: i32) -> (i32, i32) {
    %c0_i32 = arith.constant 0 : i32
    %c0_i32_0 = arith.constant 0 : i32
    %c0_i32_1 = arith.constant 0 : i32
    return %c0_i32, %c0_i32_0 : i32, i32
  }
  func.func @transform_5(%arg0: i32) -> (i32, i32) {
    %c0_i32 = arith.constant 0 : i32
    %c0_i32_0 = arith.constant 0 : i32
    %c0_i32_1 = arith.constant 0 : i32
    return %c0_i32, %c0_i32_0 : i32, i32
  }
  func.func @transform_6(%arg0: i32) -> (i32, i32) {
    %c0_i32 = arith.constant 0 : i32
    %c0_i32_0 = arith.constant 0 : i32
    %c0_i32_1 = arith.constant 0 : i32
    return %c0_i32, %c0_i32_0 : i32, i32
  }
  func.func @transform_7(%arg0: i32) -> (i32, i32) {
    %c0_i32 = arith.constant 0 : i32
    %c0_i32_0 = arith.constant 0 : i32
    %c0_i32_1 = arith.constant 0 : i32
    return %c0_i32, %c0_i32_0 : i32, i32
  }
  func.func @transform_8(%arg0: i32) -> (i32, i32) {
    %c0_i32 = arith.constant 0 : i32
    %c0_i32_0 = arith.constant 0 : i32
    %c0_i32_1 = arith.constant 0 : i32
    return %c0_i32, %c0_i32_0 : i32, i32
  }
  func.func @transform_9(%arg0: i32) -> (i32, i32) {
    %c0_i32 = arith.constant 0 : i32
    %c0_i32_0 = arith.constant 0 : i32
    %c0_i32_1 = arith.constant 0 : i32
    return %c0_i32, %c0_i32_0 : i32, i32
  }
  func.func @transform_10(%arg0: i32) -> (i32, i32) {
    %c0_i32 = arith.constant 0 : i32
    %c0_i32_0 = arith.constant 0 : i32
    %c0_i32_1 = arith.constant 0 : i32
    return %c0_i32, %c0_i32_0 : i32, i32
  }
  func.func @transform_11(%arg0: i32) -> (i32, i32) {
    %c0_i32 = arith.constant 0 : i32
    %c0_i32_0 = arith.constant 0 : i32
    %c0_i32_1 = arith.constant 0 : i32
    return %c0_i32, %c0_i32_0 : i32, i32
  }
  func.func @transform_12(%arg0: i32) -> (i32, i32) {
    %c0_i32 = arith.constant 0 : i32
    %c0_i32_0 = arith.constant 0 : i32
    %c0_i32_1 = arith.constant 0 : i32
    return %c0_i32, %c0_i32_0 : i32, i32
  }
  func.func @transform_13(%arg0: i32) -> (i32, i32) {
    %c0_i32 = arith.constant 0 : i32
    %c0_i32_0 = arith.constant 0 : i32
    %c0_i32_1 = arith.constant 0 : i32
    return %c0_i32, %c0_i32_0 : i32, i32
  }
  func.func @transform_14(%arg0: i32) -> (i32, i32) {
    %c0_i32 = arith.constant 0 : i32
    %c0_i32_0 = arith.constant 0 : i32
    %c0_i32_1 = arith.constant 0 : i32
    return %c0_i32, %c0_i32_0 : i32, i32
  }
  func.func @transform_15(%arg0: i32) -> (i32, i32) {
    %c0_i32 = arith.constant 0 : i32
    %c0_i32_0 = arith.constant 0 : i32
    %c0_i32_1 = arith.constant 0 : i32
    return %c0_i32, %c0_i32_0 : i32, i32
  }
  func.func @transform_16(%arg0: i32) -> (i32, i32) {
    %c0_i32 = arith.constant 0 : i32
    %c0_i32_0 = arith.constant 0 : i32
    %c0_i32_1 = arith.constant 0 : i32
    return %c0_i32, %c0_i32_0 : i32, i32
  }
  func.func @transform_17(%arg0: i32) -> (i32, i32) {
    %c0_i32 = arith.constant 0 : i32
    %c0_i32_0 = arith.constant 0 : i32
    %c0_i32_1 = arith.constant 0 : i32
    return %c0_i32, %c0_i32_0 : i32, i32
  }
  func.func @transform_18(%arg0: i32) -> (i32, i32) {
    %c0_i32 = arith.constant 0 : i32
    %c0_i32_0 = arith.constant 0 : i32
    %c0_i32_1 = arith.constant 0 : i32
    return %c0_i32, %c0_i32_0 : i32, i32
  }
  func.func @transform_19(%arg0: i32) -> (i32, i32) {
    %c0_i32 = arith.constant 0 : i32
    %c0_i32_0 = arith.constant 0 : i32
    %c0_i32_1 = arith.constant 0 : i32
    return %c0_i32, %c0_i32_0 : i32, i32
  }
  func.func @transform_20(%arg0: i32) -> (i32, i32) {
    %c0_i32 = arith.constant 0 : i32
    %c0_i32_0 = arith.constant 0 : i32
    %c0_i32_1 = arith.constant 0 : i32
    return %c0_i32, %c0_i32_0 : i32, i32
  }
  func.func @transform_21(%arg0: i32) -> (i32, i32) {
    %c0_i32 = arith.constant 0 : i32
    %c0_i32_0 = arith.constant 0 : i32
    %c0_i32_1 = arith.constant 0 : i32
    return %c0_i32, %c0_i32_0 : i32, i32
  }
  func.func @transform_22(%arg0: i32) -> (i32, i32) {
    %c0_i32 = arith.constant 0 : i32
    %c0_i32_0 = arith.constant 0 : i32
    %c0_i32_1 = arith.constant 0 : i32
    return %c0_i32, %c0_i32_0 : i32, i32
  }
  func.func @transform_23(%arg0: i32) -> (i32, i32) {
    %c0_i32 = arith.constant 0 : i32
    %c0_i32_0 = arith.constant 0 : i32
    %c0_i32_1 = arith.constant 0 : i32
    return %c0_i32, %c0_i32_0 : i32, i32
  }
  func.func @transform_24(%arg0: i32) -> (i32, i32) {
    %c0_i32 = arith.constant 0 : i32
    %c0_i32_0 = arith.constant 0 : i32
    %c0_i32_1 = arith.constant 0 : i32
    return %c0_i32, %c0_i32_0 : i32, i32
  }
  func.func @transform_25(%arg0: i32) -> (i32, i32) {
    %c0_i32 = arith.constant 0 : i32
    %c0_i32_0 = arith.constant 0 : i32
    %c0_i32_1 = arith.constant 0 : i32
    return %c0_i32, %c0_i32_0 : i32, i32
  }
  func.func @transform_26(%arg0: i32) -> (i32, i32) {
    %c0_i32 = arith.constant 0 : i32
    %c0_i32_0 = arith.constant 0 : i32
    %c0_i32_1 = arith.constant 0 : i32
    return %c0_i32, %c0_i32_0 : i32, i32
  }
  func.func @transform_27(%arg0: i32) -> (i32, i32) {
    %c0_i32 = arith.constant 0 : i32
    %c0_i32_0 = arith.constant 0 : i32
    %c0_i32_1 = arith.constant 0 : i32
    return %c0_i32, %c0_i32_0 : i32, i32
  }
  func.func @transform_28(%arg0: i32) -> (i32, i32) {
    %c0_i32 = arith.constant 0 : i32
    %c0_i32_0 = arith.constant 0 : i32
    %c0_i32_1 = arith.constant 0 : i32
    return %c0_i32, %c0_i32_0 : i32, i32
  }
  func.func @transform_29(%arg0: i32) -> (i32, i32) {
    %c0_i32 = arith.constant 0 : i32
    %c0_i32_0 = arith.constant 0 : i32
    %c0_i32_1 = arith.constant 0 : i32
    return %c0_i32, %c0_i32_0 : i32, i32
  }
  func.func @transform_30(%arg0: i32) -> (i32, i32) {
    %c0_i32 = arith.constant 0 : i32
    %c0_i32_0 = arith.constant 0 : i32
    %c0_i32_1 = arith.constant 0 : i32
    return %c0_i32, %c0_i32_0 : i32, i32
  }
  func.func @transform_31(%arg0: i32) -> (i32, i32) {
    %c0_i32 = arith.constant 0 : i32
    %c0_i32_0 = arith.constant 0 : i32
    %c0_i32_1 = arith.constant 0 : i32
    return %c0_i32, %c0_i32_0 : i32, i32
  }
  func.func @transform_32(%arg0: i32) -> (i32, i32, i32) {
    %c0_i32 = arith.constant 0 : i32
    %c0_i32_0 = arith.constant 0 : i32
    %c0_i32_1 = arith.constant 0 : i32
    %c0_i32_2 = arith.constant 0 : i32
    return %c0_i32, %c0_i32_0, %c0_i32_1 : i32, i32, i32
  }
  func.func @transform_33(%arg0: i32) -> (i32, i32, i32) {
    %c0_i32 = arith.constant 0 : i32
    %c0_i32_0 = arith.constant 0 : i32
    %c0_i32_1 = arith.constant 0 : i32
    %c0_i32_2 = arith.constant 0 : i32
    return %c0_i32, %c0_i32_0, %c0_i32_1 : i32, i32, i32
  }
  func.func @transform_34(%arg0: i32) -> (i32, i32, i32) {
    %c0_i32 = arith.constant 0 : i32
    %c0_i32_0 = arith.constant 0 : i32
    %c0_i32_1 = arith.constant 0 : i32
    %c0_i32_2 = arith.constant 0 : i32
    return %c0_i32, %c0_i32_0, %c0_i32_1 : i32, i32, i32
  }
  func.func @transform_35(%arg0: i32) -> (i32, i32, i32) {
    %c0_i32 = arith.constant 0 : i32
    %c0_i32_0 = arith.constant 0 : i32
    %c0_i32_1 = arith.constant 0 : i32
    %c0_i32_2 = arith.constant 0 : i32
    return %c0_i32, %c0_i32_0, %c0_i32_1 : i32, i32, i32
  }
  func.func @transform_36(%arg0: i32) -> (i32, i32, i32) {
    %c0_i32 = arith.constant 0 : i32
    %c0_i32_0 = arith.constant 0 : i32
    %c0_i32_1 = arith.constant 0 : i32
    %c0_i32_2 = arith.constant 0 : i32
    return %c0_i32, %c0_i32_0, %c0_i32_1 : i32, i32, i32
  }
  func.func @transform_37(%arg0: i32) -> (i32, i32, i32) {
    %c0_i32 = arith.constant 0 : i32
    %c0_i32_0 = arith.constant 0 : i32
    %c0_i32_1 = arith.constant 0 : i32
    %c0_i32_2 = arith.constant 0 : i32
    return %c0_i32, %c0_i32_0, %c0_i32_1 : i32, i32, i32
  }
  func.func @transform_38(%arg0: i32) -> (i32, i32, i32) {
    %c0_i32 = arith.constant 0 : i32
    %c0_i32_0 = arith.constant 0 : i32
    %c0_i32_1 = arith.constant 0 : i32
    %c0_i32_2 = arith.constant 0 : i32
    return %c0_i32, %c0_i32_0, %c0_i32_1 : i32, i32, i32
  }
  func.func @transform_39(%arg0: i32) -> (i32, i32, i32) {
    %c0_i32 = arith.constant 0 : i32
    %c0_i32_0 = arith.constant 0 : i32
    %c0_i32_1 = arith.constant 0 : i32
    %c0_i32_2 = arith.constant 0 : i32
    return %c0_i32, %c0_i32_0, %c0_i32_1 : i32, i32, i32
  }
  func.func @transform_40(%arg0: i32) -> (i32, i32, i32) {
    %c0_i32 = arith.constant 0 : i32
    %c0_i32_0 = arith.constant 0 : i32
    %c0_i32_1 = arith.constant 0 : i32
    %c0_i32_2 = arith.constant 0 : i32
    return %c0_i32, %c0_i32_0, %c0_i32_1 : i32, i32, i32
  }
  func.func @transform_41(%arg0: i32) -> (i32, i32, i32) {
    %c0_i32 = arith.constant 0 : i32
    %c0_i32_0 = arith.constant 0 : i32
    %c0_i32_1 = arith.constant 0 : i32
    %c0_i32_2 = arith.constant 0 : i32
    return %c0_i32, %c0_i32_0, %c0_i32_1 : i32, i32, i32
  }
  func.func @transform_42(%arg0: i32) -> (i32, i32, i32) {
    %c0_i32 = arith.constant 0 : i32
    %c0_i32_0 = arith.constant 0 : i32
    %c0_i32_1 = arith.constant 0 : i32
    %c0_i32_2 = arith.constant 0 : i32
    return %c0_i32, %c0_i32_0, %c0_i32_1 : i32, i32, i32
  }
  func.func @transform_43(%arg0: i32) -> (i32, i32, i32) {
    %c0_i32 = arith.constant 0 : i32
    %c0_i32_0 = arith.constant 0 : i32
    %c0_i32_1 = arith.constant 0 : i32
    %c0_i32_2 = arith.constant 0 : i32
    return %c0_i32, %c0_i32_0, %c0_i32_1 : i32, i32, i32
  }
  func.func @transform_44(%arg0: i32) -> (i32, i32, i32) {
    %c0_i32 = arith.constant 0 : i32
    %c0_i32_0 = arith.constant 0 : i32
    %c0_i32_1 = arith.constant 0 : i32
    %c0_i32_2 = arith.constant 0 : i32
    return %c0_i32, %c0_i32_0, %c0_i32_1 : i32, i32, i32
  }
  func.func @transform_45(%arg0: i32) -> (i32, i32, i32) {
    %c0_i32 = arith.constant 0 : i32
    %c0_i32_0 = arith.constant 0 : i32
    %c0_i32_1 = arith.constant 0 : i32
    %c0_i32_2 = arith.constant 0 : i32
    return %c0_i32, %c0_i32_0, %c0_i32_1 : i32, i32, i32
  }
  func.func @transform_46(%arg0: i32) -> (i32, i32, i32) {
    %c0_i32 = arith.constant 0 : i32
    %c0_i32_0 = arith.constant 0 : i32
    %c0_i32_1 = arith.constant 0 : i32
    %c0_i32_2 = arith.constant 0 : i32
    return %c0_i32, %c0_i32_0, %c0_i32_1 : i32, i32, i32
  }
  func.func @transform_47(%arg0: i32) -> (i32, i32, i32) {
    %c0_i32 = arith.constant 0 : i32
    %c0_i32_0 = arith.constant 0 : i32
    %c0_i32_1 = arith.constant 0 : i32
    %c0_i32_2 = arith.constant 0 : i32
    return %c0_i32, %c0_i32_0, %c0_i32_1 : i32, i32, i32
  }
  func.func @transform_48(%arg0: i32) -> (i32, i32, i32) {
    %c0_i32 = arith.constant 0 : i32
    %c0_i32_0 = arith.constant 0 : i32
    %c0_i32_1 = arith.constant 0 : i32
    return %arg0, %c0_i32, %c0_i32_0 : i32, i32, i32
  }
}

</mosaic_0001>

<bundles_post_ra>
// kernel: transformer_forward.1
= control target key start
LH: loop header
LB: loop body
LE: loop exit
PB: predicated region body
PF: predicated region fallthrough
CT: control target
= control target key end

     0   :  { %s6808_s6 = smov 1   ;;  %s6809_s10 = smov 2   ;;  %s8227_s0 = inlined_call_operand.smem [shape: u32[49], index: -1, kind: input, shape index: {}] }
   0x1   :  { %s6901_s5 = sld [smem:[%s8227_s0]]   ;;  %s6810_s14 = smov 3  }
   0x2   :  { %s6906_s9 = sld [smem:[%s8227_s0 + %s6808_s6]]   ;;  %s6811_s18 = smov 4  }
   0x3   :  { %s6911_s13 = sld [smem:[%s8227_s0 + %s6809_s10]]   ;;  %s6812_s22 = smov 5  }
   0x4   :  { %s6916_s17 = sld [smem:[%s8227_s0 + %s6810_s14]]   ;;  %s6813_s26 = smov 6  }
   0x5   :  { %s6921_s21 = sld [smem:[%s8227_s0 + %s6811_s18]]   ;;  %s6814_s30 = smov 7  }
   0x6   :  { %s6926_s25 = sld [smem:[%s8227_s0 + %s6812_s22]]   ;;  %s6815_s4 = smov 8  }
   0x7   :  { %8288 = sst [smem:[#allocation64_spill]] %s6901_s5  ;;  %s6816_s10 = smov 9  }
   0x8   :  { %8289 = sst [smem:[#allocation65_spill]] %s6906_s9  ;;  %s6817_s15 = smov 10  }
   0x9   :  { %8290 = sst [smem:[#allocation66_spill]] %s6911_s13  ;;  %s6818_s20 = smov 11  }
   0xa   :  { %8291 = sst [smem:[#allocation67_spill]] %s6916_s17  ;;  %s6820_s1 = smov 13  }
   0xb   :  { %8292 = sst [smem:[#allocation68_spill]] %s6921_s21  ;;  %s6821_s7 = smov 14  }
   0xc   :  { %8293 = sst [smem:[#allocation69_spill]] %s6926_s25  ;;  %s6823_s22 = smov 16  }
   0xd   :  { %s6931_s29 = sld [smem:[%s8227_s0 + %s6813_s26]]   ;;  %s6819_s26 = smov 12  }
   0xe   :  { %s6936_s3 = sld [smem:[%s8227_s0 + %s6814_s30]]   ;;  %s6824_s28 = smov 17  }
   0xf   :  { %s6941_s8 = sld [smem:[%s8227_s0 + %s6815_s4]]  }
  0x10   :  { %s6946_s14 = sld [smem:[%s8227_s0 + %s6816_s10]]  }
  0x11   :  { %s6951_s19 = sld [smem:[%s8227_s0 + %s6817_s15]]   ;;  %s6822_s15 = smov 15  }
  0x12   :  { %s6956_s24 = sld [smem:[%s8227_s0 + %s6818_s20]]  }
  0x13   :  { %8294 = sst [smem:[#allocation70_spill]] %s6931_s29 }
  0x14   :  { %8295 = sst [smem:[#allocation71_spill]] %s6936_s3 }
  0x15   :  { %8296 = sst [smem:[#allocation72_spill]] %s6941_s8 }
  0x16   :  { %8297 = sst [smem:[#allocation73_spill]] %s6946_s14 }
  0x17   :  { %8298 = sst [smem:[#allocation74_spill]] %s6951_s19 }
  0x18   :  { %8299 = sst [smem:[#allocation75_spill]] %s6956_s24 }
  0x19   :  { %s6961_s30 = sld [smem:[%s8227_s0 + %s6819_s26]]  }
  0x1a   :  { %s6966_s6 = sld [smem:[%s8227_s0 + %s6820_s1]]  }
  0x1b   :  { %s6971_s12 = sld [smem:[%s8227_s0 + %s6821_s7]]   ;;  %s6825_s7 = smov 18  }
  0x1c   :  { %s6976_s20 = sld [smem:[%s8227_s0 + %s6822_s15]]   ;;  %s6826_s15 = smov 19  }
  0x1d   :  { %s6981_s27 = sld [smem:[%s8227_s0 + %s6823_s22]]   ;;  %s6827_s22 = smov 20  }
  0x1e   :  { %s6986_s4 = sld [smem:[%s8227_s0 + %s6824_s28]]   ;;  %s6828_s28 = smov 21  }
  0x1f   :  { %s6991_s25 = sld [smem:[%s8227_s0 + %s6825_s7]]   ;;  %s6829_s7 = smov 22  }
  0x20   :  { %8300 = sst [smem:[#allocation76_spill]] %s6966_s6 }
  0x21   :  { %8301 = sst [smem:[#allocation77_spill]] %s6971_s12 }
  0x22   :  { %8302 = sst [smem:[#allocation78_spill]] %s6976_s20 }
  0x23   :  { %8303 = sst [smem:[#allocation79_spill]] %s6981_s27 }
  0x24   :  { %8304 = sst [smem:[#allocation80_spill]] %s6986_s4 }
  0x25   :  { %8305 = sst [smem:[#allocation81_spill]] %s6991_s25 }
  0x26   :  { %s6996_s21 = sld [smem:[%s8227_s0 + %s6826_s15]]   ;;  %s6830_s15 = smov 23  }
  0x27   :  { %s7001_s3 = sld [smem:[%s8227_s0 + %s6827_s22]]   ;;  %s6831_s22 = smov 24  }
  0x28   :  { %s7006_s24 = sld [smem:[%s8227_s0 + %s6828_s28]]   ;;  %s6832_s28 = smov 25  }
  0x29   :  { %s7011_s8 = sld [smem:[%s8227_s0 + %s6829_s7]]   ;;  %s6833_s7 = smov 26  }
  0x2a   :  { %s7016_s29 = sld [smem:[%s8227_s0 + %s6830_s15]]   ;;  %s6834_s15 = smov 27  }
  0x2b   :  { %s7021_s14 = sld [smem:[%s8227_s0 + %s6831_s22]]   ;;  %s6835_s22 = smov 28  }
  0x2c   :  { %s7026_s19 = sld [smem:[%s8227_s0 + %s6832_s28]]   ;;  %s6836_s28 = smov 29  }
  0x2d   :  { %8306 = sst [smem:[#allocation82_spill]] %s7001_s3 }
  0x2e   :  { %s7031_s13 = sld [smem:[%s8227_s0 + %s6833_s7]]   ;;  %s6837_s7 = smov 30  }
  0x2f   :  { %8307 = sst [smem:[#allocation83_spill]] %s7011_s8 }
  0x30   :  { %s7036_s17 = sld [smem:[%s8227_s0 + %s6834_s15]]   ;;  %s6838_s15 = smov 31  }
  0x31   :  { %8308 = sst [smem:[#allocation84_spill]] %s7021_s14 }
  0x32   :  { %8309 = sst [smem:[#allocation85_spill]] %s7026_s19 }
  0x33   :  { %s7041_s9 = sld [smem:[%s8227_s0 + %s6835_s22]]   ;;  %s6839_s22 = smov 32  }
  0x34   :  { %8310 = sst [smem:[#allocation86_spill]] %s7031_s13 }
  0x35   :  { %s7046_s5 = sld [smem:[%s8227_s0 + %s6836_s28]]   ;;  %s6840_s28 = smov 33  }
  0x36   :  { %8311 = sst [smem:[#allocation87_spill]] %s7036_s17 }
  0x37   :  { %s7051_s13 = sld [smem:[%s8227_s0 + %s6837_s7]]   ;;  %s6841_s7 = smov 34  }
  0x38   :  { %s7056_s14 = sld [smem:[%s8227_s0 + %s6838_s15]]   ;;  %s6842_s15 = smov 35  }
  0x39   :  { %8312 = sst [smem:[#allocation88_spill]] %s7041_s9 }
  0x3a   :  { %s7061_s9 = sld [smem:[%s8227_s0 + %s6839_s22]]   ;;  %s6843_s22 = smov 36  }
  0x3b   :  { %8313 = sst [smem:[#allocation89_spill]] %s7046_s5 }
  0x3c   :  { %s7066_s5 = sld [smem:[%s8227_s0 + %s6840_s28]]   ;;  %s6844_s28 = smov 37  }
  0x3d   :  { %8314 = sst [smem:[#allocation90_spill]] %s7051_s13 }
  0x3e   :  { %8315 = sst [smem:[#allocation91_spill]] %s7056_s14 }
  0x3f   :  { %s7071_s8 = sld [smem:[%s8227_s0 + %s6841_s7]]   ;;  %s6845_s7 = smov 38  }
  0x40   :  { %8316 = sst [smem:[#allocation92_spill]] %s7061_s9 }
  0x41   :  { %s7076_s14 = sld [smem:[%s8227_s0 + %s6842_s15]]   ;;  %s6846_s15 = smov 39  }
  0x42   :  { %8317 = sst [smem:[#allocation93_spill]] %s7066_s5 }
  0x43   :  { %s7081_s9 = sld [smem:[%s8227_s0 + %s6843_s22]]   ;;  %s6847_s22 = smov 40  }
  0x44   :  { %s7086_s3 = sld [smem:[%s8227_s0 + %s6844_s28]]   ;;  %s6848_s28 = smov 41  }
  0x45   :  { %8318 = sst [smem:[#allocation94_spill]] %s7071_s8 }
  0x46   :  { %s7091_s8 = sld [smem:[%s8227_s0 + %s6845_s7]]   ;;  %s6849_s7 = smov 42  }
  0x47   :  { %8319 = sst [smem:[#allocation95_spill]] %s7076_s14 }
  0x48   :  { %s7096_s25 = sld [smem:[%s8227_s0 + %s6846_s15]]   ;;  %s6850_s15 = smov 43  }
  0x49   :  { %8320 = sst [smem:[#allocation96_spill]] %s7081_s9 }
  0x4a   :  { %8321 = sst [smem:[#allocation97_spill]] %s7086_s3 }
  0x4b   :  { %s7101_s9 = sld [smem:[%s8227_s0 + %s6847_s22]]   ;;  %s6851_s22 = smov 44  }
  0x4c   :  { %8322 = sst [smem:[#allocation98_spill]] %s7091_s8 }
  0x4d   :  { %s7106_s3 = sld [smem:[%s8227_s0 + %s6848_s28]]   ;;  %s6852_s28 = smov 45  }
  0x4e   :  { %8323 = sst [smem:[#allocation99_spill]] %s7096_s25 }
  0x4f   :  { %s7111_s8 = sld [smem:[%s8227_s0 + %s6849_s7]]   ;;  %s6853_s7 = smov 46  }
  0x50   :  { %s7116_s25 = sld [smem:[%s8227_s0 + %s6850_s15]]   ;;  %s6854_s15 = smov 47  }
  0x51   :  { %8324 = sst [smem:[#allocation100_spill]] %s7101_s9 }
  0x52   :  { %s7121_s9 = sld [smem:[%s8227_s0 + %s6851_s22]]   ;;  %s6855_s22 = smov 48  }
  0x53   :  { %8325 = sst [smem:[#allocation101_spill]] %s7106_s3 }
  0x54   :  { %s7126_s27 = sld [smem:[%s8227_s0 + %s6852_s28]]  }
  0x55   :  { %8326 = sst [smem:[#allocation102_spill]] %s7111_s8 }
  0x56   :  { %s7131_s8 = sld [smem:[%s8227_s0 + %s6853_s7]]  }
  0x57   :  { %s7136_s12 = sld [smem:[%s8227_s0 + %s6854_s15]]  }
  0x58   :  { %8327 = sst [smem:[#allocation103_spill]] %s7121_s9 }
  0x59   :  { %s7141_s9 = sld [smem:[%s8227_s0 + %s6855_s22]]  }
  0x5c   :  { %8328 = sst [smem:[#allocation104_spill]] %s7131_s8 }
  0x5d   :  { %102 = vsyncpa [#allocation3], 0 }
  0x5e   :  { %103 = vsyncpa [#allocation6], 0 }
  0x5f   :  { %104 = vsyncpa [#allocation9], 0 }
  0x60   :  { %105 = vsyncpa [#allocation12], 0 }
  0x61   :  { %106 = vsyncpa [#allocation15], 0 }
  0x62   :  { %107 = vsyncpa [#allocation18], 0 }
  0x63   :  { %108 = vsyncpa [#allocation21], 0 }
  0x64   :  { %109 = vsyncpa [#allocation24], 0 }
  0x65   :  { %110 = vsyncpa [#allocation27], 0 }
  0x66   :  { %111 = vsyncpa [#allocation30], 0 }
  0x67   :  { %112 = vsyncpa [#allocation33], 0 }
  0x68   :  { %113 = vsyncpa [#allocation36], 0 }
  0x69   :  { %114 = vsyncpa [#allocation39], 0 }
  0x6a   :  { %115 = vsyncpa [#allocation42], 0 }
  0x6b   :  { %116 = vsyncpa [#allocation45], 0 }
  0x6c   :  { %117 = vsyncpa [#allocation4], 0 }
  0x6d   :  { %119 = vsyncpa [#allocation4 + $0x1], 0  ;;  %s7143_s28 = smov 0   ;;  %s7145_s0 = smov 0  }
  0x6e   :  { %s7147_s1 = smov 0   ;;  %s7149_s2 = smov 0  }
  0x6f LB: > { %s8329_s8 = sld [smem:[#allocation104_spill]]  ;;  %s7164_s7 = sadd.s32 4294967295, %s6806_s2   ;;  %s6798_s0 = sphi %s7145_s0, %s8399_s0   ;;  %s6794_s28 = sphi %s7143_s28, %s8398_s28   ;;  %s6806_s2 = sphi %s7149_s2, %s8395_s2   ;;  %s6802_s1 = sphi %s7147_s1, %s8397_s1  }
  0x70   : > { %s8330_s20 = sld [smem:[#allocation78_spill]]  ;;  %s5172_s10 = sadd.s32 4294967294, %s6806_s2  }
  0x71   : > { %s8331_s19 = sld [smem:[#allocation85_spill]]  ;;  %s7168_s11 = sadd.s32 1, %s6806_s2  }
  0x72   : > { %s8332_s17 = sld [smem:[#allocation87_spill]]  ;;  %s1150_s15 = sadd.s32 1, %s6802_s1 }
  0x73   : > { %s8333_s14 = sld [smem:[#allocation95_spill]]  ;;  %s1147_s16 = ssub.s32 %s6806_s2, %s7168_s11 }
  0x74   : > { %s8334_s13 = sld [smem:[#allocation90_spill]]  ;;  %p1160_p0 = scmp.ne.s32.totalorder %s6802_s1, %s6798_s0 }
  0x75   : > { %s8335_s5 = sld [smem:[#allocation93_spill]]  ;;  %p1148_p1 = scmp.eq.s32.totalorder %s1147_s16, 0 }
  0x76   : > { %s8336_s4 = sld [smem:[#allocation80_spill]]  ;;  %p1161_p2 = scmp.eq.s32.totalorder %s7164_s7, 1 }
  0x77   : > { %s8337_s3 = sld [smem:[#allocation101_spill]]  ;;  %p1166_p3 = scmp.ne.s32.totalorder %s6798_s0, %s6794_s28 }
  0x78   : > { %s8338_s6 = sld [smem:[#allocation76_spill]]  ;;  %p1167_p4 = scmp.eq.s32.totalorder %s5172_s10, 1 }
  0x79   : > { %8339 = sst [smem:[#allocation105_spill]] %s6794_s28  ;;  %p7181_p5 = por %p1161_p2, %p1160_p0 }
  0x7a   : > { %8340 = sst [smem:[#allocation106_spill]] %s6802_s1  ;;  %p7185_p6 = por %p1167_p4, %p1166_p3 }
  0x7b   : > { %8341 = sst [smem:[#allocation107_spill]] %s6806_s2  ;;  %p5173_p7 = scmp.ge.s32.totalorder %s6806_s2, 1 }
  0x7c   : > { %8342 = sst [smem:[#allocation108_spill]] %s7168_s11  ;;  %p1174_p8 = scmp.lt.s32.totalorder %s6806_s2, 3 }
  0x7d   : > { %s7179_s18 = scalar_select %p1148_p1, %s6802_s1, %s1150_s15  }
  0x7e   : > { %s8344_s22 = scalar_select %p7181_p5, 1, 0 }
  0x7f   : > { %8343 = sst [smem:[#allocation109_spill]] %s7179_s18  ;;  %p7191_p9 = pnand %p5173_p7, %p1174_p8 }
  0x80   : > { %8345 = sst [smem:[#allocation110_spill]] %s8344_s22  ;;  %p5538_p10 = scmp.eq.s32.totalorder (!%p7191_p9), %s7164_s7, 0 }
  0x81   : > { %s8346_s23 = scalar_select %p7185_p6, 1, 0 }
  0x82   : > { %1178 = sbr.rel (%p7191_p9) target bundleno = 515 (0x203), region = 12  ;;  %s1229_s10 = sshll.u32 (!%p7191_p9), %s8338_s6, 4  ;;  %s1230_s10 = int_to_ptr.hbm [resolvable:$true] %s1229_s10 }
  0x83   : > { %8347 = sst [smem:[#allocation111_spill]] %s8346_s23  ;;  %s6856_s15 = smov (!%p7191_p9), [#allocation5]  }
  0x84   : > { %s1231_s16 = sshll.u32 (!%p7191_p9), %s6856_s15, 4  ;;  %s1256_s18 = sshll.u32 (!%p7191_p9), %s8330_s20, 4  ;;  %s1232_s16 = int_to_ptr.vmem [resolvable:$true] %s1231_s16  ;;  %s7200_s18 = int_to_ptr.hbm [resolvable:$true] %s1256_s18 }
  0x85   : > { %s5872_s1 = sshra.s32 (!%p7191_p9), %s1230_s10, 4  ;;  %s5878_s23 = scalar_lea.hbm (!%p7191_p9), %s8338_s6, 32  ;;  %s5873_s1 = int_to_ptr.hbm [resolvable:$true] %s5872_s1 }
  0x86   : > { %s5874_s11 = scalar_lea.hbm (!%p7191_p9), %s5873_s1, 32  ;;  %p5879_p0 = scmp.lt.s32.totalorder (!%p7191_p9), %s5873_s1, %s8338_s6 }
  0x87   : > { %p5875_p11 = scmp.ne.s32.totalorder %s5873_s1, %s5874_s11  ;;  %p5880_p1 = scmp.lt.s32.totalorder %s5878_s23, %s5874_s11 }
  0x89   : > { %p5876_p12 = pnand %p5875_p11, %p5538_p10  ;;  %p5881_p2 = por %p5880_p1, %p5879_p0 }
  0x8b   : > { %p5877_p13 = pneg %p5876_p12 }
  0x8d   : > { %p5882_p3 = pnand %p5881_p2, %p5877_p13 }
  0x8f   : > { %5885 = shalt.err (!%p5882_p3)
}
  0x90   : > { %s8258_s28 = smov 128   ;;  %s8260_s15 = smov 8  }
  0x91   : > { %5419 = dma.hbm_to_vmem [thread:$0]  (%p5538_p10), %s1230_s10, 512, %s1232_s16, [#allocation6], %s8258_s28, %s8258_s28, %s8260_s15  }
  0x92   : > { %s1280_s2 = sshll.u32 %s8336_s4, 4  ;;  %s6859_s22 = smov [#allocation8]   ;;  %s7212_s2 = int_to_ptr.hbm [resolvable:$true] %s1280_s2 }
  0x93   : > { %s1258_s1 = sshll.u32 %s6859_s22, 4  ;;  %s5900_s11 = sshra.s32 %s7200_s18, 4  ;;  %s1259_s1 = int_to_ptr.vmem [resolvable:$true] %s1258_s1  ;;  %s5901_s11 = int_to_ptr.hbm [resolvable:$true] %s5900_s11 }
  0x94   : > { %s5902_s23 = scalar_lea.hbm %s5901_s11, 1  ;;  %s5906_s6 = scalar_lea.hbm %s8330_s20, 1 }
  0x95   : > { %p5903_p4 = scmp.ne.s32.totalorder %s5901_s11, %s5902_s23  ;;  %p5907_p11 = scmp.lt.s32.totalorder %s5901_s11, %s8330_s20 }
  0x96   : > { %p5908_p12 = scmp.lt.s32.totalorder %s5906_s6, %s5902_s23 }
  0x97   : > { %p5904_p7 = pnand %p5903_p4, %p5538_p10 }
  0x98   : > { %p5909_p13 = por %p5908_p12, %p5907_p11 }
  0x99   : > { %p5905_p8 = pneg %p5904_p7 }
  0x9b   : > { %p5910_p0 = pnand %p5909_p13, %p5905_p8 }
  0x9d   : > { %5913 = shalt.err (!%p5910_p0)
}
  0x9e   : > { %5423 = dma.hbm_to_vmem [thread:$0]  (%p5538_p10), %s7200_s18, 16, %s1259_s1, [#allocation9]  }
  0x9f   : > { %s6860_s22 = smov [#allocation11]   ;;  %s1304_s16 = sshll.u32 %s6996_s21, 4  ;;  %s7223_s16 = int_to_ptr.hbm [resolvable:$true] %s1304_s16 }
  0xa0   : > { %s1282_s10 = sshll.u32 %s6860_s22, 4  ;;  %s5928_s11 = sshra.s32 %s7212_s2, 4  ;;  %s1283_s10 = int_to_ptr.vmem [resolvable:$true] %s1282_s10  ;;  %s5929_s11 = int_to_ptr.hbm [resolvable:$true] %s5928_s11 }
  0xa1   : > { %s5930_s6 = scalar_lea.hbm %s5929_s11, 1  ;;  %s5934_s23 = scalar_lea.hbm %s8336_s4, 1 }
  0xa2   : > { %p5931_p1 = scmp.ne.s32.totalorder %s5929_s11, %s5930_s6  ;;  %p5935_p4 = scmp.lt.s32.totalorder %s5929_s11, %s8336_s4 }
  0xa3   : > { %p5936_p7 = scmp.lt.s32.totalorder %s5934_s23, %s5930_s6 }
  0xa4   : > { %p5932_p2 = pnand %p5931_p1, %p5538_p10 }
  0xa5   : > { %p5937_p8 = por %p5936_p7, %p5935_p4 }
  0xa6   : > { %p5933_p3 = pneg %p5932_p2 }
  0xa8   : > { %p5938_p11 = pnand %p5937_p8, %p5933_p3 }
  0xaa   : > { %5941 = shalt.err (!%p5938_p11)
}
  0xab   : > { %5427 = dma.hbm_to_vmem [thread:$0]  (%p5538_p10), %s7212_s2, 16, %s1283_s10, [#allocation12]  }
  0xac   : > { %s1328_s18 = sshll.u32 %s7006_s24, 4  ;;  %s6861_s1 = smov [#allocation14]   ;;  %s7234_s18 = int_to_ptr.hbm [resolvable:$true] %s1328_s18 }
  0xad   : > { %s1306_s22 = sshll.u32 %s6861_s1, 4  ;;  %s5956_s11 = sshra.s32 %s7223_s16, 4  ;;  %s1307_s22 = int_to_ptr.vmem [resolvable:$true] %s1306_s22  ;;  %s5957_s11 = int_to_ptr.hbm [resolvable:$true] %s5956_s11 }
  0xae   : > { %s5958_s6 = scalar_lea.hbm %s5957_s11, 1  ;;  %s5962_s23 = scalar_lea.hbm %s6996_s21, 1 }
  0xaf   : > { %p5959_p12 = scmp.ne.s32.totalorder %s5957_s11, %s5958_s6  ;;  %p5963_p1 = scmp.lt.s32.totalorder %s5957_s11, %s6996_s21 }
  0xb0   : > { %p5964_p2 = scmp.lt.s32.totalorder %s5962_s23, %s5958_s6 }
  0xb1   : > { %p5960_p13 = pnand %p5959_p12, %p5538_p10 }
  0xb2   : > { %p5965_p3 = por %p5964_p2, %p5963_p1 }
  0xb3   : > { %p5961_p0 = pneg %p5960_p13 }
  0xb5   : > { %p5966_p4 = pnand %p5965_p3, %p5961_p0 }
  0xb7   : > { %5969 = shalt.err (!%p5966_p4)
}
  0xb8   : > { %5431 = dma.hbm_to_vmem [thread:$0]  (%p5538_p10), %s7223_s16, 16, %s1307_s22, [#allocation15]  }
  0xb9   : > { %s6862_s2 = smov [#allocation17]   ;;  %s1352_s1 = sshll.u32 %s7016_s29, 4  ;;  %s7245_s1 = int_to_ptr.hbm [resolvable:$true] %s1352_s1 }
  0xba   : > { %s1330_s10 = sshll.u32 %s6862_s2, 4  ;;  %s5984_s11 = sshra.s32 %s7234_s18, 4  ;;  %s1331_s10 = int_to_ptr.vmem [resolvable:$true] %s1330_s10  ;;  %s5985_s11 = int_to_ptr.hbm [resolvable:$true] %s5984_s11 }
  0xbb   : > { %s5986_s6 = scalar_lea.hbm %s5985_s11, 1  ;;  %s5990_s23 = scalar_lea.hbm %s7006_s24, 1 }
  0xbc   : > { %p5987_p7 = scmp.ne.s32.totalorder %s5985_s11, %s5986_s6  ;;  %p5991_p12 = scmp.lt.s32.totalorder %s5985_s11, %s7006_s24 }
  0xbd   : > { %p5992_p13 = scmp.lt.s32.totalorder %s5990_s23, %s5986_s6 }
  0xbe   : > { %p5988_p8 = pnand %p5987_p7, %p5538_p10 }
  0xbf   : > { %p5993_p0 = por %p5992_p13, %p5991_p12 }
  0xc0   : > { %p5989_p11 = pneg %p5988_p8 }
  0xc2   : > { %p5994_p1 = pnand %p5993_p0, %p5989_p11 }
  0xc4   : > { %5997 = shalt.err (!%p5994_p1)
}
  0xc5   : > { %5435 = dma.hbm_to_vmem [thread:$0]  (%p5538_p10), %s7234_s18, 16, %s1331_s10, [#allocation18]  }
  0xc6   : > { %s1377_s16 = sshll.u32 %s8331_s19, 4  ;;  %s6863_s22 = smov [#allocation20]   ;;  %s7256_s16 = int_to_ptr.hbm [resolvable:$true] %s1377_s16 }
  0xc7   : > { %s1354_s2 = sshll.u32 %s6863_s22, 4  ;;  %s6012_s11 = sshra.s32 %s7245_s1, 4  ;;  %s1355_s2 = int_to_ptr.vmem [resolvable:$true] %s1354_s2  ;;  %s6013_s11 = int_to_ptr.hbm [resolvable:$true] %s6012_s11 }
  0xc8   : > { %s6014_s6 = scalar_lea.hbm %s6013_s11, 1  ;;  %s6018_s23 = scalar_lea.hbm %s7016_s29, 1 }
  0xc9   : > { %p6015_p2 = scmp.ne.s32.totalorder %s6013_s11, %s6014_s6  ;;  %p6019_p7 = scmp.lt.s32.totalorder %s6013_s11, %s7016_s29 }
  0xca   : > { %p6020_p8 = scmp.lt.s32.totalorder %s6018_s23, %s6014_s6 }
  0xcb   : > { %p6016_p3 = pnand %p6015_p2, %p5538_p10 }
  0xcc   : > { %p6021_p11 = por %p6020_p8, %p6019_p7 }
  0xcd   : > { %p6017_p4 = pneg %p6016_p3 }
  0xcf   : > { %p6022_p12 = pnand %p6021_p11, %p6017_p4 }
  0xd1   : > { %6025 = shalt.err (!%p6022_p12)
}
  0xd2   : > { %5439 = dma.hbm_to_vmem [thread:$0]  (%p5538_p10), %s7245_s1, 16, %s1355_s2, [#allocation21]  }
  0xd3   : > { %s6864_s18 = smov [#allocation23]   ;;  %s1405_s22 = sshll.u32 %s8332_s17, 4  ;;  %s7267_s22 = int_to_ptr.hbm [resolvable:$true] %s1405_s22 }
  0xd4   : > { %s1379_s10 = sshll.u32 %s6864_s18, 4  ;;  %s6040_s11 = sshra.s32 %s7256_s16, 4  ;;  %s1380_s10 = int_to_ptr.vmem [resolvable:$true] %s1379_s10  ;;  %s6041_s11 = int_to_ptr.hbm [resolvable:$true] %s6040_s11 }
  0xd5   : > { %s6042_s6 = scalar_lea.hbm %s6041_s11, 32  ;;  %s6046_s23 = scalar_lea.hbm %s8331_s19, 32 }
  0xd6   : > { %p6043_p13 = scmp.ne.s32.totalorder %s6041_s11, %s6042_s6  ;;  %p6047_p2 = scmp.lt.s32.totalorder %s6041_s11, %s8331_s19 }
  0xd7   : > { %p6048_p3 = scmp.lt.s32.totalorder %s6046_s23, %s6042_s6 }
  0xd8   : > { %p6044_p0 = pnand %p6043_p13, %p5538_p10 }
  0xd9   : > { %p6049_p4 = por %p6048_p3, %p6047_p2 }
  0xda   : > { %p6045_p1 = pneg %p6044_p0 }
  0xdc   : > { %p6050_p7 = pnand %p6049_p4, %p6045_p1 }
  0xde   : > { %6053 = shalt.err (!%p6050_p7)
}
  0xdf   : > { %5443 = dma.hbm_to_vmem [thread:$0]  (%p5538_p10), %s7256_s16, 512, %s1380_s10, [#allocation24], %s8258_s28, %s8258_s28, %s8260_s15  }
  0xe0   : > { %s1437_s1 = sshll.u32 %s8334_s13, 4  ;;  %s6865_s2 = smov [#allocation26]   ;;  %s7281_s1 = int_to_ptr.hbm [resolvable:$true] %s1437_s1 }
  0xe1   : > { %s1407_s18 = sshll.u32 %s6865_s2, 4  ;;  %s6068_s11 = sshra.s32 %s7267_s22, 4  ;;  %s1408_s18 = int_to_ptr.vmem [resolvable:$true] %s1407_s18  ;;  %s6069_s11 = int_to_ptr.hbm [resolvable:$true] %s6068_s11 }
  0xe2   : > { %s6070_s6 = scalar_lea.hbm %s6069_s11, 32  ;;  %s6074_s23 = scalar_lea.hbm %s8332_s17, 32 }
  0xe3   : > { %p6071_p8 = scmp.ne.s32.totalorder %s6069_s11, %s6070_s6  ;;  %p6075_p13 = scmp.lt.s32.totalorder %s6069_s11, %s8332_s17 }
  0xe4   : > { %p6076_p0 = scmp.lt.s32.totalorder %s6074_s23, %s6070_s6 }
  0xe5   : > { %p6072_p11 = pnand %p6071_p8, %p5538_p10 }
  0xe6   : > { %p6077_p1 = por %p6076_p0, %p6075_p13 }
  0xe7   : > { %p6073_p12 = pneg %p6072_p11 }
  0xe9   : > { %p6078_p2 = pnand %p6077_p1, %p6073_p12 }
  0xeb   : > { %6081 = shalt.err (!%p6078_p2)
}
  0xec   : > { %5447 = dma.hbm_to_vmem [thread:$0]  (%p5538_p10), %s7267_s22, 512, %s1408_s18, [#allocation27], %s8258_s28, %s8258_s28, %s8260_s15  }
  0xed   : > { %s6866_s16 = smov [#allocation29]   ;;  %s1463_s2 = sshll.u32 %s8335_s5, 4  ;;  %s7295_s2 = int_to_ptr.hbm [resolvable:$true] %s1463_s2 }
  0xee   : > { %s1439_s10 = sshll.u32 %s6866_s16, 4  ;;  %s6096_s11 = sshra.s32 %s7281_s1, 4  ;;  %s1440_s10 = int_to_ptr.vmem [resolvable:$true] %s1439_s10  ;;  %s6097_s11 = int_to_ptr.hbm [resolvable:$true] %s6096_s11 }
  0xef   : > { %s6098_s6 = scalar_lea.hbm %s6097_s11, 1  ;;  %s6102_s23 = scalar_lea.hbm %s8334_s13, 1 }
  0xf0   : > { %p6099_p3 = scmp.ne.s32.totalorder %s6097_s11, %s6098_s6  ;;  %p6103_p8 = scmp.lt.s32.totalorder %s6097_s11, %s8334_s13 }
  0xf1   : > { %p6104_p11 = scmp.lt.s32.totalorder %s6102_s23, %s6098_s6 }
  0xf2   : > { %p6100_p4 = pnand %p6099_p3, %p5538_p10 }
  0xf3   : > { %p6105_p12 = por %p6104_p11, %p6103_p8 }
  0xf4   : > { %p6101_p7 = pneg %p6100_p4 }
  0xf6   : > { %p6106_p13 = pnand %p6105_p12, %p6101_p7 }
  0xf8   : > { %6109 = shalt.err (!%p6106_p13)
}
  0xf9   : > { %5451 = dma.hbm_to_vmem [thread:$0]  (%p5538_p10), %s7281_s1, 16, %s1440_s10, [#allocation30]  }
  0xfa   : > { %s6867_s22 = smov [#allocation32]   ;;  %s1491_s16 = sshll.u32 %s8333_s14, 4  ;;  %s1492_s16 = int_to_ptr.hbm [resolvable:$true] %s1491_s16 }
  0xfb   : > { %s1465_s18 = sshll.u32 %s6867_s22, 4  ;;  %s6124_s28 = sshra.s32 %s7295_s2, 4  ;;  %s1466_s18 = int_to_ptr.vmem [resolvable:$true] %s1465_s18  ;;  %s6125_s28 = int_to_ptr.hbm [resolvable:$true] %s6124_s28 }
  0xfc   : > { %s6126_s11 = scalar_lea.hbm %s6125_s28, 2  ;;  %s6130_s6 = scalar_lea.hbm %s8335_s5, 2 }
  0xfd   : > { %p6127_p0 = scmp.ne.s32.totalorder %s6125_s28, %s6126_s11  ;;  %p6131_p3 = scmp.lt.s32.totalorder %s6125_s28, %s8335_s5 }
  0xfe   : > { %p6132_p4 = scmp.lt.s32.totalorder %s6130_s6, %s6126_s11 }
  0xff   : > { %p6128_p1 = pnand %p6127_p0, %p5538_p10 }
 0x100   : > { %p6133_p7 = por %p6132_p4, %p6131_p3 }
 0x101   : > { %p6129_p2 = pneg %p6128_p1 }
 0x103   : > { %p6134_p8 = pnand %p6133_p7, %p6129_p2 }
 0x105   : > { %6137 = shalt.err (!%p6134_p8)
}
 0x106   : > { %s8264_s23 = smov 16   ;;  %s8266_s1 = smov 1  }
 0x107   : > { %5455 = dma.hbm_to_vmem [thread:$0]  (%p5538_p10), %s7295_s2, 32, %s1466_s18, [#allocation33], %s8264_s23, %s8264_s23, %s8266_s1  }
 0x108   : > { %s6870_s10 = smov [#allocation35]   ;;  %s1531_s22 = sshll.u32 %s8337_s3, 4  ;;  %s7318_s22 = int_to_ptr.hbm [resolvable:$true] %s1531_s22 }
 0x109   : > { %s1493_s28 = sshll.u32 %s6870_s10, 4  ;;  %s6152_s11 = sshra.s32 %s1492_s16, 4  ;;  %s1494_s28 = int_to_ptr.vmem [resolvable:$true] %s1493_s28  ;;  %s6153_s11 = int_to_ptr.hbm [resolvable:$true] %s6152_s11 }
 0x10a   : > { %s6154_s6 = scalar_lea.hbm %s6153_s11, 2  ;;  %s6158_s15 = scalar_lea.hbm %s8333_s14, 2 }
 0x10b   : > { %p6155_p11 = scmp.ne.s32.totalorder %s6153_s11, %s6154_s6  ;;  %p6159_p0 = scmp.lt.s32.totalorder %s6153_s11, %s8333_s14 }
 0x10c   : > { %p6160_p1 = scmp.lt.s32.totalorder %s6158_s15, %s6154_s6 }
 0x10d   : > { %p6156_p12 = pnand %p6155_p11, %p5538_p10 }
 0x10e   : > { %p6161_p2 = por %p6160_p1, %p6159_p0 }
 0x10f   : > { %p6157_p13 = pneg %p6156_p12 }
 0x111   : > { %p6162_p3 = pnand %p6161_p2, %p6157_p13 }
 0x113   : > { %6165 = shalt.err (!%p6162_p3)
}
 0x114   : > { %5459 = dma.hbm_to_vmem [thread:$0]  (%p5538_p10), %s1492_s16, 32, %s1494_s28, [#allocation36], %s8264_s23, %s8264_s23, %s8266_s1  }
 0x115   : > { %s1559_s2 = sshll.u32 %s7116_s25, 4  ;;  %s6871_s18 = smov [#allocation38]   ;;  %s7330_s2 = int_to_ptr.hbm [resolvable:$true] %s1559_s2 }
 0x116   : > { %s1533_s10 = sshll.u32 %s6871_s18, 4  ;;  %s6180_s15 = sshra.s32 %s7318_s22, 4  ;;  %s1534_s10 = int_to_ptr.vmem [resolvable:$true] %s1533_s10  ;;  %s6181_s15 = int_to_ptr.hbm [resolvable:$true] %s6180_s15 }
 0x117   : > { %s6182_s11 = scalar_lea.hbm %s6181_s15, 2  ;;  %s6186_s6 = scalar_lea.hbm %s8337_s3, 2 }
 0x118   : > { %p6183_p4 = scmp.ne.s32.totalorder %s6181_s15, %s6182_s11  ;;  %p6187_p11 = scmp.lt.s32.totalorder %s6181_s15, %s8337_s3 }
 0x119   : > { %p6188_p12 = scmp.lt.s32.totalorder %s6186_s6, %s6182_s11 }
 0x11a   : > { %p6184_p7 = pnand %p6183_p4, %p5538_p10 }
 0x11b   : > { %p6189_p13 = por %p6188_p12, %p6187_p11 }
 0x11c   : > { %p6185_p8 = pneg %p6184_p7 }
 0x11e   : > { %p6190_p0 = pnand %p6189_p13, %p6185_p8 }
 0x120   : > { %6193 = shalt.err (!%p6190_p0)
}
 0x121   : > { %5463 = dma.hbm_to_vmem [thread:$0]  (%p5538_p10), %s7318_s22, 32, %s1534_s10, [#allocation39], %s8264_s23, %s8264_s23, %s8266_s1  }
 0x122   : > { %s6872_s16 = smov [#allocation41]   ;;  %s1587_s18 = sshll.u32 %s7126_s27, 4  ;;  %s7344_s18 = int_to_ptr.hbm [resolvable:$true] %s1587_s18 }
 0x123   : > { %s1561_s28 = sshll.u32 %s6872_s16, 4  ;;  %s6208_s15 = sshra.s32 %s7330_s2, 4  ;;  %s1562_s28 = int_to_ptr.vmem [resolvable:$true] %s1561_s28  ;;  %s6209_s15 = int_to_ptr.hbm [resolvable:$true] %s6208_s15 }
 0x124   : > { %s6210_s11 = scalar_lea.hbm %s6209_s15, 2  ;;  %s6214_s6 = scalar_lea.hbm %s7116_s25, 2 }
 0x125   : > { %p6211_p1 = scmp.ne.s32.totalorder %s6209_s15, %s6210_s11  ;;  %p6215_p4 = scmp.lt.s32.totalorder %s6209_s15, %s7116_s25 }
 0x126   : > { %p6216_p7 = scmp.lt.s32.totalorder %s6214_s6, %s6210_s11 }
 0x127   : > { %p6212_p2 = pnand %p6211_p1, %p5538_p10 }
 0x128   : > { %p6217_p8 = por %p6216_p7, %p6215_p4 }
 0x129   : > { %p6213_p3 = pneg %p6212_p2 }
 0x12b   : > { %p6218_p11 = pnand %p6217_p8, %p6213_p3 }
 0x12d   : > { %6221 = shalt.err (!%p6218_p11)
}
 0x12e   : > { %5467 = dma.hbm_to_vmem [thread:$0]  (%p5538_p10), %s7330_s2, 32, %s1562_s28, [#allocation42], %s8264_s23, %s8264_s23, %s8266_s1  }
 0x12f   : > { %s6873_s22 = smov [#allocation44]   ;;  %s1215_s16 = sshll.u32 %s6961_s30, 4  ;;  %s7358_s16 = int_to_ptr.hbm [resolvable:$true] %s1215_s16 }
 0x130   : > { %s1589_s10 = sshll.u32 %s6873_s22, 4  ;;  %s6236_s15 = sshra.s32 %s7344_s18, 4  ;;  %s1590_s10 = int_to_ptr.vmem [resolvable:$true] %s1589_s10  ;;  %s6237_s15 = int_to_ptr.hbm [resolvable:$true] %s6236_s15 }
 0x131   : > { %s6238_s11 = scalar_lea.hbm %s6237_s15, 2  ;;  %s6242_s6 = scalar_lea.hbm %s7126_s27, 2 }
 0x132   : > { %p6239_p12 = scmp.ne.s32.totalorder %s6237_s15, %s6238_s11  ;;  %p6243_p1 = scmp.lt.s32.totalorder %s6237_s15, %s7126_s27 }
 0x133   : > { %p6244_p2 = scmp.lt.s32.totalorder %s6242_s6, %s6238_s11 }
 0x134   : > { %p6240_p13 = pnand %p6239_p12, %p5538_p10 }
 0x135   : > { %p6245_p3 = por %p6244_p2, %p6243_p1 }
 0x136   : > { %p6241_p0 = pneg %p6240_p13 }
 0x138   : > { %p6246_p4 = pnand %p6245_p3, %p6241_p0 }
 0x13a   : > { %6249 = shalt.err (!%p6246_p4)
}
 0x13b   : > { %s8349_s2 = sld [smem:[#allocation77_spill]]  ;;  %s6874_s3 = smov [#allocation2]  }
 0x13c   : > { %5471 = dma.hbm_to_vmem [thread:$0]  (%p5538_p10), %s7344_s18, 32, %s1590_s10, [#allocation45], %s8264_s23, %s8264_s23, %s8266_s1  }
 0x13d   : > { %s1217_s4 = sshll.u32 %s6874_s3, 4  ;;  %s6264_s15 = sshra.s32 %s7358_s16, 4  ;;  %s1218_s4 = int_to_ptr.vmem [resolvable:$true] %s1217_s4  ;;  %s6265_s15 = int_to_ptr.hbm [resolvable:$true] %s6264_s15 }
 0x13e   : > { %s6266_s11 = scalar_lea.hbm %s6265_s15, 32  ;;  %s6270_s6 = scalar_lea.hbm %s6961_s30, 32 }
 0x13f   : > { %p6267_p7 = scmp.ne.s32.totalorder %s6265_s15, %s6266_s11  ;;  %p6271_p12 = scmp.lt.s32.totalorder %s6265_s15, %s6961_s30 }
 0x140   : > { %p6272_p13 = scmp.lt.s32.totalorder %s6270_s6, %s6266_s11 }
 0x141   : > { %s8350_s22 = smov %s8349_s2  ;;  %s1244_s28 = sshll.u32 %s8349_s2, 4  ;;  %s7372_s28 = int_to_ptr.hbm [resolvable:$true] %s1244_s28 }
 0x142   : > { %p6268_p8 = pnand %p6267_p7, %p5538_p10  ;;  %p6273_p0 = por %p6272_p13, %p6271_p12 }
 0x144   : > { %p6269_p11 = pneg %p6268_p8 }
 0x146   : > { %p6274_p1 = pnand %p6273_p0, %p6269_p11 }
 0x148   : > { %6277 = shalt.err (!%p6274_p1)
}
 0x149   : > { %s8351_s18 = smov 8   ;;  %s8352_s3 = smov 128  }
 0x14a   : > { %s8353_s10 = sld [smem:[#allocation79_spill]]  ;;  %s6875_s2 = smov [#allocation7]  }
 0x14b   : > { %5417 = dma.hbm_to_vmem [thread:$0]  (%p5538_p10), %s7358_s16, 512, %s1218_s4, [#allocation3], %s8352_s3, %s8352_s3, %s8351_s18  }
 0x14c   : > { %s1246_s23 = sshll.u32 %s6875_s2, 4  ;;  %s6292_s15 = sshra.s32 %s7372_s28, 4  ;;  %s1247_s23 = int_to_ptr.vmem [resolvable:$true] %s1246_s23  ;;  %s6293_s15 = int_to_ptr.hbm [resolvable:$true] %s6292_s15 }
 0x14d   : > { %s6294_s11 = scalar_lea.hbm %s6293_s15, 1  ;;  %s6298_s6 = scalar_lea.hbm %s8350_s22, 1 }
 0x14e   : > { %p6295_p2 = scmp.ne.s32.totalorder %s6293_s15, %s6294_s11  ;;  %p6299_p7 = scmp.lt.s32.totalorder %s6293_s15, %s8350_s22 }
 0x14f   : > { %p6300_p8 = scmp.lt.s32.totalorder %s6298_s6, %s6294_s11 }
 0x150   : > { %s1268_s1 = sshll.u32 %s8353_s10, 4  ;;  %p6296_p3 = pnand %p6295_p2, %p5538_p10  ;;  %s7386_s1 = int_to_ptr.hbm [resolvable:$true] %s1268_s1 }
 0x151   : > { %p6301_p11 = por %p6300_p8, %p6299_p7 }
 0x152   : > { %p6297_p4 = pneg %p6296_p3 }
 0x154   : > { %p6302_p12 = pnand %p6301_p11, %p6297_p4 }
 0x156   : > { %6305 = shalt.err (!%p6302_p12)
}
 0x157   : > { %s8354_s4 = sld [smem:[#allocation81_spill]]  ;;  %s6876_s2 = smov [#allocation10]  }
 0x158   : > { %5421 = dma.hbm_to_vmem [thread:$0]  (%p5538_p10), %s7372_s28, 16, %s1247_s23, [#allocation6]  }
 0x159   : > { %s1270_s5 = sshll.u32 %s6876_s2, 4  ;;  %s6320_s15 = sshra.s32 %s7386_s1, 4  ;;  %s1271_s5 = int_to_ptr.vmem [resolvable:$true] %s1270_s5  ;;  %s6321_s15 = int_to_ptr.hbm [resolvable:$true] %s6320_s15 }
 0x15a   : > { %s6322_s11 = scalar_lea.hbm %s6321_s15, 1  ;;  %s6326_s6 = scalar_lea.hbm %s8353_s10, 1 }
 0x15b   : > { %p6323_p13 = scmp.ne.s32.totalorder %s6321_s15, %s6322_s11  ;;  %p6327_p2 = scmp.lt.s32.totalorder %s6321_s15, %s8353_s10 }
 0x15c   : > { %p6328_p3 = scmp.lt.s32.totalorder %s6326_s6, %s6322_s11 }
 0x15d   : > { %s1292_s16 = sshll.u32 %s8354_s4, 4  ;;  %p6324_p0 = pnand %p6323_p13, %p5538_p10  ;;  %s7397_s16 = int_to_ptr.hbm [resolvable:$true] %s1292_s16 }
 0x15e   : > { %p6329_p4 = por %p6328_p3, %p6327_p2 }
 0x15f   : > { %p6325_p1 = pneg %p6324_p0 }
 0x161   : > { %p6330_p7 = pnand %p6329_p4, %p6325_p1 }
 0x163   : > { %6333 = shalt.err (!%p6330_p7)
}
 0x164   : > { %s8355_s23 = sld [smem:[#allocation82_spill]]  ;;  %s6877_s28 = smov [#allocation13]  }
 0x165   : > { %5425 = dma.hbm_to_vmem [thread:$0]  (%p5538_p10), %s7386_s1, 16, %s1271_s5, [#allocation9]  }
 0x166   : > { %s1294_s2 = sshll.u32 %s6877_s28, 4  ;;  %s6348_s15 = sshra.s32 %s7397_s16, 4  ;;  %s1295_s2 = int_to_ptr.vmem [resolvable:$true] %s1294_s2  ;;  %s6349_s15 = int_to_ptr.hbm [resolvable:$true] %s6348_s15 }
 0x167   : > { %s6350_s11 = scalar_lea.hbm %s6349_s15, 1  ;;  %s6354_s6 = scalar_lea.hbm %s8354_s4, 1 }
 0x168   : > { %p6351_p8 = scmp.ne.s32.totalorder %s6349_s15, %s6350_s11  ;;  %p6355_p13 = scmp.lt.s32.totalorder %s6349_s15, %s8354_s4 }
 0x169   : > { %p6356_p0 = scmp.lt.s32.totalorder %s6354_s6, %s6350_s11 }
 0x16a   : > { %s1316_s13 = sshll.u32 %s8355_s23, 4  ;;  %p6352_p11 = pnand %p6351_p8, %p5538_p10  ;;  %s7408_s13 = int_to_ptr.hbm [resolvable:$true] %s1316_s13 }
 0x16b   : > { %p6357_p1 = por %p6356_p0, %p6355_p13 }
 0x16c   : > { %p6353_p12 = pneg %p6352_p11 }
 0x16e   : > { %p6358_p2 = pnand %p6357_p1, %p6353_p12 }
 0x170   : > { %6361 = shalt.err (!%p6358_p2)
}
 0x171   : > { %s8356_s5 = sld [smem:[#allocation83_spill]]  ;;  %s6878_s28 = smov [#allocation16]  }
 0x172   : > { %5429 = dma.hbm_to_vmem [thread:$0]  (%p5538_p10), %s7397_s16, 16, %s1295_s2, [#allocation12]  }
 0x173   : > { %s1318_s10 = sshll.u32 %s6878_s28, 4  ;;  %s6376_s15 = sshra.s32 %s7408_s13, 4  ;;  %s1319_s10 = int_to_ptr.vmem [resolvable:$true] %s1318_s10  ;;  %s6377_s15 = int_to_ptr.hbm [resolvable:$true] %s6376_s15 }
 0x174   : > { %s6378_s11 = scalar_lea.hbm %s6377_s15, 1  ;;  %s6382_s6 = scalar_lea.hbm %s8355_s23, 1 }
 0x175   : > { %p6379_p3 = scmp.ne.s32.totalorder %s6377_s15, %s6378_s11  ;;  %p6383_p8 = scmp.lt.s32.totalorder %s6377_s15, %s8355_s23 }
 0x176   : > { %p6384_p11 = scmp.lt.s32.totalorder %s6382_s6, %s6378_s11 }
 0x177   : > { %s1340_s1 = sshll.u32 %s8356_s5, 4  ;;  %p6380_p4 = pnand %p6379_p3, %p5538_p10  ;;  %s7419_s1 = int_to_ptr.hbm [resolvable:$true] %s1340_s1 }
 0x178   : > { %p6385_p12 = por %p6384_p11, %p6383_p8 }
 0x179   : > { %p6381_p7 = pneg %p6380_p4 }
 0x17b   : > { %p6386_p13 = pnand %p6385_p12, %p6381_p7 }
 0x17d   : > { %6389 = shalt.err (!%p6386_p13)
}
 0x17e   : > { %s8357_s16 = sld [smem:[#allocation84_spill]]  ;;  %s6879_s2 = smov [#allocation19]  }
 0x17f   : > { %5433 = dma.hbm_to_vmem [thread:$0]  (%p5538_p10), %s7408_s13, 16, %s1319_s10, [#allocation15]  }
 0x180   : > { %s1342_s28 = sshll.u32 %s6879_s2, 4  ;;  %s6404_s15 = sshra.s32 %s7419_s1, 4  ;;  %s1343_s28 = int_to_ptr.vmem [resolvable:$true] %s1342_s28  ;;  %s6405_s15 = int_to_ptr.hbm [resolvable:$true] %s6404_s15 }
 0x181   : > { %s6406_s11 = scalar_lea.hbm %s6405_s15, 1  ;;  %s6410_s6 = scalar_lea.hbm %s8356_s5, 1 }
 0x182   : > { %p6407_p0 = scmp.ne.s32.totalorder %s6405_s15, %s6406_s11  ;;  %p6411_p3 = scmp.lt.s32.totalorder %s6405_s15, %s8356_s5 }
 0x183   : > { %p6412_p4 = scmp.lt.s32.totalorder %s6410_s6, %s6406_s11 }
 0x184   : > { %s1363_s4 = sshll.u32 %s8357_s16, 4  ;;  %p6408_p1 = pnand %p6407_p0, %p5538_p10  ;;  %s7430_s4 = int_to_ptr.hbm [resolvable:$true] %s1363_s4 }
 0x185   : > { %p6413_p7 = por %p6412_p4, %p6411_p3 }
 0x186   : > { %p6409_p2 = pneg %p6408_p1 }
 0x188   : > { %p6414_p8 = pnand %p6413_p7, %p6409_p2 }
 0x18a   : > { %6417 = shalt.err (!%p6414_p8)
}
 0x18b   : > { %s8358_s13 = sld [smem:[#allocation86_spill]]  ;;  %s6880_s2 = smov [#allocation22]  }
 0x18c   : > { %5437 = dma.hbm_to_vmem [thread:$0]  (%p5538_p10), %s7419_s1, 16, %s1343_s28, [#allocation18]  }
 0x18d   : > { %s1365_s14 = sshll.u32 %s6880_s2, 4  ;;  %s6432_s15 = sshra.s32 %s7430_s4, 4  ;;  %s1366_s14 = int_to_ptr.vmem [resolvable:$true] %s1365_s14  ;;  %s6433_s15 = int_to_ptr.hbm [resolvable:$true] %s6432_s15 }
 0x18e   : > { %s6434_s11 = scalar_lea.hbm %s6433_s15, 32  ;;  %s6438_s6 = scalar_lea.hbm %s8357_s16, 32 }
 0x18f   : > { %p6435_p11 = scmp.ne.s32.totalorder %s6433_s15, %s6434_s11  ;;  %p6439_p0 = scmp.lt.s32.totalorder %s6433_s15, %s8357_s16 }
 0x190   : > { %p6440_p1 = scmp.lt.s32.totalorder %s6438_s6, %s6434_s11 }
 0x191   : > { %s1391_s10 = sshll.u32 %s8358_s13, 4  ;;  %p6436_p12 = pnand %p6435_p11, %p5538_p10  ;;  %s7441_s10 = int_to_ptr.hbm [resolvable:$true] %s1391_s10 }
 0x192   : > { %p6441_p2 = por %p6440_p1, %p6439_p0 }
 0x193   : > { %p6437_p13 = pneg %p6436_p12 }
 0x195   : > { %p6442_p3 = pnand %p6441_p2, %p6437_p13 }
 0x197   : > { %6445 = shalt.err (!%p6442_p3)
}
 0x198   : > { %s8359_s1 = sld [smem:[#allocation88_spill]]  ;;  %s6881_s28 = smov [#allocation25]  }
 0x199   : > { %5441 = dma.hbm_to_vmem [thread:$0]  (%p5538_p10), %s7430_s4, 512, %s1366_s14, [#allocation21], %s8352_s3, %s8352_s3, %s8351_s18  }
 0x19a   : > { %s1393_s2 = sshll.u32 %s6881_s28, 4  ;;  %s6460_s15 = sshra.s32 %s7441_s10, 4  ;;  %s1394_s2 = int_to_ptr.vmem [resolvable:$true] %s1393_s2  ;;  %s6461_s15 = int_to_ptr.hbm [resolvable:$true] %s6460_s15 }
 0x19b   : > { %s6462_s11 = scalar_lea.hbm %s6461_s15, 32  ;;  %s6466_s6 = scalar_lea.hbm %s8358_s13, 32 }
 0x19c   : > { %p6463_p4 = scmp.ne.s32.totalorder %s6461_s15, %s6462_s11  ;;  %p6467_p11 = scmp.lt.s32.totalorder %s6461_s15, %s8358_s13 }
 0x19d   : > { %p6468_p12 = scmp.lt.s32.totalorder %s6466_s6, %s6462_s11 }
 0x19e   : > { %s8360_s5 = smov %s8359_s1  ;;  %s1419_s17 = sshll.u32 %s8359_s1, 4  ;;  %s7455_s17 = int_to_ptr.hbm [resolvable:$true] %s1419_s17 }
 0x19f   : > { %p6464_p7 = pnand %p6463_p4, %p5538_p10  ;;  %p6469_p13 = por %p6468_p12, %p6467_p11 }
 0x1a1   : > { %p6465_p8 = pneg %p6464_p7 }
 0x1a3   : > { %p6470_p0 = pnand %p6469_p13, %p6465_p8 }
 0x1a5   : > { %6473 = shalt.err (!%p6470_p0)
}
 0x1a6   : > { %s8361_s14 = sld [smem:[#allocation91_spill]]  ;;  %s6882_s1 = smov [#allocation28]  }
 0x1a7   : > { %5445 = dma.hbm_to_vmem [thread:$0]  (%p5538_p10), %s7441_s10, 512, %s1394_s2, [#allocation24], %s8352_s3, %s8352_s3, %s8351_s18  }
 0x1a8   : > { %s1421_s28 = sshll.u32 %s6882_s1, 4  ;;  %s6488_s15 = sshra.s32 %s7455_s17, 4  ;;  %s1422_s28 = int_to_ptr.vmem [resolvable:$true] %s1421_s28  ;;  %s6489_s15 = int_to_ptr.hbm [resolvable:$true] %s6488_s15 }
 0x1a9   : > { %s6490_s11 = scalar_lea.hbm %s6489_s15, 32  ;;  %s6494_s6 = scalar_lea.hbm %s8360_s5, 32 }
 0x1aa   : > { %p6491_p1 = scmp.ne.s32.totalorder %s6489_s15, %s6490_s11  ;;  %p6495_p4 = scmp.lt.s32.totalorder %s6489_s15, %s8360_s5 }
 0x1ab   : > { %p6496_p7 = scmp.lt.s32.totalorder %s6494_s6, %s6490_s11 }
 0x1ac   : > { %s1449_s4 = sshll.u32 %s8361_s14, 4  ;;  %p6492_p2 = pnand %p6491_p1, %p5538_p10  ;;  %s7469_s4 = int_to_ptr.hbm [resolvable:$true] %s1449_s4 }
 0x1ad   : > { %p6497_p8 = por %p6496_p7, %p6495_p4 }
 0x1ae   : > { %p6493_p3 = pneg %p6492_p2 }
 0x1b0   : > { %p6498_p11 = pnand %p6497_p8, %p6493_p3 }
 0x1b2   : > { %6501 = shalt.err (!%p6498_p11)
}
 0x1b3   : > { %s8362_s10 = sld [smem:[#allocation94_spill]]  ;;  %s6883_s2 = smov [#allocation31]  }
 0x1b4   : > { %5449 = dma.hbm_to_vmem [thread:$0]  (%p5538_p10), %s7455_s17, 512, %s1422_s28, [#allocation27], %s8352_s3, %s8352_s3, %s8351_s18  }
 0x1b5   : > { %s1451_s1 = sshll.u32 %s6883_s2, 4  ;;  %s6516_s15 = sshra.s32 %s7469_s4, 4  ;;  %s1452_s1 = int_to_ptr.vmem [resolvable:$true] %s1451_s1  ;;  %s6517_s15 = int_to_ptr.hbm [resolvable:$true] %s6516_s15 }
 0x1b6   : > { %s6518_s11 = scalar_lea.hbm %s6517_s15, 4  ;;  %s6522_s6 = scalar_lea.hbm %s8361_s14, 4 }
 0x1b7   : > { %p6519_p12 = scmp.ne.s32.totalorder %s6517_s15, %s6518_s11  ;;  %p6523_p1 = scmp.lt.s32.totalorder %s6517_s15, %s8361_s14 }
 0x1b8   : > { %p6524_p2 = scmp.lt.s32.totalorder %s6522_s6, %s6518_s11 }
 0x1b9   : > { %s1477_s13 = sshll.u32 %s8362_s10, 4  ;;  %p6520_p13 = pnand %p6519_p12, %p5538_p10  ;;  %s7483_s13 = int_to_ptr.hbm [resolvable:$true] %s1477_s13 }
 0x1ba   : > { %p6525_p3 = por %p6524_p2, %p6523_p1 }
 0x1bb   : > { %p6521_p0 = pneg %p6520_p13 }
 0x1bd   : > { %p6526_p4 = pnand %p6525_p3, %p6521_p0 }
 0x1bf   : > { %6529 = shalt.err (!%p6526_p4)
}
 0x1c0   : > { %s8363_s17 = sld [smem:[#allocation100_spill]]  ;;  %s6884_s2 = smov [#allocation34]  }
 0x1c1   : > { %5453 = dma.hbm_to_vmem [thread:$0]  (%p5538_p10), %s7469_s4, 64, %s1452_s1, [#allocation30]  }
 0x1c2   : > { %s1479_s5 = sshll.u32 %s6884_s2, 4  ;;  %s6544_s15 = sshra.s32 %s7483_s13, 4  ;;  %s1480_s5 = int_to_ptr.vmem [resolvable:$true] %s1479_s5  ;;  %s6545_s15 = int_to_ptr.hbm [resolvable:$true] %s6544_s15 }
 0x1c3   : > { %s6546_s11 = scalar_lea.hbm %s6545_s15, 2  ;;  %s6550_s6 = scalar_lea.hbm %s8362_s10, 2 }
 0x1c4   : > { %p6547_p7 = scmp.ne.s32.totalorder %s6545_s15, %s6546_s11  ;;  %p6551_p12 = scmp.lt.s32.totalorder %s6545_s15, %s8362_s10 }
 0x1c5   : > { %p6552_p13 = scmp.lt.s32.totalorder %s6550_s6, %s6546_s11 }
 0x1c6   : > { %s1517_s28 = sshll.u32 %s8363_s17, 4  ;;  %p6548_p8 = pnand %p6547_p7, %p5538_p10  ;;  %s7494_s28 = int_to_ptr.hbm [resolvable:$true] %s1517_s28 }
 0x1c7   : > { %p6553_p0 = por %p6552_p13, %p6551_p12 }
 0x1c8   : > { %p6549_p11 = pneg %p6548_p8 }
 0x1ca   : > { %p6554_p1 = pnand %p6553_p0, %p6549_p11 }
 0x1cc   : > { %6557 = shalt.err (!%p6554_p1)
}
 0x1cd   : > { %s8364_s4 = smov 1   ;;  %s8365_s1 = smov 16  }
 0x1ce   : > { %s8366_s2 = sld [smem:[#allocation102_spill]]  ;;  %s6885_s16 = smov [#allocation37]  }
 0x1cf   : > { %5457 = dma.hbm_to_vmem [thread:$0]  (%p5538_p10), %s7483_s13, 32, %s1480_s5, [#allocation33], %s8365_s1, %s8365_s1, %s8364_s4  }
 0x1d0   : > { %s1519_s19 = sshll.u32 %s6885_s16, 4  ;;  %s6572_s15 = sshra.s32 %s7494_s28, 4  ;;  %s1520_s19 = int_to_ptr.vmem [resolvable:$true] %s1519_s19  ;;  %s6573_s15 = int_to_ptr.hbm [resolvable:$true] %s6572_s15 }
 0x1d1   : > { %s6574_s11 = scalar_lea.hbm %s6573_s15, 2  ;;  %s6578_s6 = scalar_lea.hbm %s8363_s17, 2 }
 0x1d2   : > { %p6575_p2 = scmp.ne.s32.totalorder %s6573_s15, %s6574_s11  ;;  %p6579_p7 = scmp.lt.s32.totalorder %s6573_s15, %s8363_s17 }
 0x1d3   : > { %p6580_p8 = scmp.lt.s32.totalorder %s6578_s6, %s6574_s11 }
 0x1d4   : > { %s8367_s14 = smov %s8366_s2  ;;  %s1545_s20 = sshll.u32 %s8366_s2, 4  ;;  %s7508_s20 = int_to_ptr.hbm [resolvable:$true] %s1545_s20 }
 0x1d5   : > { %p6576_p3 = pnand %p6575_p2, %p5538_p10  ;;  %p6581_p11 = por %p6580_p8, %p6579_p7 }
 0x1d7   : > { %p6577_p4 = pneg %p6576_p3 }
 0x1d9   : > { %p6582_p12 = pnand %p6581_p11, %p6577_p4 }
 0x1db   : > { %6585 = shalt.err (!%p6582_p12)
}
 0x1dc   : > { %s8368_s5 = sld [smem:[#allocation103_spill]]  ;;  %s6886_s13 = smov [#allocation40]  }
 0x1dd   : > { %5461 = dma.hbm_to_vmem [thread:$0]  (%p5538_p10), %s7494_s28, 32, %s1520_s19, [#allocation36], %s8365_s1, %s8365_s1, %s8364_s4  }
 0x1de   : > { %s1547_s2 = sshll.u32 %s6886_s13, 4  ;;  %s6600_s15 = sshra.s32 %s7508_s20, 4  ;;  %s1548_s2 = int_to_ptr.vmem [resolvable:$true] %s1547_s2  ;;  %s6601_s15 = int_to_ptr.hbm [resolvable:$true] %s6600_s15 }
 0x1df   : > { %s6602_s11 = scalar_lea.hbm %s6601_s15, 2  ;;  %s6606_s6 = scalar_lea.hbm %s8367_s14, 2 }
 0x1e0   : > { %p6603_p13 = scmp.ne.s32.totalorder %s6601_s15, %s6602_s11  ;;  %p6607_p2 = scmp.lt.s32.totalorder %s6601_s15, %s8367_s14 }
 0x1e1   : > { %p6608_p3 = scmp.lt.s32.totalorder %s6606_s6, %s6602_s11 }
 0x1e2   : > { %s1573_s16 = sshll.u32 %s8368_s5, 4  ;;  %p6604_p0 = pnand %p6603_p13, %p5538_p10  ;;  %s7522_s16 = int_to_ptr.hbm [resolvable:$true] %s1573_s16 }
 0x1e3   : > { %p6609_p4 = por %p6608_p3, %p6607_p2 }
 0x1e4   : > { %p6605_p1 = pneg %p6604_p0 }
 0x1e6   : > { %p6610_p7 = pnand %p6609_p4, %p6605_p1 }
 0x1e8   : > { %6613 = shalt.err (!%p6610_p7)
}
 0x1e9   : > { %5465 = dma.hbm_to_vmem [thread:$0]  (%p5538_p10), %s7508_s20, 32, %s1548_s2, [#allocation39], %s8365_s1, %s8365_s1, %s8364_s4  }
 0x1ea   : > { %s6887_s19 = smov [#allocation43]   ;;  %s1601_s13 = sshll.u32 %s8329_s8, 4  ;;  %s1602_s13 = int_to_ptr.hbm [resolvable:$true] %s1601_s13 }
 0x1eb   : > { %s1575_s28 = sshll.u32 %s6887_s19, 4  ;;  %s6628_s15 = sshra.s32 %s7522_s16, 4  ;;  %s1576_s28 = int_to_ptr.vmem [resolvable:$true] %s1575_s28  ;;  %s6629_s15 = int_to_ptr.hbm [resolvable:$true] %s6628_s15 }
 0x1ec   : > { %s6630_s11 = scalar_lea.hbm %s6629_s15, 2  ;;  %s6634_s6 = scalar_lea.hbm %s8368_s5, 2 }
 0x1ed   : > { %p6631_p8 = scmp.ne.s32.totalorder %s6629_s15, %s6630_s11  ;;  %p6635_p13 = scmp.lt.s32.totalorder %s6629_s15, %s8368_s5 }
 0x1ee   : > { %p6636_p0 = scmp.lt.s32.totalorder %s6634_s6, %s6630_s11 }
 0x1ef   : > { %p6632_p11 = pnand %p6631_p8, %p5538_p10 }
 0x1f0   : > { %p6637_p1 = por %p6636_p0, %p6635_p13 }
 0x1f1   : > { %p6633_p12 = pneg %p6632_p11 }
 0x1f3   : > { %p6638_p2 = pnand %p6637_p1, %p6633_p12 }
 0x1f5   : > { %6641 = shalt.err (!%p6638_p2)
}
 0x1f6   : > { %5469 = dma.hbm_to_vmem [thread:$0]  (%p5538_p10), %s7522_s16, 32, %s1576_s28, [#allocation42], %s8365_s1, %s8365_s1, %s8364_s4  }
 0x1f7   : > { %s6888_s20 = smov [#allocation46]   ;;  %s6656_s19 = sshra.s32 %s1602_s13, 4  ;;  %s6657_s19 = int_to_ptr.hbm [resolvable:$true] %s6656_s19 }
 0x1f8   : > { %s1603_s2 = sshll.u32 %s6888_s20, 4  ;;  %s6658_s15 = scalar_lea.hbm %s6657_s19, 64  ;;  %s1604_s2 = int_to_ptr.vmem [resolvable:$true] %s1603_s2 }
 0x1f9   : > { %p6659_p3 = scmp.ne.s32.totalorder %s6657_s19, %s6658_s15  ;;  %s6662_s11 = scalar_lea.hbm %s8329_s8, 64 }
 0x1fa   : > { %p6663_p8 = scmp.lt.s32.totalorder %s6657_s19, %s8329_s8  ;;  %p6664_p11 = scmp.lt.s32.totalorder %s6662_s11, %s6658_s15 }
 0x1fb   : > { %p6660_p4 = pnand %p6659_p3, %p5538_p10 }
 0x1fc   : > { %p6665_p12 = por %p6664_p11, %p6663_p8 }
 0x1fd   : > { %p6661_p7 = pneg %p6660_p4 }
 0x1ff   : > { %p6666_p13 = pnand %p6665_p12, %p6661_p7 }
 0x201   : > { %6669 = shalt.err (!%p6666_p13)
}
 0x202   : > { %5473 = dma.hbm_to_vmem [thread:$0]  (%p5538_p10), %s1602_s13, 1024, %s1604_s2, [#allocation45], %s8352_s3, %s8352_s3, %s8351_s18  }
 0x203 PF: > { %1637 = sbr.rel (%p7191_p9) target bundleno = 8789 (0x2255), region = 212  ;;  %p5567_p0 = scmp.eq.s32.totalorder (!%p7191_p9), %s7164_s7, 0 }
 0x208   : > { %6729 = dma.done.wait (%p5567_p0), [#allocation3], 512  }
 0x209   : > { %6731 = vsyncadd (%p5567_p0), [#allocation3], 4294966784 }
 0x20a   : > { %6733 = dma.done.wait (%p5567_p0), [#allocation6], 528  }
 0x20b   : > { %6735 = vsyncadd (%p5567_p0), [#allocation6], 4294966768 }
 0x20c   : > { %6737 = dma.done.wait (%p5567_p0), [#allocation9], 32  }
 0x20d   : > { %6739 = vsyncadd (%p5567_p0), [#allocation9], 4294967264 }
 0x20e   : > { %6741 = dma.done.wait (%p5567_p0), [#allocation12], 32  }
 0x20f   : > { %6743 = vsyncadd (%p5567_p0), [#allocation12], 4294967264 }
 0x210   : > { %6745 = dma.done.wait (%p5567_p0), [#allocation15], 32  }
 0x211   : > { %6747 = vsyncadd (%p5567_p0), [#allocation15], 4294967264 }
 0x212   : > { %6749 = dma.done.wait (%p5567_p0), [#allocation18], 32  }
 0x213   : > { %6751 = vsyncadd (%p5567_p0), [#allocation18], 4294967264 }
 0x214   : > { %6753 = dma.done.wait (%p5567_p0), [#allocation21], 528  }
 0x215   : > { %6755 = vsyncadd (%p5567_p0), [#allocation21], 4294966768 }
 0x216   : > { %6757 = dma.done.wait (%p5567_p0), [#allocation24], 1024  }
 0x217   : > { %6759 = vsyncadd (%p5567_p0), [#allocation24], 4294966272 }
 0x218   : > { %6761 = dma.done.wait (%p5567_p0), [#allocation27], 1024  }
 0x219   : > { %6763 = vsyncadd (%p5567_p0), [#allocation27], 4294966272 }
 0x21a   : > { %6765 = dma.done.wait (%p5567_p0), [#allocation30], 80  }
 0x21b   : > { %6767 = vsyncadd (%p5567_p0), [#allocation30], 4294967216 }
 0x21c   : > { %6769 = dma.done.wait (%p5567_p0), [#allocation33], 64  }
 0x21d   : > { %6771 = vsyncadd (%p5567_p0), [#allocation33], 4294967232 }
 0x21e   : > { %6773 = dma.done.wait (%p5567_p0), [#allocation36], 64  }
 0x21f   : > { %6775 = vsyncadd (%p5567_p0), [#allocation36], 4294967232 }
 0x220   : > { %6777 = dma.done.wait (%p5567_p0), [#allocation39], 64  }
 0x221   : > { %6779 = vsyncadd (%p5567_p0), [#allocation39], 4294967232 }
 0x222   : > { %6781 = dma.done.wait (%p5567_p0), [#allocation42], 64  }
 0x223   : > { %6783 = vsyncadd (%p5567_p0), [#allocation42], 4294967232 }
 0x224   : > { %6785 = dma.done.wait (%p5567_p0), [#allocation45], 1056  }
 0x225   : > { %6787 = vsyncadd (%p5567_p0), [#allocation45], 4294966240  ;;  %s8369_s26 = sld [smem:[#allocation64_spill]]  ;;  %p1896_p9 = scmp.lt.s32.totalorder %s7164_s7, 1  ;;  %vm1919_vm0 = vcmask 1043456   ;;  %vm1912_vm1 = vcmask 31744  }
 0x226   : > { %s8370_s18 = sld [smem:[#allocation98_spill]]  ;;  %v1907_v0 = vld [vmem:[#allocation31] sm:$0xf]  ;;  %v5714_v15 = vld [vmem:[#allocation29] ss:$0 sm:$0xff]  ;;  %vm1987_vm2 = vcmask 261120  }
 0x227   : > { %s8371_s3 = sld [smem:[#allocation96_spill]]  ;;  %5238 = vmatpush.msk.msra.mxu0 %vm1919_vm0, %v1907_v0  ;;  %5415 = vmatpush.msk.msra.mxu1 %vm1919_vm0, %v1907_v0  ;;  %v5715_v20 = vld [vmem:[#allocation34] ss:$0 sm:$0xff]  ;;  %s6889_s6 = smov 120   ;;  %v5717_v28 = vld [vmem:[#allocation35] ss:$0 sm:$0xff] }
 0x228   : > { %s8372_s4 = sld [smem:[#allocation99_spill]]  ;;  %vm2069_vm3 = vcmask 64512   ;;  %vm2107_vm4 = vcmask 97280   ;;  %vm2111_vm5 = vcmask 93184   ;;  %s8281_s20 = smov 112   ;;  %vm2593_vm6 = vcmask 257024  }
 0x229   : > { %s7621_s1 = scalar_select %p1896_p9, %s7164_s7, 1  ;;  %vm2689_vm14 = vcmask 523264  }
 0x22a   : > { %s8373_s13 = sld [smem:[#allocation92_spill]]  ;;  %s6891_s2 = smov 104  }
 0x22b   : > { %s5414_s16 = sshll.u32 %s7621_s1, 4  ;;  %s8374_s19 = sld [smem:[#allocation97_spill]] }
 0x22c   : > { %s1900_s28 = scalar_lea.vmem %s8369_s26, %s5414_s16  ;;  %v1961_v3 = vld [vmem:[%s8370_s18 + $0x18] sm:$0xff]  ;;  %v1960_v6 = vld [vmem:[%s8370_s18 + $0x10] sm:$0xff]  ;;  %v1959_v9 = vld [vmem:[%s8370_s18 + $0x8] sm:$0xff]  ;;  %s8375_s15 = sld [smem:[#allocation65_spill]] }
 0x22d   : > { %v1905_v1 = vld [vmem:[%s1900_s28] sm:$0xff]  ;;  %v1906_v2 = vld [vmem:[%s1900_s28 + $0x8] sm:$0xf]  ;;  %v1953_v4 = vld [vmem:[%s8371_s3 + $0x18] sm:$0xff]  ;;  %2006 = vmatpush.msrb.mxu1 %v1961_v3  ;;  %s8376_s11 = sld [smem:[#allocation67_spill]]  ;;  %s5237_s26 = sshll.u32 %s7621_s1, 3 }
 0x22e   : > { %v1965_v5 = vld [vmem:[%s8372_s4 + $0x18] sm:$0xff]  ;;  %5239 = vmatmul.msk.f32.vlgmr.msra.gmra.mxu0 %vm1912_vm1, %v1905_v1  ;;  %5240 = vmatmul.msk.f32.vlgmr.msra.gmra.mxu1 %vm1912_vm1, %v1906_v2  ;;  %v1952_v7 = vld [vmem:[%s8371_s3 + $0x10] sm:$0xff]  ;;  %v1951_v10 = vld [vmem:[%s8371_s3 + $0x8] sm:$0xff]  ;;  %s8377_s1 = sld [smem:[#allocation66_spill]] }
 0x22f   : > { %2032 = vmatpush.msra.mxu2 %v1953_v4  ;;  %v1964_v8 = vld [vmem:[%s8372_s4 + $0x10] sm:$0xff]  ;;  %2058 = vmatpush.msra.mxu3 %v1965_v5  ;;  %v1963_v11 = vld [vmem:[%s8372_s4 + $0x8] sm:$0xff]  ;;  %v1958_v12 = vld [vmem:[%s8370_s18] sm:$0xff]  ;;  %s8378_s28 = sld [smem:[#allocation74_spill]] }
 0x230   : > { %2007 = vmatpush.msrb.mxu1 %v1960_v6  ;;  %v1950_v13 = vld [vmem:[%s8371_s3] sm:$0xff] }
 0x231   : > { %2033 = vmatpush.msra.mxu2 %v1952_v7  ;;  %2059 = vmatpush.msra.mxu3 %v1964_v8  ;;  %v1962_v14 = vld [vmem:[%s8372_s4] sm:$0xff] }
 0x232   : > { %2008 = vmatpush.msrb.mxu1 %v1959_v9  ;;  %v5716_v27 = vld [vmem:[%s8373_s13] ss:$0 sm:$0xff]  ;;  %s1904_s16 = scalar_lea.vmem %s8375_s15, %s5237_s26  ;;  %s8381_s26 = sld [smem:[#allocation70_spill]] }
 0x233   : > { %2034 = vmatpush.msra.mxu2 %v1951_v10  ;;  %2060 = vmatpush.msra.mxu3 %v1963_v11 }
 0x234   : > { %2009 = vmatpush.msrb.mxu1 %v1958_v12 }
 0x235   : > { %2035 = vmatpush.msra.mxu2 %v1950_v13  ;;  %2061 = vmatpush.msra.mxu3 %v1962_v14  ;;  %v1954_v13 = vld [vmem:[%s8374_s19] sm:$0xff]  ;;  %v1955_v14 = vld [vmem:[%s8374_s19 + $0x8] sm:$0xff]  ;;  %s8379_s15 = smov %s8378_s28 }
 0x237   : > { %2184 = vmatpush.msrb.mxu2 %v1954_v13 }
 0x2ab   : > { %v1940_v16 = vpop.f32.mrf.mxu0  ;;  %v1943_v18 = vpop.f32.mrf.mxu1 }
 0x2ac   : > { %v7641_v17 = vadd.f32 %v5714_v15, %v1940_v16  ;;  %v7649_v19 = vadd.f32 %v5714_v15, %v1943_v18 }
 0x2ae   : > { %5241 = vmatmul.msk.f32.vlgmr.msrb.gmra.mxu1 %vm1987_vm2, %v7641_v17  ;;  %5243 = vmatmul.msk.f32.vlgmr.msra.gmra.mxu2 %vm1987_vm2, %v7641_v17 }
 0x2af   : > { %5245 = vmatmul.msk.f32.vlgmr.msra.gmra.mxu3 %vm1987_vm2, %v7641_v17 }
 0x2b6   : > { %5242 = vmatmul.msk.f32.gmra.mxu1 %vm1987_vm2, %v7649_v19  ;;  %5244 = vmatmul.msk.f32.gmra.mxu2 %vm1987_vm2, %v7649_v19 }
 0x2b7   : > { %5246 = vmatmul.msk.f32.gmra.mxu3 %vm1987_vm2, %v7649_v19 }
 0x32b   : > { %v2011_v21 = vpop.f32.mrf.mxu1 }
 0x32c   : > { %v7657_v22 = vadd.f32 %v5715_v20, %v2011_v21 }
 0x32e   : > { %2197 = vrot.lane.b32.xlu1 %v7657_v22, %s6889_s6 }
 0x331   : > { %v2037_v23 = vpop.f32.mrf.mxu2 }
 0x332   : > { %v2063_v24 = vpop.f32.mrf.mxu3  ;;  %v7678_v34 = vadd.f32 %v5716_v27, %v2037_v23 }
 0x333   : > { %v2014_v25 = vpop.f32.mrf.mxu1  ;;  %v7674_v33 = vadd.f32 %v5717_v28, %v2063_v24 }
 0x334   : > { %v7661_v26 = vadd.f32 %v5715_v20, %v2014_v25 }
 0x336   : > { %2199 = vrot.lane.b32.xlu1 %v7661_v26, %s6889_s6 }
 0x339   : > { %v2040_v29 = vpop.f32.mrf.mxu2 }
 0x33a   : > { %v7666_v30 = vadd.f32 %v5716_v27, %v2040_v29  ;;  %v2066_v31 = vpop.f32.mrf.mxu3 }
 0x33b   : > { %v7668_v32 = vadd.f32 %v5717_v28, %v2066_v31 }
 0x33c   : > { %2203 = vrot.lane.b32.xlu0 %v7666_v30, %s6889_s6  ;;  %5247 = vmatpush.xpose.msk.msrb.mxu0 %vm2069_vm3, %v7666_v30 }
 0x33d   : > { %5251 = vmatpush.msk.msra.mxu1 %vm1919_vm0, %v7668_v32 }
 0x33f   : > { %2155 = vmatpush.msra.mxu1 %v7674_v33 }
 0x340   : > { %5248 = vmatpush.xpose.msk.msrb.mxu0 %vm2069_vm3, %v7678_v34 }
 0x341   : > { %2318 = vmatpush.msrb.mxu1 %v1955_v14 }
 0x343   : > { %5249 = vmatmul.msk.f32.vlgmr.msrb.gmra.mxu0 %vm2069_vm3, %v7657_v22 }
 0x344   : > { %2201 = vrot.lane.b32.xlu0 %v7678_v34, %s6889_s6 }
 0x34b   : > { %5250 = vmatmul.msk.f32.gmra.mxu0 %vm2069_vm3, %v7661_v26 }
 0x3a0   : > { %v2198_v37 = vpop.permute.xlu1 %2197 }
 0x3a8   : > { %v2200_v39 = vpop.permute.xlu1 %2199 }
 0x3ae   : > { %v2204_v35 = vpop.permute.xlu0 %2203 }
 0x3af   : > { %5256 = vmatpush.xpose.msk.msrb.mxu3 %vm2069_vm3, %v2204_v35 }
 0x3b6   : > { %v2202_v36 = vpop.permute.xlu0 %2201 }
 0x3b7   : > { %5257 = vmatpush.xpose.msk.msrb.mxu3 %vm2069_vm3, %v2202_v36 }
 0x3ba   : > { %5258 = vmatmul.msk.f32.vlgmr.msrb.gmra.mxu3 %vm2069_vm3, %v2198_v37 }
 0x3c0   : > { %v2099_v38 = vpop.f32.mrf.mxu0 }
 0x3c1   : > { %v2105_v40 = vmul.f32 0.35355338, %v2099_v38 }
 0x3c2   : > { %5259 = vmatmul.msk.f32.gmra.mxu3 %vm2069_vm3, %v2200_v39 }
 0x3c3   : > { %v2108_v41 = vsel %vm2107_vm4, %v2105_v40, -inf }
 0x3c4   : > { %2109 = vmax.xlane.f32.xlu2 %v2108_v41 }
 0x3c8   : > { %v2102_v42 = vpop.f32.mrf.mxu0 }
 0x3c9   : > { %v2106_v43 = vmul.f32 0.35355338, %v2102_v42 }
 0x3cb   : > { %v2112_v44 = vsel %vm2111_vm5, %v2106_v43, -inf }
 0x3cc   : > { %2113 = vmax.xlane.f32.xlu0 %v2112_v44  ;;  %v5718_v44 = vld [vmem:[#allocation32] ss:$0 sm:$0xff] }
 0x437   : > { %v2110_v45 = vpop.xlane.xlu2 %2109 }
 0x438   : > { %v2115_v46 = vsub.f32 %v2105_v40, %v2110_v45 }
 0x43a   : > { %v2117_v47 = vmul.f32 1.442695, %v2115_v46 }
 0x43c   : > { %5752 = vpow2.f32 %v2117_v47 }
 0x43d   : > { %v2230_v48 = vpop.f32.mrf.mxu3 }
 0x43e   : > { %v2236_v49 = vmul.f32 0.35355338, %v2230_v48 }
 0x43f   : > { %v2114_v50 = vpop.xlane.xlu0 %2113 }
 0x440   : > { %v2116_v51 = vsub.f32 %v2106_v43, %v2114_v50  ;;  %v2238_v52 = vsel %vm2107_vm4, %v2236_v49, -inf }
 0x441   : > { %2239 = vmax.xlane.f32.xlu2 %v2238_v52 }
 0x442   : > { %v2119_v53 = vmul.f32 1.442695, %v2116_v51  ;;  %v5753_v54 = vpop.eup %5752 }
 0x443   : > { %v2121_v58 = vsel %vm2107_vm4, %v5753_v54, 0.0 }
 0x444   : > { %5754 = vpow2.f32 %v2119_v53 }
 0x445   : > { %v2233_v55 = vpop.f32.mrf.mxu3 }
 0x446   : > { %v2237_v56 = vmul.f32 0.35355338, %v2233_v55 }
 0x448   : > { %v2241_v57 = vsel %vm2111_vm5, %v2237_v56, -inf }
 0x449   : > { %2242 = vmax.xlane.f32.xlu1 %v2241_v57  ;;  %2122 = vadd.xlane.f32.xlu2 %v2121_v58 }
 0x44a   : > { %v5755_v59 = vpop.eup %5754 }
 0x44b   : > { %v2124_v60 = vsel %vm2111_vm5, %v5755_v59, 0.0 }
 0x451   : > { %2125 = vadd.xlane.f32.xlu2 %v2124_v60 }
 0x462   : > { %2261 = vrot.lane.b32.xlu1 %v7674_v33, %s6889_s6 }
 0x46a   : > { %2328 = vrot.lane.b32.xlu1 %v7657_v22, %s8281_s20 }
 0x472   : > { %2460 = vrot.lane.b32.xlu1 %v7661_v26, %s6891_s2 }
 0x4b4   : > { %v2240_v61 = vpop.xlane.xlu2 %2239 }
 0x4b5   : > { %v2244_v62 = vsub.f32 %v2236_v49, %v2240_v61 }
 0x4b7   : > { %v2246_v63 = vmul.f32 1.442695, %v2244_v62 }
 0x4b9   : > { %5756 = vpow2.f32 %v2246_v63 }
 0x4bc   : > { %v2243_v0 = vpop.xlane.xlu1 %2242  ;;  %v2123_v1 = vpop.xlane.xlu2 %2122 }
 0x4bd   : > { %v2245_v2 = vsub.f32 %v2237_v56, %v2243_v0  ;;  %5758 = vrcp.f32 %v2123_v1 }
 0x4bf   : > { %v5757_v3 = vpop.eup %5756  ;;  %v2248_v4 = vmul.f32 1.442695, %v2245_v2 }
 0x4c0   : > { %v2250_v5 = vsel %vm2107_vm4, %v5757_v3, 0.0 }
 0x4c1   : > { %5760 = vpow2.f32 %v2248_v4  ;;  %2251 = vadd.xlane.f32.xlu2 %v2250_v5 }
 0x4c3   : > { %v5759_v6 = vpop.eup %5758 }
 0x4c4   : > { %v2129_v7 = vmul.f32 %v5759_v6, %v5753_v54  ;;  %v2126_v8 = vpop.xlane.xlu2 %2125 }
 0x4c5   : > { %5762 = vrcp.f32 %v2126_v8 }
 0x4c6   : > { %5252 = vmatmul.msk.f32.vlgmr.msra.gmra.mxu1 %vm2107_vm4, %v2129_v7 }
 0x4c7   : > { %v5761_v9 = vpop.eup %5760 }
 0x4c8   : > { %v2253_v10 = vsel %vm2111_vm5, %v5761_v9, 0.0 }
 0x4c9   : > { %2254 = vadd.xlane.f32.xlu0 %v2253_v10 }
 0x4cb   : > { %v5763_v11 = vpop.eup %5762 }
 0x4cc   : > { %v2130_v12 = vmul.f32 %v5763_v11, %v5755_v59 }
 0x4ce   : > { %5253 = vmatmul.msk.f32.gmra.mxu1 %vm2107_vm4, %v2130_v12 }
 0x4d4   : > { %v2262_v21 = vpop.permute.xlu1 %2261 }
 0x4d9   : > { %2263 = vrot.lane.b32.xlu2 %v7668_v32, %s6889_s6 }
 0x4dd   : > { %2464 = vrot.lane.b32.xlu0 %v7666_v30, %s6891_s2 }
 0x4e1   : > { %2334 = vrot.lane.b32.xlu2 %v7666_v30, %s8281_s20  ;;  %v2329_v30 = vpop.permute.xlu1 %2328 }
 0x4e5   : > { %2458 = vrot.lane.b32.xlu0 %v7657_v22, %s6891_s2 }
 0x4e9   : > { %2332 = vrot.lane.b32.xlu2 %v7678_v34, %s8281_s20  ;;  %v2461_v40 = vpop.permute.xlu1 %2460 }
 0x4f1   : > { %2462 = vrot.lane.b32.xlu2 %v7678_v34, %s6891_s2 }
 0x4f9   : > { %2330 = vrot.lane.b32.xlu2 %v7661_v26, %s8281_s20 }
 0x534   : > { %v2252_v15 = vpop.xlane.xlu2 %2251 }
 0x535   : > { %5764 = vrcp.f32 %v2252_v15 }
 0x53b   : > { %v5765_v16 = vpop.eup %5764 }
 0x53c   : > { %v2264_v18 = vpop.permute.xlu2 %2263  ;;  %v2255_v20 = vpop.xlane.xlu0 %2254  ;;  %v2258_v22 = vmul.f32 %v5765_v16, %v5757_v3 }
 0x53d   : > { %5766 = vrcp.f32 %v2255_v20  ;;  %5260 = vmatpush.msk.msra.mxu0 %vm1919_vm0, %v2264_v18 }
 0x53f   : > { %2289 = vmatpush.msra.mxu0 %v2262_v21 }
 0x540   : > { %5261 = vmatmul.msk.f32.vlgmr.msra.gmra.mxu0 %vm2107_vm4, %v2258_v22 }
 0x543   : > { %v5767_v23 = vpop.eup %5766  ;;  %v2157_v24 = vpop.f32.mrf.mxu1 }
 0x544   : > { %5254 = vmatmul.msk.f32.vlgmr.msrb.gmra.mxu2 %vm2069_vm3, %v2157_v24  ;;  %v2335_v25 = vpop.permute.xlu2 %2334  ;;  %v2259_v26 = vmul.f32 %v5767_v23, %v5761_v9 }
 0x545   : > { %5265 = vmatpush.xpose.msk.msra.mxu2 %vm2069_vm3, %v2335_v25 }
 0x548   : > { %5262 = vmatmul.msk.f32.gmra.mxu0 %vm2107_vm4, %v2259_v26 }
 0x54b   : > { %v2160_v27 = vpop.f32.mrf.mxu1 }
 0x54c   : > { %5255 = vmatmul.msk.f32.gmra.mxu2 %vm2069_vm3, %v2160_v27  ;;  %v2333_v28 = vpop.permute.xlu2 %2332 }
 0x54d   : > { %5266 = vmatpush.xpose.msk.msra.mxu2 %vm2069_vm3, %v2333_v28 }
 0x54f   : > { %v2465_v29 = vpop.permute.xlu0 %2464 }
 0x550   : > { %5274 = vmatpush.xpose.msk.msra.mxu1 %vm2069_vm3, %v2465_v29 }
 0x554   : > { %5267 = vmatmul.msk.f32.vlgmr.msra.gmra.mxu2 %vm2069_vm3, %v2329_v30  ;;  %v2463_v31 = vpop.permute.xlu2 %2462 }
 0x555   : > { %5275 = vmatpush.xpose.msk.msra.mxu1 %vm2069_vm3, %v2463_v31 }
 0x557   : > { %v2459_v38 = vpop.permute.xlu0 %2458 }
 0x55c   : > { %v2331_v34 = vpop.permute.xlu2 %2330 }
 0x55d   : > { %5268 = vmatmul.msk.f32.gmra.mxu2 %vm2069_vm3, %v2331_v34  ;;  %v1957_v34 = vld [vmem:[%s8374_s19 + $0x18] sm:$0xff] }
 0x5bd   : > { %v2291_v35 = vpop.f32.mrf.mxu0 }
 0x5be   : > { %5263 = vmatmul.msk.f32.vlgmr.msrb.gmra.mxu1 %vm2069_vm3, %v2291_v35  ;;  %v1956_v35 = vld [vmem:[%s8374_s19 + $0x10] sm:$0xff] }
 0x5bf   : > { %2448 = vmatpush.msrb.mxu0 %v1956_v35 }
 0x5c5   : > { %v2294_v36 = vpop.f32.mrf.mxu0 }
 0x5c6   : > { %5264 = vmatmul.msk.f32.gmra.mxu1 %vm2069_vm3, %v2294_v36 }
 0x5c7   : > { %v2186_v37 = vpop.f32.mrf.mxu2 }
 0x5c8   : > { %v2195_v45 = vadd.f32 %v5718_v44, %v2186_v37 }
 0x5ce   : > { %5276 = vmatmul.msk.f32.vlgmr.msra.gmra.mxu1 %vm2069_vm3, %v2459_v38 }
 0x5cf   : > { %v2189_v39 = vpop.f32.mrf.mxu2 }
 0x5d0   : > { %v2196_v48 = vadd.f32 %v5718_v44, %v2189_v39 }
 0x5d6   : > { %5277 = vmatmul.msk.f32.gmra.mxu1 %vm2069_vm3, %v2461_v40 }
 0x5d7   : > { %v2361_v41 = vpop.f32.mrf.mxu2 }
 0x5d8   : > { %v2367_v42 = vmul.f32 0.35355338, %v2361_v41 }
 0x5da   : > { %v2369_v43 = vsel %vm2107_vm4, %v2367_v42, -inf }
 0x5db   : > { %2370 = vmax.xlane.f32.xlu2 %v2369_v43 }
 0x5e0   : > { %v2364_v54 = vpop.f32.mrf.mxu2 }
 0x5e1   : > { %v2368_v55 = vmul.f32 0.35355338, %v2364_v54  ;;  %v6892_v54 = vmov 32.0  }
 0x5e3   : > { %v2372_v58 = vsel %vm2111_vm5, %v2368_v55, -inf }
 0x63b   : > { %v2320_v46 = vpop.f32.mrf.mxu1 }
 0x63c   : > { %v7741_v47 = vadd.f32 %v2320_v46, %v2195_v45 }
 0x643   : > { %v2323_v49 = vpop.f32.mrf.mxu1 }
 0x644   : > { %v7743_v50 = vadd.f32 %v2323_v49, %v2196_v48 }
 0x64b   : > { %v2491_v51 = vpop.f32.mrf.mxu1 }
 0x64c   : > { %v2497_v52 = vmul.f32 0.35355338, %v2491_v51 }
 0x64e   : > { %v2499_v53 = vsel %vm2107_vm4, %v2497_v52, -inf  ;;  %v2371_v60 = vpop.xlane.xlu2 %2370 }
 0x64f   : > { %2500 = vmax.xlane.f32.xlu0 %v2499_v53  ;;  %v2375_v61 = vsub.f32 %v2367_v42, %v2371_v60 }
 0x651   : > { %v2377_v62 = vmul.f32 1.442695, %v2375_v61 }
 0x653   : > { %v2494_v56 = vpop.f32.mrf.mxu1  ;;  %5768 = vpow2.f32 %v2377_v62 }
 0x654   : > { %v2498_v57 = vmul.f32 0.35355338, %v2494_v56 }
 0x656   : > { %v2502_v59 = vsel %vm2111_vm5, %v2498_v57, -inf }
 0x657   : > { %2373 = vmax.xlane.f32.xlu0 %v2372_v58  ;;  %2503 = vmax.xlane.f32.xlu1 %v2502_v59 }
 0x659   : > { %v5769_v63 = vpop.eup %5768 }
 0x65a   : > { %v2381_v0 = vsel %vm2107_vm4, %v5769_v63, 0.0 }
 0x66b   : > { %2523 = vrot.lane.b32.xlu0 %v7668_v32, %s6891_s2 }
 0x670   : > { %2521 = vrot.lane.b32.xlu1 %v7674_v33, %s6891_s2 }
 0x69a   : > { %2382 = vadd.xlane.f32.xlu1 %v2381_v0 }
 0x6b3   : > { %2391 = vrot.lane.b32.xlu1 %v7674_v33, %s8281_s20 }
 0x6c2   : > { %v2501_v1 = vpop.xlane.xlu0 %2500 }
 0x6c3   : > { %v2505_v2 = vsub.f32 %v2497_v52, %v2501_v1 }
 0x6c5   : > { %v2507_v3 = vmul.f32 1.442695, %v2505_v2 }
 0x6c7   : > { %5770 = vpow2.f32 %v2507_v3  ;;  %v1975_v3 = vld [vmem:[#allocation46 + $0x18] sm:$0xff] }
 0x6c8   : > { %2673 = vmatpush.msra.mxu0 %v1975_v3 }
 0x6ca   : > { %v2374_v4 = vpop.xlane.xlu0 %2373  ;;  %v2504_v5 = vpop.xlane.xlu1 %2503 }
 0x6cb   : > { %v2376_v6 = vsub.f32 %v2368_v55, %v2374_v4  ;;  %v2506_v7 = vsub.f32 %v2498_v57, %v2504_v5  ;;  %v1974_v4 = vld [vmem:[#allocation46 + $0x10] sm:$0xff]  ;;  %v1973_v5 = vld [vmem:[#allocation46 + $0x8] sm:$0xff] }
 0x6cc   : > { %2674 = vmatpush.msra.mxu0 %v1974_v4 }
 0x6cd   : > { %v5771_v8 = vpop.eup %5770  ;;  %v2379_v9 = vmul.f32 1.442695, %v2376_v6  ;;  %v2509_v10 = vmul.f32 1.442695, %v2506_v7  ;;  %v1972_v6 = vld [vmem:[#allocation46] sm:$0xff] }
 0x6ce   : > { %v2511_v11 = vsel %vm2107_vm4, %v5771_v8, 0.0  ;;  %2675 = vmatpush.msra.mxu0 %v1973_v5 }
 0x6cf   : > { %5772 = vpow2.f32 %v2379_v9  ;;  %2512 = vadd.xlane.f32.xlu2 %v2511_v11  ;;  %v1982_v11 = vld [vmem:[%s7136_s12 + $0x30] sm:$0xff] }
 0x6d0   : > { %5774 = vpow2.f32 %v2509_v10  ;;  %2676 = vmatpush.msra.mxu0 %v1972_v6  ;;  %v1983_v10 = vld [vmem:[%s7136_s12 + $0x38] sm:$0xff] }
 0x6d1   : > { %2704 = vmatpush.msrb.mxu1 %v1983_v10  ;;  %v5299_v6 = vld [vmem:[%s8370_s18 + $0x38] sm:$0xff]  ;;  %v5290_v10 = vld [vmem:[%s8371_s3 + $0x30] sm:$0xff] }
 0x6d3   : > { %2705 = vmatpush.msrb.mxu1 %v1982_v11  ;;  %v5302_v11 = vld [vmem:[%s8372_s4 + $0x30] sm:$0xff] }
 0x6d5   : > { %v5773_v12 = vpop.eup %5772 }
 0x6d6   : > { %v5775_v13 = vpop.eup %5774  ;;  %v2384_v33 = vsel %vm2111_vm5, %v5773_v12, 0.0 }
 0x6d7   : > { %2385 = vadd.xlane.f32.xlu0 %v2384_v33  ;;  %v2514_v14 = vsel %vm2111_vm5, %v5775_v13, 0.0 }
 0x6d8   : > { %2515 = vadd.xlane.f32.xlu2 %v2514_v14  ;;  %v1980_v14 = vld [vmem:[%s7136_s12 + $0x20] sm:$0xff] }
 0x6dd   : > { %v2524_v15 = vpop.permute.xlu0 %2523 }
 0x6de   : > { %5278 = vmatpush.msk.msrb.mxu2 %vm1919_vm0, %v2524_v15 }
 0x6e2   : > { %v2522_v16 = vpop.permute.xlu1 %2521 }
 0x6e3   : > { %2549 = vmatpush.msrb.mxu2 %v2522_v16 }
 0x6e5   : > { %2850 = vmatpush.msra.mxu2 %v5299_v6 }
 0x6f0   : > { %2393 = vrot.lane.b32.xlu2 %v7668_v32, %s8281_s20 }
 0x70d   : > { %v2383_v20 = vpop.xlane.xlu1 %2382 }
 0x725   : > { %v2392_v29 = vpop.permute.xlu1 %2391 }
 0x742   : > { %v2513_v18 = vpop.xlane.xlu2 %2512 }
 0x743   : > { %5776 = vrcp.f32 %v2513_v18  ;;  %v1979_v18 = vld [vmem:[%s7136_s12 + $0x18] sm:$0xff] }
 0x744   : > { %5778 = vrcp.f32 %v2383_v20 }
 0x749   : > { %v5777_v21 = vpop.eup %5776 }
 0x74a   : > { %v2519_v22 = vmul.f32 %v5777_v21, %v5771_v8  ;;  %v5779_v24 = vpop.eup %5778  ;;  %v2386_v25 = vpop.xlane.xlu0 %2385 }
 0x74b   : > { %v2516_v23 = vpop.xlane.xlu2 %2515  ;;  %v2389_v32 = vmul.f32 %v5779_v24, %v5769_v63 }
 0x74c   : > { %5780 = vrcp.f32 %v2516_v23  ;;  %5279 = vmatmul.msk.f32.vlgmr.msrb.gmra.mxu2 %vm2107_vm4, %v2519_v22 }
 0x74d   : > { %5782 = vrcp.f32 %v2386_v25 }
 0x74e   : > { %5784 = vrcp.f32 %v6892_v54  ;;  %v5722_v54 = vld [vmem:[#allocation38] ss:$0 sm:$0xff] }
 0x752   : > { %v5781_v26 = vpop.eup %5780 }
 0x753   : > { %v2394_v27 = vpop.permute.xlu2 %2393  ;;  %v2520_v28 = vmul.f32 %v5781_v26, %v5775_v13  ;;  %v5783_v30 = vpop.eup %5782 }
 0x754   : > { %5269 = vmatpush.msk.msra.mxu3 %vm1919_vm0, %v2394_v27  ;;  %v2390_v31 = vmul.f32 %v5783_v30, %v5773_v12  ;;  %v1981_v12 = vld [vmem:[%s7136_s12 + $0x28] sm:$0xff]  ;;  %v5719_v27 = vld [vmem:[#allocation41] ss:$0 sm:$0xff]  ;;  %v5720_v30 = vld [vmem:[#allocation40] ss:$0 sm:$0xff] }
 0x755   : > { %5280 = vmatmul.msk.f32.gmra.mxu2 %vm2107_vm4, %v2520_v28  ;;  %2706 = vmatpush.msrb.mxu1 %v1981_v12  ;;  %v5297_v12 = vld [vmem:[%s8370_s18 + $0x28] sm:$0xff] }
 0x756   : > { %2419 = vmatpush.msra.mxu3 %v2392_v29 }
 0x757   : > { %5270 = vmatmul.msk.f32.vlgmr.msra.gmra.mxu3 %vm2107_vm4, %v2389_v32  ;;  %2707 = vmatpush.msrb.mxu1 %v1980_v14  ;;  %v5296_v14 = vld [vmem:[%s8370_s18 + $0x20] sm:$0xff] }
 0x758   : > { %2578 = vmatpush.msrb.mxu3 %v1957_v34 }
 0x759   : > { %2708 = vmatpush.msrb.mxu1 %v1979_v18 }
 0x75f   : > { %5271 = vmatmul.msk.f32.gmra.mxu3 %vm2107_vm4, %v2390_v31 }
 0x7cf   : > { %v2551_v36 = vpop.f32.mrf.mxu2 }
 0x7d0   : > { %5281 = vmatmul.msk.f32.vlgmr.msrb.gmra.mxu3 %vm2069_vm3, %v2551_v36 }
 0x7d8   : > { %v2554_v37 = vpop.f32.mrf.mxu2 }
 0x7d9   : > { %5282 = vmatmul.msk.f32.gmra.mxu3 %vm2069_vm3, %v2554_v37 }
 0x7da   : > { %v2421_v38 = vpop.f32.mrf.mxu3 }
 0x7db   : > { %5272 = vmatmul.msk.f32.vlgmr.msrb.gmra.mxu0 %vm2069_vm3, %v2421_v38 }
 0x7e2   : > { %v2424_v39 = vpop.f32.mrf.mxu3 }
 0x7e3   : > { %5273 = vmatmul.msk.f32.gmra.mxu0 %vm2069_vm3, %v2424_v39 }
 0x853   : > { %v2580_v40 = vpop.f32.mrf.mxu3 }
 0x858   : > { %v2450_v41 = vpop.f32.mrf.mxu0 }
 0x859   : > { %v2456_v42 = vadd.f32 %v2450_v41, %v7741_v47  ;;  %v5785_v47 = vpop.eup %5784 }
 0x85a   : > { %v2598_v55 = vmul.f32 32.0, %v5785_v47  ;;  %vm2602_vm7 = vweird.f32 %v5785_v47 }
 0x85b   : > { %v2586_v43 = vadd.f32 %v2580_v40, %v2456_v42  ;;  %v1978_v42 = vld [vmem:[%s7136_s12 + $0x10] sm:$0xff] }
 0x85c   : > { %v2583_v49 = vpop.f32.mrf.mxu3  ;;  %v2599_v56 = vsub.f32 1.0, %v2598_v55  ;;  %2709 = vmatpush.msrb.mxu1 %v1978_v42 }
 0x85d   : > { %v2588_v44 = vadd.f32 %v2586_v43, %v7641_v17  ;;  %v1977_v43 = vld [vmem:[%s7136_s12 + $0x8] sm:$0xff] }
 0x85e   : > { %v2600_v17 = vmul.f32 %v5785_v47, %v2599_v56  ;;  %2710 = vmatpush.msrb.mxu1 %v1977_v43 }
 0x85f   : > { %v2590_v45 = vsel %vm1987_vm2, %v2588_v44, 0.0 }
 0x860   : > { %2591 = vadd.xlane.f32.xlu2 %v2590_v45  ;;  %v2453_v46 = vpop.f32.mrf.mxu0  ;;  %v2601_v57 = vadd.f32 %v5785_v47, %v2600_v17  ;;  %v5721_v45 = vld [vmem:[#allocation37] ss:$0 sm:$0xff] }
 0x861   : > { %v2457_v48 = vadd.f32 %v2453_v46, %v7743_v50 }
 0x862   : > { %v7778_v58 = vsel %vm2602_vm7, %v5785_v47, %v2601_v57 }
 0x863   : > { %v2587_v51 = vadd.f32 %v2583_v49, %v2457_v48 }
 0x865   : > { %v2589_v52 = vadd.f32 %v2587_v51, %v7649_v19 }
 0x867   : > { %v2594_v53 = vsel %vm2593_vm6, %v2589_v52, 0.0 }
 0x868   : > { %2595 = vadd.xlane.f32.xlu1 %v2594_v53 }
 0x8d3   : > { %v2592_v59 = vpop.xlane.xlu2 %2591 }
 0x8d4   : > { %v2604_v50 = vmul.f32 %v7778_v58, %v2592_v59 }
 0x8d6   : > { %v2606_v60 = vsub.f32 %v2588_v44, %v2604_v50  ;;  %v1976_v44 = vld [vmem:[%s7136_s12] sm:$0xff] }
 0x8d7   : > { %2711 = vmatpush.msrb.mxu1 %v1976_v44 }
 0x8d8   : > { %v2608_v61 = vmul.f32 %v2606_v60, %v2606_v60 }
 0x8da   : > { %v2610_v19 = vsel %vm1987_vm2, %v2608_v61, 0.0 }
 0x8db   : > { %2611 = vadd.xlane.f32.xlu0 %v2610_v19  ;;  %v2596_v62 = vpop.xlane.xlu1 %2595 }
 0x8dc   : > { %v2605_v63 = vmul.f32 %v7778_v58, %v2596_v62 }
 0x8de   : > { %v2607_v0 = vsub.f32 %v2589_v52, %v2605_v63 }
 0x8e0   : > { %v2609_v1 = vmul.f32 %v2607_v0, %v2607_v0 }
 0x8e2   : > { %v2613_v2 = vsel %vm2593_vm6, %v2609_v1, 0.0 }
 0x8e3   : > { %2614 = vadd.xlane.f32.xlu0 %v2613_v2 }
 0x94e   : > { %v2612_v7 = vpop.xlane.xlu0 %2611 }
 0x94f   : > { %v2616_v8 = vmul.f32 %v2612_v7, %v7778_v58  ;;  %v5291_v7 = vld [vmem:[%s8371_s3 + $0x38] sm:$0xff] }
 0x950   : > { %2876 = vmatpush.msra.mxu3 %v5291_v7 }
 0x951   : > { %v2618_v9 = vadd.f32 1e-05, %v2616_v8  ;;  %v5303_v8 = vld [vmem:[%s8372_s4 + $0x38] sm:$0xff] }
 0x952   : > { %2902 = vmatpush.msrb.mxu0 %v5303_v8  ;;  %2877 = vmatpush.msra.mxu3 %v5290_v10 }
 0x953   : > { %5786 = vrsqrt.f32 %v2618_v9  ;;  %vm2626_vm9 = vweird.f32 %v2618_v9 }
 0x954   : > { %2903 = vmatpush.msrb.mxu0 %v5302_v11 }
 0x956   : > { %v2615_v13 = vpop.xlane.xlu0 %2614 }
 0x957   : > { %v2617_v33 = vmul.f32 %v2615_v13, %v7778_v58  ;;  %v5289_v13 = vld [vmem:[%s8371_s3 + $0x28] sm:$0xff] }
 0x958   : > { %2878 = vmatpush.msra.mxu3 %v5289_v13 }
 0x959   : > { %v5787_v15 = vpop.eup %5786  ;;  %v2619_v16 = vadd.f32 1e-05, %v2617_v33  ;;  %v5301_v33 = vld [vmem:[%s8372_s4 + $0x28] sm:$0xff] }
 0x95a   : > { %v2621_v20 = vmul.f32 %v5787_v15, %v2618_v9  ;;  %vm2627_vm8 = vweird.f32 %v5787_v15  ;;  %v5298_v9 = vld [vmem:[%s8370_s18 + $0x30] sm:$0xff]  ;;  %2904 = vmatpush.msrb.mxu0 %v5301_v33 }
 0x95b   : > { %5788 = vrsqrt.f32 %v2619_v16  ;;  %vm2628_vm10 = vmor %vm2626_vm9, %vm2627_vm8  ;;  %vm2636_vm12 = vweird.f32 %v2619_v16  ;;  %2851 = vmatpush.msra.mxu2 %v5298_v9 }
 0x95c   : > { %v2622_v21 = vmul.f32 %v5787_v15, %v2621_v20 }
 0x95d   : > { %2852 = vmatpush.msra.mxu2 %v5297_v12 }
 0x95e   : > { %v2623_v22 = vmul.f32 0.5, %v2622_v21 }
 0x95f   : > { %2853 = vmatpush.msra.mxu2 %v5296_v14 }
 0x960   : > { %v2624_v23 = vsub.f32 1.5, %v2623_v22 }
 0x961   : > { %v5789_v24 = vpop.eup %5788 }
 0x962   : > { %v2625_v25 = vmul.f32 %v5787_v15, %v2624_v23  ;;  %v2631_v26 = vmul.f32 %v5789_v24, %v2619_v16  ;;  %vm2637_vm11 = vweird.f32 %v5789_v24  ;;  %v5300_v16 = vld [vmem:[%s8372_s4 + $0x20] sm:$0xff] }
 0x963   : > { %vm2638_vm13 = vmor %vm2636_vm12, %vm2637_vm11  ;;  %2905 = vmatpush.msrb.mxu0 %v5300_v16 }
 0x964   : > { %v2629_v28 = vsel %vm2628_vm10, %v5787_v15, %v2625_v25  ;;  %v2632_v32 = vmul.f32 %v5789_v24, %v2631_v26  ;;  %v5288_v15 = vld [vmem:[%s8371_s3 + $0x20] sm:$0xff] }
 0x965   : > { %v2640_v29 = vmul.f32 %v2629_v28, %v2606_v60  ;;  %2879 = vmatpush.msra.mxu3 %v5288_v15 }
 0x966   : > { %v2633_v31 = vmul.f32 0.5, %v2632_v32 }
 0x967   : > { %v2645_v34 = vmul.f32 %v5719_v27, %v2640_v29 }
 0x968   : > { %v2634_v35 = vsub.f32 1.5, %v2633_v31 }
 0x969   : > { %v2650_v36 = vadd.f32 %v5720_v30, %v2645_v34  ;;  %v5723_v34 = vld [vmem:[#allocation44] ss:$0 sm:$0xff] }
 0x96a   : > { %v2635_v37 = vmul.f32 %v5789_v24, %v2634_v35 }
 0x96b   : > { %5283 = vmatmul.msk.f32.vlgmr.msra.gmra.mxu0 %vm1987_vm2, %v2650_v36 }
 0x96c   : > { %v2639_v38 = vsel %vm2638_vm13, %v5789_v24, %v2635_v37 }
 0x96d   : > { %v2641_v39 = vmul.f32 %v2639_v38, %v2607_v0  ;;  %v5724_v38 = vld [vmem:[#allocation43] ss:$0 sm:$0xff] }
 0x96f   : > { %v2646_v40 = vmul.f32 %v5719_v27, %v2641_v39 }
 0x971   : > { %v2651_v41 = vadd.f32 %v5720_v30, %v2646_v40 }
 0x973   : > { %5284 = vmatmul.msk.f32.gmra.mxu0 %vm1987_vm2, %v2651_v41 }
 0x9e8   : > { %v2678_v46 = vpop.f32.mrf.mxu0 }
 0x9e9   : > { %v2679_v48 = vadd.f32 %v5721_v45, %v2678_v46 }
 0x9eb   : > { %v2684_v49 = vmax.f32 %v2679_v48, 0.0 }
 0x9ed   : > { %5285 = vmatmul.msk.f32.vlgmr.msrb.gmra.mxu1 %vm2689_vm14, %v2684_v49 }
 0x9f0   : > { %v2681_v51 = vpop.f32.mrf.mxu0 }
 0x9f1   : > { %v2682_v52 = vadd.f32 %v5721_v45, %v2681_v51  ;;  %v5726_v51 = vld [vmem:[#allocation34 + $0x1] ss:$0 sm:$0xff] }
 0x9f3   : > { %v2685_v53 = vmax.f32 %v2682_v52, 0.0  ;;  %v5727_v52 = vld [vmem:[%s8373_s13 + $0x1] ss:$0 sm:$0xff] }
 0x9f5   : > { %5286 = vmatmul.msk.f32.gmra.mxu1 %vm2689_vm14, %v2685_v53 }
 0xa6a   : > { %v2713_v47 = vpop.f32.mrf.mxu1 }
 0xa6b   : > { %v2714_v55 = vadd.f32 %v5722_v54, %v2713_v47 }
 0xa6d   : > { %v2719_v56 = vadd.f32 %v2714_v55, %v2650_v36 }
 0xa6f   : > { %v2721_v17 = vsel %vm1987_vm2, %v2719_v56, 0.0 }
 0xa70   : > { %2722 = vadd.xlane.f32.xlu2 %v2721_v17 }
 0xa72   : > { %v2716_v57 = vpop.f32.mrf.mxu1 }
 0xa73   : > { %v2717_v59 = vadd.f32 %v5722_v54, %v2716_v57 }
 0xa75   : > { %v2720_v50 = vadd.f32 %v2717_v59, %v2651_v41 }
 0xa77   : > { %v2724_v60 = vsel %vm2593_vm6, %v2720_v50, 0.0 }
 0xa78   : > { %2725 = vadd.xlane.f32.xlu0 %v2724_v60 }
 0xae3   : > { %v2723_v61 = vpop.xlane.xlu2 %2722 }
 0xae4   : > { %v2727_v19 = vmul.f32 %v2723_v61, %v7778_v58 }
 0xae6   : > { %v2729_v62 = vsub.f32 %v2719_v56, %v2727_v19  ;;  %v5725_v56 = vld [vmem:[#allocation35 + $0x1] ss:$0 sm:$0xff] }
 0xae8   : > { %v2731_v63 = vmul.f32 %v2729_v62, %v2729_v62 }
 0xaea   : > { %v2733_v0 = vsel %vm1987_vm2, %v2731_v63, 0.0 }
 0xaeb   : > { %2734 = vadd.xlane.f32.xlu1 %v2733_v0  ;;  %v2726_v1 = vpop.xlane.xlu0 %2725 }
 0xaec   : > { %v2728_v2 = vmul.f32 %v2726_v1, %v7778_v58 }
 0xaee   : > { %v7803_v3 = vsub.f32 %v2720_v50, %v2728_v2 }
 0xaf0   : > { %v2732_v4 = vmul.f32 %v7803_v3, %v7803_v3 }
 0xaf2   : > { %v2736_v5 = vsel %vm2593_vm6, %v2732_v4, 0.0 }
 0xaf3   : > { %2737 = vadd.xlane.f32.xlu2 %v2736_v5 }
 0xb5e   : > { %v2735_v18 = vpop.xlane.xlu1 %2734 }
 0xb5f   : > { %v2739_v20 = vmul.f32 %v2735_v18, %v7778_v58 }
 0xb61   : > { %v2741_v21 = vadd.f32 1e-05, %v2739_v20 }
 0xb63   : > { %5790 = vrsqrt.f32 %v2741_v21  ;;  %vm2749_vm7 = vweird.f32 %v2741_v21 }
 0xb66   : > { %v2738_v22 = vpop.xlane.xlu2 %2737 }
 0xb67   : > { %v2740_v23 = vmul.f32 %v2738_v22, %v7778_v58 }
 0xb69   : > { %v5791_v24 = vpop.eup %5790  ;;  %v2742_v25 = vadd.f32 1e-05, %v2740_v23 }
 0xb6a   : > { %v2744_v26 = vmul.f32 %v5791_v24, %v2741_v21  ;;  %vm2750_vm15 = vweird.f32 %v5791_v24 }
 0xb6b   : > { %5792 = vrsqrt.f32 %v2742_v25  ;;  %vm2751_vm8 = vmor %vm2749_vm7, %vm2750_vm15  ;;  %vm2759_vm10 = vweird.f32 %v2742_v25 }
 0xb6c   : > { %v2745_v27 = vmul.f32 %v5791_v24, %v2744_v26 }
 0xb6e   : > { %v2746_v28 = vmul.f32 0.5, %v2745_v27 }
 0xb70   : > { %v2747_v32 = vsub.f32 1.5, %v2746_v28 }
 0xb71   : > { %v5793_v29 = vpop.eup %5792 }
 0xb72   : > { %v2748_v30 = vmul.f32 %v5791_v24, %v2747_v32  ;;  %v2754_v31 = vmul.f32 %v5793_v29, %v2742_v25  ;;  %vm2760_vm9 = vweird.f32 %v5793_v29  ;;  %v5292_v25 = vld [vmem:[%s8374_s19 + $0x20] sm:$0xff] }
 0xb73   : > { %vm2761_vm11 = vmor %vm2759_vm10, %vm2760_vm9  ;;  %3025 = vmatpush.msrb.mxu3 %v5292_v25 }
 0xb74   : > { %v2752_v35 = vsel %vm2751_vm8, %v5791_v24, %v2748_v30  ;;  %v2755_v36 = vmul.f32 %v5793_v29, %v2754_v31 }
 0xb75   : > { %v2763_v37 = vmul.f32 %v2752_v35, %v2729_v62 }
 0xb76   : > { %v2756_v39 = vmul.f32 0.5, %v2755_v36 }
 0xb77   : > { %v2768_v40 = vmul.f32 %v5723_v34, %v2763_v37 }
 0xb78   : > { %v2757_v41 = vsub.f32 1.5, %v2756_v39 }
 0xb79   : > { %v7822_v42 = vadd.f32 %v5724_v38, %v2768_v40 }
 0xb7a   : > { %v2758_v43 = vmul.f32 %v5793_v29, %v2757_v41 }
 0xb7b   : > { %5312 = vmatmul.msk.f32.vlgmr.msra.gmra.mxu2 %vm1987_vm2, %v7822_v42  ;;  %5314 = vmatmul.msk.f32.vlgmr.msra.gmra.mxu3 %vm1987_vm2, %v7822_v42 }
 0xb7c   : > { %v2762_v44 = vsel %vm2761_vm11, %v5793_v29, %v2758_v43  ;;  %5316 = vmatmul.msk.f32.vlgmr.msrb.gmra.mxu0 %vm1987_vm2, %v7822_v42 }
 0xb7d   : > { %v2764_v45 = vmul.f32 %v2762_v44, %v7803_v3 }
 0xb7f   : > { %v2769_v46 = vmul.f32 %v5723_v34, %v2764_v45 }
 0xb81   : > { %v7831_v48 = vadd.f32 %v5724_v38, %v2769_v46 }
 0xb83   : > { %5313 = vmatmul.msk.f32.gmra.mxu2 %vm1987_vm2, %v7831_v48  ;;  %5315 = vmatmul.msk.f32.gmra.mxu3 %vm1987_vm2, %v7831_v48 }
 0xb84   : > { %5317 = vmatmul.msk.f32.gmra.mxu0 %vm1987_vm2, %v7831_v48 }
 0xbf9   : > { %v2907_v49 = vpop.f32.mrf.mxu0 }
 0xbfa   : > { %v7850_v59 = vadd.f32 %v5725_v56, %v2907_v49 }
 0xbfe   : > { %v2855_v53 = vpop.f32.mrf.mxu2  ;;  %v2881_v54 = vpop.f32.mrf.mxu3 }
 0xbff   : > { %v7840_v47 = vadd.f32 %v5726_v51, %v2855_v53  ;;  %v7842_v55 = vadd.f32 %v5727_v52, %v2881_v54 }
 0xc01   : > { %v2910_v17 = vpop.f32.mrf.mxu0  ;;  %3042 = vrot.lane.b32.xlu1 %v7842_v55, %s6889_s6  ;;  %3038 = vrot.lane.b32.xlu2 %v7840_v47, %s6889_s6 }
 0xc02   : > { %v7848_v57 = vadd.f32 %v5725_v56, %v2910_v17 }
 0xc04   : > { %5322 = vmatpush.msk.msrb.mxu2 %vm1919_vm0, %v7848_v57 }
 0xc06   : > { %2996 = vmatpush.msrb.mxu2 %v7850_v59  ;;  %v2884_v50 = vpop.f32.mrf.mxu3  ;;  %v2858_v61 = vpop.f32.mrf.mxu2 }
 0xc07   : > { %v7855_v60 = vadd.f32 %v5727_v52, %v2884_v50  ;;  %v2859_v19 = vadd.f32 %v5726_v51, %v2858_v61  ;;  %v5293_v51 = vld [vmem:[%s8374_s19 + $0x28] sm:$0xff] }
 0xc08   : > { %3159 = vmatpush.msra.mxu2 %v5293_v51 }
 0xc09   : > { %3044 = vrot.lane.b32.xlu0 %v7855_v60, %s6889_s6  ;;  %5318 = vmatpush.xpose.msk.msra.mxu1 %vm2069_vm3, %v7855_v60 }
 0xc0d   : > { %5319 = vmatpush.xpose.msk.msra.mxu1 %vm2069_vm3, %v7842_v55 }
 0xc10   : > { %5320 = vmatmul.msk.f32.vlgmr.msra.gmra.mxu1 %vm2069_vm3, %v7840_v47 }
 0xc11   : > { %3040 = vrot.lane.b32.xlu0 %v2859_v19, %s6889_s6 }
 0xc18   : > { %5321 = vmatmul.msk.f32.gmra.mxu1 %vm2069_vm3, %v2859_v19 }
 0xc5b   : > { %v3039_v0 = vpop.permute.xlu2 %3038 }
 0xc73   : > { %v3043_v63 = vpop.permute.xlu1 %3042 }
 0xc7b   : > { %v3045_v62 = vpop.permute.xlu0 %3044 }
 0xc7c   : > { %5327 = vmatpush.xpose.msk.msra.mxu0 %vm2069_vm3, %v3045_v62 }
 0xc80   : > { %5328 = vmatpush.xpose.msk.msra.mxu0 %vm2069_vm3, %v3043_v63 }
 0xc83   : > { %5329 = vmatmul.msk.f32.vlgmr.msra.gmra.mxu0 %vm2069_vm3, %v3039_v0  ;;  %v3041_v1 = vpop.permute.xlu0 %3040 }
 0xc8b   : > { %5330 = vmatmul.msk.f32.gmra.mxu0 %vm2069_vm3, %v3041_v1 }
 0xc8d   : > { %v2942_v2 = vpop.f32.mrf.mxu1 }
 0xc8e   : > { %v2948_v3 = vmul.f32 0.35355338, %v2942_v2 }
 0xc90   : > { %v2950_v4 = vsel %vm2107_vm4, %v2948_v3, -inf }
 0xc91   : > { %2951 = vmax.xlane.f32.xlu1 %v2950_v4 }
 0xc95   : > { %v2945_v5 = vpop.f32.mrf.mxu1 }
 0xc96   : > { %v2949_v6 = vmul.f32 0.35355338, %v2945_v5 }
 0xc98   : > { %v2953_v7 = vsel %vm2111_vm5, %v2949_v6, -inf }
 0xc99   : > { %2954 = vmax.xlane.f32.xlu2 %v2953_v7 }
 0xd00   : > { %v3071_v8 = vpop.f32.mrf.mxu0 }
 0xd01   : > { %v3077_v9 = vmul.f32 0.35355338, %v3071_v8  ;;  %v5728_v8 = vld [vmem:[#allocation32 + $0x1] ss:$0 sm:$0xff] }
 0xd03   : > { %v3079_v10 = vsel %vm2107_vm4, %v3077_v9, -inf }
 0xd04   : > { %3080 = vmax.xlane.f32.xlu0 %v3079_v10  ;;  %v2952_v11 = vpop.xlane.xlu1 %2951 }
 0xd05   : > { %v2956_v12 = vsub.f32 %v2948_v3, %v2952_v11 }
 0xd07   : > { %v2958_v13 = vmul.f32 1.442695, %v2956_v12 }
 0xd08   : > { %v3074_v33 = vpop.f32.mrf.mxu0 }
 0xd09   : > { %5794 = vpow2.f32 %v2958_v13  ;;  %v3078_v14 = vmul.f32 0.35355338, %v3074_v33 }
 0xd0b   : > { %v3082_v15 = vsel %vm2111_vm5, %v3078_v14, -inf }
 0xd0c   : > { %3083 = vmax.xlane.f32.xlu1 %v3082_v15  ;;  %v2955_v16 = vpop.xlane.xlu2 %2954 }
 0xd0d   : > { %v2957_v18 = vsub.f32 %v2949_v6, %v2955_v16 }
 0xd0f   : > { %v5795_v20 = vpop.eup %5794  ;;  %v2960_v21 = vmul.f32 1.442695, %v2957_v18 }
 0xd10   : > { %v2962_v22 = vsel %vm2107_vm4, %v5795_v20, 0.0 }
 0xd11   : > { %5796 = vpow2.f32 %v2960_v21  ;;  %2963 = vadd.xlane.f32.xlu2 %v2962_v22 }
 0xd17   : > { %v5797_v23 = vpop.eup %5796 }
 0xd18   : > { %v2965_v24 = vsel %vm2111_vm5, %v5797_v23, 0.0 }
 0xd19   : > { %2966 = vadd.xlane.f32.xlu1 %v2965_v24 }
 0xd29   : > { %3104 = vrot.lane.b32.xlu2 %v7848_v57, %s6889_s6 }
 0xd31   : > { %3175 = vrot.lane.b32.xlu2 %v7855_v60, %s8281_s20 }
 0xd32   : > { %3102 = vrot.lane.b32.xlu1 %v7850_v59, %s6889_s6 }
 0xd39   : > { %3299 = vrot.lane.b32.xlu2 %v7840_v47, %s6891_s2 }
 0xd3a   : > { %3173 = vrot.lane.b32.xlu1 %v7842_v55, %s8281_s20 }
 0xd41   : > { %3301 = vrot.lane.b32.xlu2 %v2859_v19, %s6891_s2 }
 0xd42   : > { %3171 = vrot.lane.b32.xlu1 %v2859_v19, %s8281_s20 }
 0xd77   : > { %v3081_v26 = vpop.xlane.xlu0 %3080 }
 0xd78   : > { %v3085_v27 = vsub.f32 %v3077_v9, %v3081_v26 }
 0xd7a   : > { %v3087_v28 = vmul.f32 1.442695, %v3085_v27 }
 0xd7c   : > { %5798 = vpow2.f32 %v3087_v28 }
 0xd7f   : > { %v3084_v32 = vpop.xlane.xlu1 %3083 }
 0xd80   : > { %v3086_v29 = vsub.f32 %v3078_v14, %v3084_v32 }
 0xd82   : > { %v5799_v30 = vpop.eup %5798  ;;  %v3089_v31 = vmul.f32 1.442695, %v3086_v29 }
 0xd83   : > { %v3091_v34 = vsel %vm2107_vm4, %v5799_v30, 0.0 }
 0xd84   : > { %5800 = vpow2.f32 %v3089_v31  ;;  %3092 = vadd.xlane.f32.xlu0 %v3091_v34  ;;  %v2964_v35 = vpop.xlane.xlu2 %2963 }
 0xd85   : > { %5802 = vrcp.f32 %v2964_v35 }
 0xd8a   : > { %v5801_v36 = vpop.eup %5800 }
 0xd8b   : > { %v5803_v37 = vpop.eup %5802  ;;  %v3094_v38 = vsel %vm2111_vm5, %v5801_v36, 0.0 }
 0xd8c   : > { %v2970_v39 = vmul.f32 %v5803_v37, %v5795_v20  ;;  %3095 = vadd.xlane.f32.xlu0 %v3094_v38  ;;  %v2967_v40 = vpop.xlane.xlu1 %2966  ;;  %v3105_v41 = vpop.permute.xlu2 %3104 }
 0xd8d   : > { %5804 = vrcp.f32 %v2967_v40  ;;  %5331 = vmatpush.msk.msrb.mxu1 %vm1919_vm0, %v3105_v41 }
 0xd8e   : > { %5323 = vmatmul.msk.f32.vlgmr.msrb.gmra.mxu2 %vm2107_vm4, %v2970_v39 }
 0xd93   : > { %v5805_v43 = vpop.eup %5804 }
 0xd94   : > { %v3176_v44 = vpop.permute.xlu2 %3175  ;;  %v2971_v45 = vmul.f32 %v5805_v43, %v5797_v23 }
 0xd95   : > { %5336 = vmatpush.xpose.msk.msra.mxu3 %vm2069_vm3, %v3176_v44 }
 0xd96   : > { %5324 = vmatmul.msk.f32.gmra.mxu2 %vm2107_vm4, %v2971_v45 }
 0xd9c   : > { %v3300_v1 = vpop.permute.xlu2 %3299 }
 0xda0   : > { %3305 = vrot.lane.b32.xlu0 %v7855_v60, %s6891_s2 }
 0xda4   : > { %v3103_v46 = vpop.permute.xlu1 %3102  ;;  %v3302_v3 = vpop.permute.xlu2 %3301 }
 0xda5   : > { %3130 = vmatpush.msrb.mxu1 %v3103_v46 }
 0xda8   : > { %3303 = vrot.lane.b32.xlu0 %v7842_v55, %s6891_s2 }
 0xdac   : > { %v3174_v49 = vpop.permute.xlu1 %3173 }
 0xdad   : > { %5337 = vmatpush.xpose.msk.msra.mxu3 %vm2069_vm3, %v3174_v49 }
 0xdb0   : > { %3169 = vrot.lane.b32.xlu0 %v7840_v47, %s8281_s20 }
 0xdb4   : > { %v3172_v62 = vpop.permute.xlu1 %3171 }
 0xdf7   : > { %v3093_v52 = vpop.xlane.xlu0 %3092 }
 0xdf8   : > { %5806 = vrcp.f32 %v3093_v52 }
 0xdfe   : > { %v5807_v53 = vpop.eup %5806 }
 0xdff   : > { %v3099_v54 = vmul.f32 %v5807_v53, %v5799_v30  ;;  %v3096_v56 = vpop.xlane.xlu0 %3095 }
 0xe00   : > { %5808 = vrcp.f32 %v3096_v56 }
 0xe01   : > { %5332 = vmatmul.msk.f32.vlgmr.msrb.gmra.mxu1 %vm2107_vm4, %v3099_v54 }
 0xe06   : > { %v5809_v17 = vpop.eup %5808 }
 0xe07   : > { %v3100_v50 = vmul.f32 %v5809_v17, %v5801_v36 }
 0xe09   : > { %5333 = vmatmul.msk.f32.gmra.mxu1 %vm2107_vm4, %v3100_v50 }
 0xe11   : > { %v2998_v55 = vpop.f32.mrf.mxu2 }
 0xe12   : > { %v3306_v60 = vpop.permute.xlu0 %3305  ;;  %5325 = vmatmul.msk.f32.vlgmr.msrb.gmra.mxu3 %vm2069_vm3, %v2998_v55 }
 0xe13   : > { %5345 = vmatpush.xpose.msk.msrb.mxu2 %vm2069_vm3, %v3306_v60 }
 0xe19   : > { %v3001_v47 = vpop.f32.mrf.mxu2 }
 0xe1a   : > { %v3304_v61 = vpop.permute.xlu0 %3303  ;;  %5326 = vmatmul.msk.f32.gmra.mxu3 %vm2069_vm3, %v3001_v47 }
 0xe1b   : > { %5346 = vmatpush.xpose.msk.msrb.mxu2 %vm2069_vm3, %v3304_v61 }
 0xe22   : > { %v3170_v19 = vpop.permute.xlu0 %3169 }
 0xe23   : > { %5338 = vmatmul.msk.f32.vlgmr.msra.gmra.mxu3 %vm2069_vm3, %v3170_v19 }
 0xe2b   : > { %5339 = vmatmul.msk.f32.gmra.mxu3 %vm2069_vm3, %v3172_v62 }
 0xe7e   : > { %v3132_v63 = vpop.f32.mrf.mxu1 }
 0xe7f   : > { %5334 = vmatmul.msk.f32.vlgmr.msra.gmra.mxu2 %vm2069_vm3, %v3132_v63  ;;  %v5295_v63 = vld [vmem:[%s8374_s19 + $0x38] sm:$0xff] }
 0xe86   : > { %v3135_v0 = vpop.f32.mrf.mxu1 }
 0xe87   : > { %5335 = vmatmul.msk.f32.gmra.mxu2 %vm2069_vm3, %v3135_v0  ;;  %v5294_v0 = vld [vmem:[%s8374_s19 + $0x30] sm:$0xff] }
 0xe88   : > { %3289 = vmatpush.msra.mxu1 %v5294_v0 }
 0xe8f   : > { %5347 = vmatmul.msk.f32.vlgmr.msrb.gmra.mxu2 %vm2069_vm3, %v3300_v1 }
 0xe95   : > { %v3027_v2 = vpop.f32.mrf.mxu3 }
 0xe96   : > { %v3036_v9 = vadd.f32 %v5728_v8, %v3027_v2 }
 0xe97   : > { %5348 = vmatmul.msk.f32.gmra.mxu2 %vm2069_vm3, %v3302_v3 }
 0xe9d   : > { %v3030_v4 = vpop.f32.mrf.mxu3 }
 0xe9e   : > { %v3037_v12 = vadd.f32 %v5728_v8, %v3030_v4 }
 0xea6   : > { %v3202_v5 = vpop.f32.mrf.mxu3 }
 0xea7   : > { %v3208_v6 = vmul.f32 0.35355338, %v3202_v5  ;;  %v3608_v5 = vld [vmem:[%s8376_s11] sm:$0xf]  ;;  %s8380_s11 = sld [smem:[#allocation73_spill]] }
 0xea9   : > { %v3210_v7 = vsel %vm2107_vm4, %v3208_v6, -inf }
 0xeaa   : > { %3211 = vmax.xlane.f32.xlu2 %v3210_v7 }
 0xeae   : > { %v3205_v18 = vpop.f32.mrf.mxu3 }
 0xeaf   : > { %v3209_v20 = vmul.f32 0.35355338, %v3205_v18 }
 0xeb1   : > { %v3213_v23 = vsel %vm2111_vm5, %v3209_v20, -inf }
 0xf02   : > { %v3161_v10 = vpop.f32.mrf.mxu2 }
 0xf03   : > { %v7917_v11 = vadd.f32 %v3161_v10, %v3036_v9 }
 0xf0a   : > { %v3164_v13 = vpop.f32.mrf.mxu2 }
 0xf0b   : > { %v7919_v33 = vadd.f32 %v3164_v13, %v3037_v12 }
 0xf12   : > { %v3332_v14 = vpop.f32.mrf.mxu2 }
 0xf13   : > { %v3338_v15 = vmul.f32 0.35355338, %v3332_v14 }
 0xf15   : > { %v3340_v16 = vsel %vm2107_vm4, %v3338_v15, -inf }
 0xf16   : > { %3341 = vmax.xlane.f32.xlu0 %v3340_v16 }
 0xf1a   : > { %v3335_v21 = vpop.f32.mrf.mxu2 }
 0xf1b   : > { %v3339_v22 = vmul.f32 0.35355338, %v3335_v21 }
 0xf1d   : > { %v3343_v24 = vsel %vm2111_vm5, %v3339_v22, -inf  ;;  %v3212_v25 = vpop.xlane.xlu2 %3211 }
 0xf1e   : > { %3214 = vmax.xlane.f32.xlu0 %v3213_v23  ;;  %3344 = vmax.xlane.f32.xlu1 %v3343_v24  ;;  %v3216_v26 = vsub.f32 %v3208_v6, %v3212_v25  ;;  %v3607_v6 = vld [vmem:[%s1904_s16] sm:$0xff]  ;;  %s8382_s16 = sld [smem:[#allocation72_spill]] }
 0xf1f   : > { %v3681_v23 = vld [vmem:[#allocation25 + $0x10] sm:$0xff]  ;;  %v3680_v24 = vld [vmem:[#allocation25 + $0x8] sm:$0xff] }
 0xf20   : > { %v3218_v27 = vmul.f32 1.442695, %v3216_v26  ;;  %v3672_v25 = vld [vmem:[#allocation22 + $0x8] sm:$0xff]  ;;  %v3679_v26 = vld [vmem:[#allocation25] sm:$0xff] }
 0xf22   : > { %5810 = vpow2.f32 %v3218_v27  ;;  %v5729_v27 = vld [vmem:[%s8377_s1] ss:$0 sm:$0xff]  ;;  %s8383_s1 = sld [smem:[#allocation75_spill]] }
 0xf28   : > { %v5811_v28 = vpop.eup %5810 }
 0xf29   : > { %v3222_v32 = vsel %vm2107_vm4, %v5811_v28, 0.0 }
 0xf32   : > { %3364 = vrot.lane.b32.xlu0 %v7848_v57, %s6891_s2 }
 0xf37   : > { %3362 = vrot.lane.b32.xlu1 %v7850_v59, %s6891_s2 }
 0xf61   : > { %3223 = vadd.xlane.f32.xlu1 %v3222_v32 }
 0xf7a   : > { %3232 = vrot.lane.b32.xlu1 %v7850_v59, %s8281_s20 }
 0xf89   : > { %v3342_v29 = vpop.xlane.xlu0 %3341 }
 0xf8a   : > { %v3346_v30 = vsub.f32 %v3338_v15, %v3342_v29 }
 0xf8c   : > { %v3348_v31 = vmul.f32 1.442695, %v3346_v30 }
 0xf8e   : > { %5812 = vpow2.f32 %v3348_v31 }
 0xf91   : > { %v3215_v34 = vpop.xlane.xlu0 %3214  ;;  %v3345_v35 = vpop.xlane.xlu1 %3344 }
 0xf92   : > { %v3217_v36 = vsub.f32 %v3209_v20, %v3215_v34  ;;  %v3347_v37 = vsub.f32 %v3339_v22, %v3345_v35  ;;  %v3682_v22 = vld [vmem:[#allocation25 + $0x18] sm:$0xff] }
 0xf94   : > { %v5813_v38 = vpop.eup %5812  ;;  %v3220_v39 = vmul.f32 1.442695, %v3217_v36  ;;  %v3350_v40 = vmul.f32 1.442695, %v3347_v37 }
 0xf95   : > { %v3352_v41 = vsel %vm2107_vm4, %v5813_v38, 0.0 }
 0xf96   : > { %5814 = vpow2.f32 %v3220_v39  ;;  %3353 = vadd.xlane.f32.xlu2 %v3352_v41  ;;  %v2818_v41 = vld [vmem:[#allocation46 + $0x30] sm:$0xff] }
 0xf97   : > { %5816 = vpow2.f32 %v3350_v40  ;;  %v2819_v40 = vld [vmem:[#allocation46 + $0x38] sm:$0xff] }
 0xf98   : > { %3506 = vmatpush.msrb.mxu1 %v2819_v40 }
 0xf9a   : > { %3507 = vmatpush.msrb.mxu1 %v2818_v41 }
 0xf9c   : > { %v5815_v43 = vpop.eup %5814 }
 0xf9d   : > { %v5817_v44 = vpop.eup %5816  ;;  %v3225_v59 = vsel %vm2111_vm5, %v5815_v43, 0.0 }
 0xf9e   : > { %3226 = vadd.xlane.f32.xlu0 %v3225_v59  ;;  %v3355_v45 = vsel %vm2111_vm5, %v5817_v44, 0.0 }
 0xf9f   : > { %3356 = vadd.xlane.f32.xlu2 %v3355_v45 }
 0xfa4   : > { %v3365_v46 = vpop.permute.xlu0 %3364 }
 0xfa5   : > { %5349 = vmatpush.msk.msrb.mxu3 %vm1919_vm0, %v3365_v46 }
 0xfa9   : > { %v3363_v49 = vpop.permute.xlu1 %3362 }
 0xfaa   : > { %3390 = vmatpush.msrb.mxu3 %v3363_v49  ;;  %v3686_v49 = vld [vmem:[#allocation26 + $0x18] sm:$0xff] }
 0xfac   : > { %5358 = vmatpush.msk.msra.mxu3 %vm1919_vm0, %v3608_v5 }
 0xfb7   : > { %3234 = vrot.lane.b32.xlu2 %v7848_v57, %s8281_s20 }
 0xfd4   : > { %v3224_v52 = vpop.xlane.xlu1 %3223 }
 0xfec   : > { %v3233_v61 = vpop.permute.xlu1 %3232 }
0x1009   : > { %v3354_v51 = vpop.xlane.xlu2 %3353 }
0x100a   : > { %5818 = vrcp.f32 %v3354_v51  ;;  %v3685_v51 = vld [vmem:[#allocation26 + $0x10] sm:$0xff] }
0x100b   : > { %5820 = vrcp.f32 %v3224_v52  ;;  %v3684_v52 = vld [vmem:[#allocation26 + $0x8] sm:$0xff] }
0x1010   : > { %v5819_v53 = vpop.eup %5818 }
0x1011   : > { %v3360_v54 = vmul.f32 %v5819_v53, %v5813_v38  ;;  %v5821_v17 = vpop.eup %5820  ;;  %v3227_v50 = vpop.xlane.xlu0 %3226 }
0x1012   : > { %v3357_v56 = vpop.xlane.xlu2 %3356  ;;  %v3230_v57 = vmul.f32 %v5821_v17, %v5811_v28 }
0x1013   : > { %5822 = vrcp.f32 %v3357_v56  ;;  %5350 = vmatmul.msk.f32.vlgmr.msrb.gmra.mxu3 %vm2107_vm4, %v3360_v54  ;;  %v3683_v56 = vld [vmem:[#allocation26] sm:$0xff] }
0x1014   : > { %5824 = vrcp.f32 %v3227_v50  ;;  %3717 = vmatpush.msrb.mxu3 %v3682_v22  ;;  %v5304_v22 = vld [vmem:[%s7136_s12 + $0x40] sm:$0xff] }
0x1016   : > { %3718 = vmatpush.msrb.mxu3 %v3681_v23 }
0x1018   : > { %3719 = vmatpush.msrb.mxu3 %v3680_v24 }
0x1019   : > { %v5823_v55 = vpop.eup %5822 }
0x101a   : > { %v3235_v60 = vpop.permute.xlu2 %3234  ;;  %v3361_v47 = vmul.f32 %v5823_v55, %v5817_v44  ;;  %v5825_v19 = vpop.eup %5824  ;;  %3720 = vmatpush.msrb.mxu3 %v3679_v26  ;;  %v2816_v44 = vld [vmem:[#allocation46 + $0x20] sm:$0xff] }
0x101b   : > { %5340 = vmatpush.msk.msrb.mxu0 %vm1919_vm0, %v3235_v60  ;;  %v3231_v62 = vmul.f32 %v5825_v19, %v5815_v43  ;;  %v2817_v43 = vld [vmem:[#allocation46 + $0x28] sm:$0xff]  ;;  %v5309_v19 = vld [vmem:[%s7136_s12 + $0x68] sm:$0xff] }
0x101c   : > { %5351 = vmatmul.msk.f32.gmra.mxu3 %vm2107_vm4, %v3361_v47  ;;  %3508 = vmatpush.msrb.mxu1 %v2817_v43  ;;  %v5311_v60 = vld [vmem:[%s7136_s12 + $0x78] sm:$0xff]  ;;  %v5310_v47 = vld [vmem:[%s7136_s12 + $0x70] sm:$0xff]  ;;  %v8023_v43 = vld [vmem:[#allocation38 + $0x1] ss:$0 sm:$0xff] }
0x101d   : > { %3260 = vmatpush.msrb.mxu0 %v3233_v61  ;;  %3536 = vmatpush.msra.mxu2 %v5311_v60 }
0x101e   : > { %5341 = vmatmul.msk.f32.vlgmr.msrb.gmra.mxu0 %vm2107_vm4, %v3230_v57  ;;  %3509 = vmatpush.msrb.mxu1 %v2816_v44 }
0x101f   : > { %3419 = vmatpush.msra.mxu0 %v5295_v63  ;;  %3537 = vmatpush.msra.mxu2 %v5310_v47 }
0x1021   : > { %3538 = vmatpush.msra.mxu2 %v5309_v19 }
0x1024   : > { %5359 = vmatmul.msk.f32.vlgmr.msra.gmra.mxu3 %vm1912_vm1, %v3607_v6 }
0x1026   : > { %5342 = vmatmul.msk.f32.gmra.mxu0 %vm2107_vm4, %v3231_v62  ;;  %v5732_v62 = vld [vmem:[#allocation19] ss:$0 sm:$0xff] }
0x1096   : > { %v3392_v1 = vpop.f32.mrf.mxu3 }
0x1097   : > { %5352 = vmatmul.msk.f32.vlgmr.msra.gmra.mxu0 %vm2069_vm3, %v3392_v1  ;;  %v5733_v1 = vld [vmem:[#allocation16] ss:$0 sm:$0xff] }
0x109b   : > { %v3262_v2 = vpop.f32.mrf.mxu0 }
0x109c   : > { %5343 = vmatmul.msk.f32.vlgmr.msra.gmra.mxu1 %vm2069_vm3, %v3262_v2  ;;  %v5308_v2 = vld [vmem:[%s7136_s12 + $0x60] sm:$0xff] }
0x109d   : > { %3763 = vmatpush.msra.mxu1 %v3686_v49  ;;  %3539 = vmatpush.msra.mxu2 %v5308_v2 }
0x109f   : > { %v3395_v3 = vpop.f32.mrf.mxu3  ;;  %3764 = vmatpush.msra.mxu1 %v3685_v51 }
0x10a0   : > { %5353 = vmatmul.msk.f32.gmra.mxu0 %vm2069_vm3, %v3395_v3 }
0x10a1   : > { %3765 = vmatpush.msra.mxu1 %v3684_v52 }
0x10a3   : > { %v3265_v4 = vpop.f32.mrf.mxu0  ;;  %3766 = vmatpush.msra.mxu1 %v3683_v56 }
0x10a4   : > { %5344 = vmatmul.msk.f32.gmra.mxu1 %vm2069_vm3, %v3265_v4 }
0x1114   : > { %v3421_v7 = vpop.f32.mrf.mxu0 }
0x1119   : > { %v3291_v8 = vpop.f32.mrf.mxu1 }
0x111a   : > { %v3297_v9 = vadd.f32 %v3291_v8, %v7917_v11  ;;  %v3674_v11 = vld [vmem:[#allocation22 + $0x18] sm:$0xff] }
0x111b   : > { %3740 = vmatpush.msrb.mxu0 %v3674_v11 }
0x111c   : > { %v3427_v10 = vadd.f32 %v3421_v7, %v3297_v9  ;;  %v5307_v7 = vld [vmem:[%s7136_s12 + $0x58] sm:$0xff] }
0x111d   : > { %v3424_v16 = vpop.f32.mrf.mxu0  ;;  %3540 = vmatpush.msra.mxu2 %v5307_v7 }
0x111e   : > { %v3429_v12 = vadd.f32 %v3427_v10, %v7822_v42  ;;  %v3673_v42 = vld [vmem:[#allocation22 + $0x10] sm:$0xff] }
0x111f   : > { %3741 = vmatpush.msrb.mxu0 %v3673_v42  ;;  %v5730_v10 = vld [vmem:[#allocation41 + $0x1] ss:$0 sm:$0xff] }
0x1120   : > { %v3431_v13 = vsel %vm1987_vm2, %v3429_v12, 0.0 }
0x1121   : > { %3432 = vadd.xlane.f32.xlu2 %v3431_v13  ;;  %v3294_v14 = vpop.f32.mrf.mxu1  ;;  %3742 = vmatpush.msrb.mxu0 %v3672_v25 }
0x1122   : > { %v3298_v15 = vadd.f32 %v3294_v14, %v7919_v33  ;;  %v3671_v33 = vld [vmem:[#allocation22] sm:$0xff] }
0x1123   : > { %3743 = vmatpush.msrb.mxu0 %v3671_v33 }
0x1124   : > { %v3428_v18 = vadd.f32 %v3424_v16, %v3298_v15  ;;  %v5731_v16 = vld [vmem:[#allocation40 + $0x1] ss:$0 sm:$0xff] }
0x1126   : > { %v3430_v20 = vadd.f32 %v3428_v18, %v7831_v48  ;;  %v3636_v48 = vpop.f32.mrf.mxu3  ;;  %v5305_v18 = vld [vmem:[%s7136_s12 + $0x48] sm:$0xff] }
0x1127   : > { %v7960_v28 = vadd.f32 %v5729_v27, %v3636_v48 }
0x1128   : > { %v3434_v21 = vsel %vm2593_vm6, %v3430_v20, 0.0 }
0x1129   : > { %3435 = vadd.xlane.f32.xlu1 %v3434_v21  ;;  %5360 = vmatmul.msk.f32.vlgmr.msrb.gmra.mxu3 %vm1987_vm2, %v7960_v28 }
0x112a   : > { %5361 = vmatmul.msk.f32.vlgmr.msrb.gmra.mxu0 %vm1987_vm2, %v7960_v28 }
0x1194   : > { %v3433_v32 = vpop.xlane.xlu2 %3432 }
0x1195   : > { %v3437_v29 = vmul.f32 %v3433_v32, %v7778_v58  ;;  %v5734_v32 = vld [vmem:[#allocation37 + $0x1] ss:$0 sm:$0xff] }
0x1197   : > { %v7967_v30 = vsub.f32 %v3429_v12, %v3437_v29  ;;  %v5306_v12 = vld [vmem:[%s7136_s12 + $0x50] sm:$0xff] }
0x1198   : > { %3541 = vmatpush.msra.mxu2 %v5306_v12 }
0x1199   : > { %v3441_v31 = vmul.f32 %v7967_v30, %v7967_v30 }
0x119a   : > { %3542 = vmatpush.msra.mxu2 %v5305_v18 }
0x119b   : > { %v3443_v34 = vsel %vm1987_vm2, %v3441_v31, 0.0 }
0x119c   : > { %3444 = vadd.xlane.f32.xlu0 %v3443_v34  ;;  %v3436_v35 = vpop.xlane.xlu1 %3435  ;;  %3543 = vmatpush.msra.mxu2 %v5304_v22  ;;  %v5737_v22 = vld [vmem:[#allocation17] ss:$0 sm:$0xff] }
0x119d   : > { %v3438_v36 = vmul.f32 %v3436_v35, %v7778_v58 }
0x119f   : > { %v7973_v37 = vsub.f32 %v3430_v20, %v3438_v36 }
0x11a1   : > { %v3442_v38 = vmul.f32 %v7973_v37, %v7973_v37 }
0x11a3   : > { %v3446_v39 = vsel %vm2593_vm6, %v3442_v38, 0.0 }
0x11a4   : > { %3447 = vadd.xlane.f32.xlu0 %v3446_v39 }
0x11a7   : > { %v3745_v63 = vpop.f32.mrf.mxu0 }
0x11a8   : > { %v7984_v5 = vadd.f32 %v5733_v1, %v3745_v63 }
0x11aa   : > { %3867 = vrot.lane.b32.xlu2 %v7984_v5, %s6889_s6  ;;  %5363 = vmatpush.xpose.msk.msrb.mxu2 %vm2069_vm3, %v7984_v5 }
0x11ac   : > { %v3722_v61 = vpop.f32.mrf.mxu3 }
0x11ad   : > { %v3723_v3 = vadd.f32 %v5732_v62, %v3722_v61 }
0x11b8   : > { %3865 = vrot.lane.b32.xlu0 %v3723_v3, %s6889_s6 }
0x1204   : > { %v3868_v27 = vpop.permute.xlu2 %3867 }
0x120f   : > { %v3445_v59 = vpop.xlane.xlu0 %3444 }
0x1210   : > { %v3449_v45 = vmul.f32 %v3445_v59, %v7778_v58  ;;  %v3798_v59 = vlaneseq }
0x1212   : > { %v3451_v46 = vadd.f32 1e-05, %v3449_v45  ;;  %v8030_v49 = vand.u32 127, %v3798_v59 }
0x1214   : > { %5826 = vrsqrt.f32 %v3451_v46  ;;  %vm3459_vm5 = vweird.f32 %v3451_v46 }
0x1217   : > { %v3448_v53 = vpop.xlane.xlu0 %3447 }
0x1218   : > { %v3450_v54 = vmul.f32 %v3448_v53, %v7778_v58 }
0x121a   : > { %v5827_v17 = vpop.eup %5826  ;;  %v3452_v50 = vadd.f32 1e-05, %v3450_v54 }
0x121b   : > { %v3454_v55 = vmul.f32 %v5827_v17, %v3451_v46  ;;  %vm3460_vm1 = vweird.f32 %v5827_v17  ;;  %v8028_v46 = vshrl.u32 %v3798_v59, 7 }
0x121c   : > { %5828 = vrsqrt.f32 %v3452_v50  ;;  %vm3461_vm12 = vmor %vm3459_vm5, %vm3460_vm1  ;;  %vm3469_vm15 = vweird.f32 %v3452_v50 }
0x121d   : > { %v3455_v57 = vmul.f32 %v5827_v17, %v3454_v55  ;;  %vm3802_vm8 = vcmp.le.s32.totalorder %v8030_v49, %v8028_v46 }
0x121f   : > { %v3456_v0 = vmul.f32 0.5, %v3455_v57 }
0x1221   : > { %v3457_v4 = vsub.f32 1.5, %v3456_v0 }
0x1222   : > { %v5829_v6 = vpop.eup %5828 }
0x1223   : > { %v3458_v8 = vmul.f32 %v5827_v17, %v3457_v4  ;;  %v3464_v9 = vmul.f32 %v5829_v6, %v3452_v50  ;;  %vm3470_vm13 = vweird.f32 %v5829_v6  ;;  %v3675_v4 = vld [vmem:[#allocation23] sm:$0xff] }
0x1224   : > { %vm3471_vm7 = vmor %vm3469_vm15, %vm3470_vm13  ;;  %3856 = vmatpush.msra.mxu0 %v3675_v4 }
0x1225   : > { %v3462_v13 = vsel %vm3461_vm12, %v5827_v17, %v3458_v8  ;;  %v3465_v14 = vmul.f32 %v5829_v6, %v3464_v9 }
0x1226   : > { %v3473_v15 = vmul.f32 %v3462_v13, %v7967_v30 }
0x1227   : > { %v3466_v20 = vmul.f32 0.5, %v3465_v14 }
0x1228   : > { %v3478_v21 = vmul.f32 %v5730_v10, %v3473_v15 }
0x1229   : > { %v3467_v23 = vsub.f32 1.5, %v3466_v20 }
0x122a   : > { %v7994_v11 = vadd.f32 %v5731_v16, %v3478_v21  ;;  %v3866_v48 = vpop.permute.xlu0 %3865 }
0x122b   : > { %v3468_v24 = vmul.f32 %v5829_v6, %v3467_v23 }
0x122c   : > { %5354 = vmatmul.msk.f32.vlgmr.msrb.gmra.mxu1 %vm1987_vm2, %v7994_v11 }
0x122d   : > { %v3472_v42 = vsel %vm3471_vm7, %v5829_v6, %v3468_v24  ;;  %5367 = vmatpush.xpose.msk.msrb.mxu1 %vm2069_vm3, %v3868_v27 }
0x122e   : > { %v3474_v25 = vmul.f32 %v3472_v42, %v7973_v37  ;;  %v5735_v37 = vld [vmem:[#allocation20] ss:$0 sm:$0xff] }
0x1230   : > { %v3479_v26 = vmul.f32 %v5730_v10, %v3474_v25 }
0x1232   : > { %v8001_v33 = vadd.f32 %v5731_v16, %v3479_v26 }
0x1234   : > { %5355 = vmatmul.msk.f32.gmra.mxu1 %vm1987_vm2, %v8001_v33 }
0x123c   : > { %5362 = vmatmul.msk.f32.vlgmr.msra.gmra.mxu1 %vm1987_vm2, %v7960_v28 }
0x1244   : > { %5368 = vmatmul.msk.f32.vlgmr.msrb.gmra.mxu1 %vm2069_vm3, %v3866_v48 }
0x12a9   : > { %v3511_v29 = vpop.f32.mrf.mxu1 }
0x12aa   : > { %v3512_v30 = vadd.f32 %v5734_v32, %v3511_v29 }
0x12ac   : > { %v3517_v31 = vmax.f32 %v3512_v30, 0.0 }
0x12ae   : > { %5356 = vmatmul.msk.f32.vlgmr.msra.gmra.mxu2 %vm2689_vm14, %v3517_v31 }
0x12b1   : > { %v3514_v34 = vpop.f32.mrf.mxu1 }
0x12b2   : > { %v3515_v35 = vadd.f32 %v5734_v32, %v3514_v34 }
0x12b4   : > { %v3518_v36 = vmax.f32 %v3515_v35, 0.0 }
0x12b6   : > { %5357 = vmatmul.msk.f32.gmra.mxu2 %vm2689_vm14, %v3518_v36 }
0x12b9   : > { %v3768_v38 = vpop.f32.mrf.mxu1 }
0x12ba   : > { %v8011_v39 = vadd.f32 %v5735_v37, %v3768_v38 }
0x12bc   : > { %3907 = vrot.lane.b32.xlu2 %v8011_v39, %s6889_s6  ;;  %3833 = vmatpush.msra.mxu3 %v8011_v39 }
0x12be   : > { %5364 = vmatmul.msk.f32.vlgmr.msrb.gmra.mxu2 %vm2069_vm3, %v3723_v3 }
0x12c1   : > { %v3890_v52 = vpop.f32.mrf.mxu1 }
0x12c2   : > { %v3893_v56 = vmul.f32 0.35355338, %v3890_v52 }
0x12c4   : > { %4050 = vrot.lane.b32.xlu2 %v7984_v5, %s6891_s2  ;;  %v3894_v50 = vsel %vm3802_vm8, %v3893_v56, -1e+09 }
0x12c5   : > { %v3895_v55 = vsel %vm2069_vm3, %v3894_v50, -inf }
0x12cc   : > { %3957 = vrot.lane.b32.xlu2 %v3723_v3, %s8281_s20 }
0x12d4   : > { %4048 = vrot.lane.b32.xlu2 %v3723_v3, %s6891_s2  ;;  %v3676_v3 = vld [vmem:[#allocation23 + $0x8] sm:$0xff] }
0x12d5   : > { %3951 = vmatpush.msrb.mxu3 %v3676_v3 }
0x1316   : > { %v3908_v40 = vpop.permute.xlu2 %3907 }
0x1317   : > { %3928 = vmatpush.msra.mxu2 %v3908_v40 }
0x131e   : > { %v4051_v10 = vpop.permute.xlu2 %4050 }
0x1326   : > { %v3958_v15 = vpop.permute.xlu2 %3957 }
0x132e   : > { %v4049_v18 = vpop.permute.xlu2 %4048 }
0x1331   : > { %v8021_v41 = vpop.f32.mrf.mxu2 }
0x1332   : > { %v3546_v30 = vadd.f32 %v8023_v43, %v8021_v41 }
0x1334   : > { %v3551_v34 = vadd.f32 %v3546_v30, %v7994_v11 }
0x1336   : > { %v3553_v35 = vsel %vm1987_vm2, %v3551_v34, 0.0 }
0x1339   : > { %v3548_v44 = vpop.f32.mrf.mxu2 }
0x133a   : > { %v8026_v45 = vadd.f32 %v8023_v43, %v3548_v44 }
0x1341   : > { %v3794_v51 = vpop.f32.mrf.mxu2 }
0x1342   : > { %v3797_v53 = vmul.f32 0.35355338, %v3794_v51  ;;  %v3552_v51 = vadd.f32 %v8026_v45, %v8001_v33 }
0x1344   : > { %v3803_v54 = vsel %vm3802_vm8, %v3797_v53, -1e+09  ;;  %v3556_v52 = vsel %vm2593_vm6, %v3552_v51, 0.0 }
0x1345   : > { %v3804_v17 = vsel %vm2069_vm3, %v3803_v54, -inf }
0x1346   : > { %3805 = vmax.xlane.f32.xlu1 %v3804_v17 }
0x134e   : > { %3896 = vmax.xlane.f32.xlu1 %v3895_v55 }
0x13b9   : > { %v3806_v60 = vpop.xlane.xlu1 %3805 }
0x13ba   : > { %v3807_v47 = vsub.f32 %v3803_v54, %v3806_v60 }
0x13bc   : > { %v3808_v57 = vmul.f32 1.442695, %v3807_v47 }
0x13be   : > { %5830 = vpow2.f32 %v3808_v57 }
0x13c1   : > { %v3897_v61 = vpop.xlane.xlu1 %3896 }
0x13c2   : > { %v3898_v19 = vsub.f32 %v3894_v50, %v3897_v61  ;;  %v3678_v61 = vld [vmem:[#allocation23 + $0x18] sm:$0xff] }
0x13c4   : > { %v5831_v62 = vpop.eup %5830  ;;  %v3899_v63 = vmul.f32 1.442695, %v3898_v19  ;;  %v3677_v19 = vld [vmem:[#allocation23 + $0x10] sm:$0xff] }
0x13c5   : > { %v3810_v0 = vsel %vm2069_vm3, %v5831_v62, 0.0  ;;  %4042 = vmatpush.msrb.mxu2 %v3677_v19 }
0x13c6   : > { %5832 = vpow2.f32 %v3899_v63  ;;  %3811 = vadd.xlane.f32.xlu1 %v3810_v0 }
0x13cc   : > { %v5833_v1 = vpop.eup %5832 }
0x13cd   : > { %v3901_v2 = vsel %vm2069_vm3, %v5833_v1, 0.0 }
0x13ce   : > { %3902 = vadd.xlane.f32.xlu0 %v3901_v2 }
0x13df   : > { %3959 = vrot.lane.b32.xlu1 %v7984_v5, %s8281_s20 }
0x1439   : > { %v3812_v6 = vpop.xlane.xlu1 %3811 }
0x143a   : > { %5834 = vrcp.f32 %v3812_v6 }
0x1440   : > { %v5835_v7 = vpop.eup %5834 }
0x1441   : > { %v3814_v8 = vmul.f32 %v5835_v7, %v5831_v62  ;;  %v3903_v9 = vpop.xlane.xlu0 %3902 }
0x1442   : > { %5836 = vrcp.f32 %v3903_v9 }
0x1443   : > { %5365 = vmatmul.msk.f32.vlgmr.msra.gmra.mxu3 %vm2069_vm3, %v3814_v8 }
0x1444   : > { %5375 = vmatpush.xpose.msk.msra.mxu3 %vm2069_vm3, %v4051_v10 }
0x1448   : > { %v5837_v12 = vpop.eup %5836 }
0x1449   : > { %v3905_v13 = vmul.f32 %v5837_v12, %v5833_v1 }
0x144b   : > { %5369 = vmatmul.msk.f32.vlgmr.msra.gmra.mxu2 %vm2069_vm3, %v3905_v13 }
0x1451   : > { %v3960_v5 = vpop.permute.xlu1 %3959 }
0x1452   : > { %5371 = vmatpush.xpose.msk.msrb.mxu0 %vm2069_vm3, %v3960_v5 }
0x14c6   : > { %v3835_v14 = vpop.f32.mrf.mxu3 }
0x14c7   : > { %5366 = vmatmul.msk.f32.vlgmr.msra.gmra.mxu0 %vm2069_vm3, %v3835_v14  ;;  %v3648_v14 = vld [vmem:[%s8378_s28 + $0x18] sm:$0xff]  ;;  %s8385_s28 = smov 112  }
0x14ce   : > { %v3930_v16 = vpop.f32.mrf.mxu2 }
0x14cf   : > { %5370 = vmatmul.msk.f32.vlgmr.msrb.gmra.mxu3 %vm2069_vm3, %v3930_v16  ;;  %5372 = vmatmul.msk.f32.vlgmr.msrb.gmra.mxu0 %vm2069_vm3, %v3958_v15  ;;  %v3660_v15 = vld [vmem:[#allocation5 + $0x18] sm:$0xff] }
0x14d0   : > { %4217 = vmatpush.msrb.mxu3 %v3648_v14 }
0x14d7   : > { %5376 = vmatmul.msk.f32.vlgmr.msra.gmra.mxu3 %vm2069_vm3, %v4049_v18 }
0x1544   : > { %v3858_v20 = vpop.f32.mrf.mxu0 }
0x1545   : > { %v3864_v25 = vadd.f32 %v5737_v22, %v3858_v20  ;;  %v3659_v20 = vld [vmem:[#allocation5 + $0x10] sm:$0xff]  ;;  %v3646_v22 = vld [vmem:[%s8379_s15 + $0x8] sm:$0xff] }
0x154c   : > { %v3982_v21 = vpop.f32.mrf.mxu0 }
0x154d   : > { %v3985_v23 = vmul.f32 0.35355338, %v3982_v21 }
0x154f   : > { %v3986_v24 = vsel %vm3802_vm8, %v3985_v23, -1e+09  ;;  %v3658_v23 = vld [vmem:[#allocation5 + $0x8] sm:$0xff] }
0x1550   : > { %v3987_v42 = vsel %vm2069_vm3, %v3986_v24, -inf }
0x1551   : > { %3988 = vmax.xlane.f32.xlu1 %v3987_v42  ;;  %v3657_v42 = vld [vmem:[#allocation5] sm:$0xff] }
0x1552   : > { %v3953_v26 = vpop.f32.mrf.mxu3 }
0x1553   : > { %v3956_v27 = vadd.f32 %v3953_v26, %v3864_v25 }
0x155a   : > { %v4073_v48 = vpop.f32.mrf.mxu3 }
0x155b   : > { %v4076_v32 = vmul.f32 0.35355338, %v4073_v48 }
0x155d   : > { %v4077_v29 = vsel %vm3802_vm8, %v4076_v32, -1e+09 }
0x155e   : > { %v4078_v31 = vsel %vm2069_vm3, %v4077_v29, -inf }
0x155f   : > { %4079 = vmax.xlane.f32.xlu2 %v4078_v31 }
0x1567   : > { %3554 = vadd.xlane.f32.xlu2 %v3553_v35 }
0x156a   : > { %4089 = vrot.lane.b32.xlu1 %v8011_v39, %s6891_s2 }
0x15c4   : > { %v3989_v36 = vpop.xlane.xlu1 %3988 }
0x15c5   : > { %v3990_v40 = vsub.f32 %v3986_v24, %v3989_v36  ;;  %v3645_v24 = vld [vmem:[%s8379_s15] sm:$0xff] }
0x15c7   : > { %v3991_v59 = vmul.f32 1.442695, %v3990_v40 }
0x15d2   : > { %v4080_v37 = vpop.xlane.xlu2 %4079 }
0x15d3   : > { %v4081_v38 = vsub.f32 %v4077_v29, %v4080_v37 }
0x15d5   : > { %v4082_v44 = vmul.f32 1.442695, %v4081_v38 }
0x15d7   : > { %5838 = vpow2.f32 %v4082_v44 }
0x15d8   : > { %5840 = vpow2.f32 %v3991_v59 }
0x15da   : > { %v3555_v0 = vpop.xlane.xlu2 %3554 }
0x15db   : > { %v3559_v4 = vmul.f32 %v3555_v0, %v7778_v58 }
0x15dc   : > { %v4090_v46 = vpop.permute.xlu1 %4089 }
0x15dd   : > { %v5839_v41 = vpop.eup %5838  ;;  %4110 = vmatpush.msra.mxu0 %v4090_v46  ;;  %v3561_v8 = vsub.f32 %v3551_v34, %v3559_v4 }
0x15de   : > { %v4084_v43 = vsel %vm2069_vm3, %v5839_v41, 0.0  ;;  %v5841_v11 = vpop.eup %5840 }
0x15df   : > { %4085 = vadd.xlane.f32.xlu0 %v4084_v43  ;;  %v3993_v49 = vsel %vm2069_vm3, %v5841_v11, 0.0  ;;  %v3563_v10 = vmul.f32 %v3561_v8, %v3561_v8  ;;  %4243 = vmatpush.msrb.mxu0 %v3660_v15  ;;  %v5743_v15 = vld [vmem:[%s8381_s26] ss:$0 sm:$0xff]  ;;  %s8389_s26 = sld [smem:[#allocation68_spill]] }
0x15e1   : > { %v3565_v12 = vsel %vm1987_vm2, %v3563_v10, 0.0  ;;  %4244 = vmatpush.msrb.mxu0 %v3659_v20  ;;  %v5744_v20 = vld [vmem:[%s8382_s16] ss:$0 sm:$0xff]  ;;  %s8390_s16 = sld [smem:[#allocation69_spill]] }
0x15e3   : > { %4245 = vmatpush.msrb.mxu0 %v3658_v23 }
0x15e5   : > { %4246 = vmatpush.msrb.mxu0 %v3657_v42 }
0x15e7   : > { %3994 = vadd.xlane.f32.xlu0 %v3993_v49 }
0x15fb   : > { %3998 = vrot.lane.b32.xlu0 %v8011_v39, %s8281_s20  ;;  %s8384_s20 = smov %s8383_s1 }
0x15fc   : > { %v3650_v42 = vld [vmem:[%s8384_s20 + $0x8] sm:$0xff] }
0x1625   : > { %3557 = vadd.xlane.f32.xlu0 %v3556_v52 }
0x1652   : > { %v4086_v53 = vpop.xlane.xlu0 %4085 }
0x1653   : > { %5842 = vrcp.f32 %v4086_v53  ;;  %v5739_v53 = vld [vmem:[#allocation43 + $0x1] ss:$0 sm:$0xff] }
0x1659   : > { %v5843_v54 = vpop.eup %5842 }
0x165a   : > { %v4088_v56 = vmul.f32 %v5843_v54, %v5839_v41  ;;  %v3995_v17 = vpop.xlane.xlu0 %3994 }
0x165b   : > { %5844 = vrcp.f32 %v3995_v17 }
0x165c   : > { %5377 = vmatmul.msk.f32.vlgmr.msra.gmra.mxu0 %vm2069_vm3, %v4088_v56 }
0x165d   : > { %4441 = vmatpush.msra.mxu0 %v3650_v42 }
0x1661   : > { %v5845_v50 = vpop.eup %5844 }
0x1662   : > { %v3997_v55 = vmul.f32 %v5845_v50, %v5841_v11  ;;  %v5738_v11 = vld [vmem:[#allocation44 + $0x1] ss:$0 sm:$0xff] }
0x166d   : > { %v3999_v60 = vpop.permute.xlu0 %3998 }
0x166e   : > { %4019 = vmatpush.msra.mxu1 %v3999_v60  ;;  %v3655_v60 = vld [vmem:[#allocation2 + $0x10] sm:$0xff] }
0x166f   : > { %5373 = vmatmul.msk.f32.vlgmr.msra.gmra.mxu1 %vm2069_vm3, %v3997_v55  ;;  %v3656_v55 = vld [vmem:[#allocation2 + $0x18] sm:$0xff] }
0x1670   : > { %4133 = vmatpush.msrb.mxu1 %v3678_v61  ;;  %4188 = vmatpush.msra.mxu2 %v3656_v55 }
0x1672   : > { %4189 = vmatpush.msra.mxu2 %v3655_v60 }
0x1698   : > { %v3558_v39 = vpop.xlane.xlu0 %3557 }
0x1699   : > { %v3560_v33 = vmul.f32 %v3558_v39, %v7778_v58  ;;  %v3654_v39 = vld [vmem:[#allocation2 + $0x8] sm:$0xff] }
0x169a   : > { %4190 = vmatpush.msra.mxu2 %v3654_v39 }
0x169b   : > { %v8078_v45 = vsub.f32 %v3552_v51, %v3560_v33  ;;  %v3653_v33 = vld [vmem:[#allocation2] sm:$0xff] }
0x169c   : > { %4191 = vmatpush.msra.mxu2 %v3653_v33 }
0x169d   : > { %v3564_v47 = vmul.f32 %v8078_v45, %v8078_v45 }
0x169f   : > { %v3568_v57 = vsel %vm2593_vm6, %v3564_v47, 0.0 }
0x16a0   : > { %3569 = vadd.xlane.f32.xlu1 %v3568_v57 }
0x16d9   : > { %v4112_v62 = vpop.f32.mrf.mxu0 }
0x16da   : > { %5378 = vmatmul.msk.f32.vlgmr.msrb.gmra.mxu1 %vm2069_vm3, %v4112_v62 }
0x16ec   : > { %v4021_v63 = vpop.f32.mrf.mxu1 }
0x16ed   : > { %5374 = vmatmul.msk.f32.vlgmr.msrb.gmra.mxu2 %vm2069_vm3, %v4021_v63 }
0x1713   : > { %v3570_v13 = vpop.xlane.xlu1 %3569 }
0x1714   : > { %v3572_v5 = vmul.f32 %v3570_v13, %v7778_v58 }
0x1716   : > { %v3574_v16 = vadd.f32 1e-05, %v3572_v5 }
0x1718   : > { %5846 = vrsqrt.f32 %v3574_v16  ;;  %vm3591_vm1 = vweird.f32 %v3574_v16 }
0x171e   : > { %v5847_v32 = vpop.eup %5846 }
0x171f   : > { %v3586_v31 = vmul.f32 %v5847_v32, %v3574_v16  ;;  %vm3592_vm9 = vweird.f32 %v5847_v32 }
0x1720   : > { %vm3593_vm5 = vmor %vm3591_vm1, %vm3592_vm9 }
0x1721   : > { %v3587_v34 = vmul.f32 %v5847_v32, %v3586_v31 }
0x1723   : > { %v3588_v36 = vmul.f32 0.5, %v3587_v34 }
0x1725   : > { %v3589_v40 = vsub.f32 1.5, %v3588_v36 }
0x1727   : > { %v3590_v46 = vmul.f32 %v5847_v32, %v3589_v40 }
0x1729   : > { %v3594_v51 = vsel %vm3593_vm5, %v5847_v32, %v3590_v46 }
0x172a   : > { %v3596_v56 = vmul.f32 %v3594_v51, %v8078_v45 }
0x172c   : > { %v3601_v17 = vmul.f32 %v5738_v11, %v3596_v56 }
0x172e   : > { %v3606_v50 = vadd.f32 %v5739_v53, %v3601_v17 }
0x1757   : > { %v4135_v3 = vpop.f32.mrf.mxu1 }
0x1770   : > { %v4044_v1 = vpop.f32.mrf.mxu2 }
0x1771   : > { %v4047_v2 = vadd.f32 %v4044_v1, %v3956_v27 }
0x1773   : > { %v4138_v6 = vadd.f32 %v4135_v3, %v4047_v2  ;;  %v5740_v2 = vld [vmem:[#allocation8] ss:$0 sm:$0xff] }
0x1775   : > { %v4139_v7 = vadd.f32 %v4138_v6, %v7960_v28  ;;  %v3647_v28 = vld [vmem:[%s8379_s15 + $0x10] sm:$0xff]  ;;  %v5741_v6 = vld [vmem:[#allocation7] ss:$0 sm:$0xff] }
0x1776   : > { %4218 = vmatpush.msrb.mxu3 %v3647_v28 }
0x1777   : > { %v4140_v9 = vsel %vm1987_vm2, %v4139_v7, 0.0 }
0x1778   : > { %4141 = vadd.xlane.f32.xlu2 %v4140_v9  ;;  %4219 = vmatpush.msrb.mxu3 %v3646_v22 }
0x177a   : > { %4220 = vmatpush.msrb.mxu3 %v3645_v24  ;;  %v3649_v24 = vld [vmem:[%s8383_s1] sm:$0xff]  ;;  %s1893_s1 = sand.u32 1, %s6798_s0  }
0x1780   : > { %3566 = vadd.xlane.f32.xlu2 %v3565_v12  ;;  %v5742_v12 = vld [vmem:[%s8380_s11] ss:$0 sm:$0xff] }
0x17eb   : > { %v4142_v18 = vpop.xlane.xlu2 %4141 }
0x17ec   : > { %v4143_v21 = vmul.f32 %v4142_v18, %v7778_v58 }
0x17ee   : > { %v8095_v25 = vsub.f32 %v4139_v7, %v4143_v21 }
0x17f0   : > { %v4145_v26 = vmul.f32 %v8095_v25, %v8095_v25 }
0x17f2   : > { %v4146_v27 = vsel %vm1987_vm2, %v4145_v26, 0.0 }
0x17f3   : > { %4147 = vadd.xlane.f32.xlu2 %v4146_v27  ;;  %v3567_v48 = vpop.xlane.xlu2 %3566 }
0x17f4   : > { %v3571_v29 = vmul.f32 %v3567_v48, %v7778_v58 }
0x17f6   : > { %v3573_v30 = vadd.f32 1e-05, %v3571_v29 }
0x17f8   : > { %5848 = vrsqrt.f32 %v3573_v30  ;;  %vm3581_vm10 = vweird.f32 %v3573_v30 }
0x17fe   : > { %v5849_v35 = vpop.eup %5848 }
0x17ff   : > { %v3576_v37 = vmul.f32 %v5849_v35, %v3573_v30  ;;  %vm3582_vm6 = vweird.f32 %v5849_v35 }
0x1800   : > { %vm3583_vm11 = vmor %vm3581_vm10, %vm3582_vm6 }
0x1801   : > { %v3577_v38 = vmul.f32 %v5849_v35, %v3576_v37 }
0x1803   : > { %v3578_v44 = vmul.f32 0.5, %v3577_v38 }
0x1805   : > { %v3579_v59 = vsub.f32 1.5, %v3578_v44 }
0x1807   : > { %v3580_v41 = vmul.f32 %v5849_v35, %v3579_v59 }
0x1809   : > { %v3584_v43 = vsel %vm3583_vm11, %v5849_v35, %v3580_v41 }
0x180a   : > { %v3595_v49 = vmul.f32 %v3584_v43, %v3561_v8 }
0x180c   : > { %v3600_v52 = vmul.f32 %v5738_v11, %v3595_v49 }
0x180e   : > { %v3605_v54 = vadd.f32 %v5739_v53, %v3600_v52 }
0x1810   : > { %5380 = vmatmul.msk.f32.vlgmr.msrb.gmra.mxu3 %vm1987_vm2, %v3605_v54  ;;  %5382 = vmatmul.msk.f32.vlgmr.msrb.gmra.mxu0 %vm1987_vm2, %v3605_v54 }
0x1818   : > { %5381 = vmatmul.msk.f32.gmra.mxu3 %vm1987_vm2, %v3606_v50  ;;  %5383 = vmatmul.msk.f32.gmra.mxu0 %vm1987_vm2, %v3606_v50 }
0x1866   : > { %v4148_v47 = vpop.xlane.xlu2 %4147 }
0x1867   : > { %v4149_v45 = vmul.f32 %v4148_v47, %v7778_v58 }
0x1869   : > { %v4150_v57 = vadd.f32 1e-05, %v4149_v45 }
0x186b   : > { %5850 = vrsqrt.f32 %v4150_v57  ;;  %vm4157_vm13 = vweird.f32 %v4150_v57 }
0x1871   : > { %v5851_v61 = vpop.eup %5850 }
0x1872   : > { %v4152_v19 = vmul.f32 %v5851_v61, %v4150_v57  ;;  %vm4158_vm12 = vweird.f32 %v5851_v61 }
0x1873   : > { %vm4159_vm15 = vmor %vm4157_vm13, %vm4158_vm12 }
0x1874   : > { %v4153_v62 = vmul.f32 %v5851_v61, %v4152_v19 }
0x1876   : > { %v4154_v63 = vmul.f32 0.5, %v4153_v62 }
0x1878   : > { %v4155_v0 = vsub.f32 1.5, %v4154_v63 }
0x187a   : > { %v4156_v1 = vmul.f32 %v5851_v61, %v4155_v0 }
0x187c   : > { %v4160_v3 = vsel %vm4159_vm15, %v5851_v61, %v4156_v1 }
0x187d   : > { %v4161_v4 = vmul.f32 %v4160_v3, %v8095_v25 }
0x187f   : > { %v4165_v7 = vmul.f32 %v5740_v2, %v4161_v4 }
0x1881   : > { %v8108_v8 = vadd.f32 %v5741_v6, %v4165_v7 }
0x1883   : > { %5379 = vmatmul.msk.f32.vlgmr.msra.gmra.mxu2 %vm1987_vm2, %v8108_v8 }
0x188d   : > { %v4248_v9 = vpop.f32.mrf.mxu0 }
0x188e   : > { %v8115_v14 = vadd.f32 %v5742_v12, %v4248_v9 }
0x1893   : > { %v4222_v10 = vpop.f32.mrf.mxu3 }
0x1894   : > { %v4223_v28 = vadd.f32 %v5743_v15, %v4222_v10 }
0x1895   : > { %v4251_v13 = vpop.f32.mrf.mxu0 }
0x1896   : > { %v8113_v5 = vadd.f32 %v5742_v12, %v4251_v13 }
0x1898   : > { %5387 = vmatpush.msk.msrb.mxu2 %vm1919_vm0, %v8113_v5 }
0x189a   : > { %4316 = vmatpush.msrb.mxu2 %v8115_v14 }
0x189b   : > { %v4225_v16 = vpop.f32.mrf.mxu3 }
0x189c   : > { %v4226_v18 = vadd.f32 %v5743_v15, %v4225_v16 }
0x189e   : > { %4352 = vrot.lane.b32.xlu0 %v4226_v18, %s6889_s6  ;;  %5384 = vmatpush.xpose.msk.msra.mxu1 %vm2069_vm3, %v4226_v18 }
0x18a2   : > { %5385 = vmatpush.xpose.msk.msra.mxu1 %vm2069_vm3, %v4223_v28 }
0x18a6   : > { %4339 = vmatpush.msrb.mxu1 %v3649_v24 }
0x1906   : > { %v4193_v21 = vpop.f32.mrf.mxu2 }
0x1907   : > { %v4194_v22 = vadd.f32 %v5744_v20, %v4193_v21  ;;  %v3651_v20 = vld [vmem:[%s8384_s20 + $0x10] sm:$0xff] }
0x1909   : > { %4348 = vrot.lane.b32.xlu1 %v4194_v22, %s6889_s6  ;;  %5386 = vmatmul.msk.f32.vlgmr.msra.gmra.mxu1 %vm2069_vm3, %v4194_v22 }
0x1910   : > { %v4353_v23 = vpop.permute.xlu0 %4352 }
0x1911   : > { %4395 = vrot.lane.b32.xlu1 %v8113_v5, %s6889_s6  ;;  %5390 = vmatpush.xpose.msk.msra.mxu2 %vm2069_vm3, %v4353_v23 }
0x1919   : > { %4393 = vrot.lane.b32.xlu1 %v8115_v14, %s6889_s6 }
0x1921   : > { %4451 = vrot.lane.b32.xlu1 %v4226_v18, %s8385_s28 }
0x1929   : > { %4549 = vrot.lane.b32.xlu1 %v4226_v18, %s6891_s2 }
0x1931   : > { %4547 = vrot.lane.b32.xlu1 %v4223_v28, %s6891_s2 }
0x197b   : > { %v4349_v25 = vpop.permute.xlu1 %4348 }
0x1983   : > { %v4396_v26 = vpop.permute.xlu1 %4395 }
0x1984   : > { %5393 = vmatpush.msk.msra.mxu3 %vm1919_vm0, %v4396_v26 }
0x1986   : > { %v4280_v27 = vpop.f32.mrf.mxu1 }
0x1987   : > { %v4283_v48 = vmul.f32 0.35355338, %v4280_v27 }
0x1989   : > { %v4284_v32 = vsel %vm2107_vm4, %v4283_v48, -inf }
0x198a   : > { %4285 = vmax.xlane.f32.xlu2 %v4284_v32 }
0x198b   : > { %v4394_v29 = vpop.permute.xlu1 %4393 }
0x198c   : > { %4418 = vmatpush.msra.mxu3 %v4394_v29 }
0x198e   : > { %4539 = vmatpush.msrb.mxu3 %v3651_v20 }
0x1993   : > { %v4452_v30 = vpop.permute.xlu1 %4451 }
0x1994   : > { %5396 = vmatpush.xpose.msk.msra.mxu1 %vm2069_vm3, %v4452_v30 }
0x199b   : > { %v4550_v31 = vpop.permute.xlu1 %4549 }
0x199c   : > { %5402 = vmatpush.xpose.msk.msrb.mxu0 %vm2069_vm3, %v4550_v31 }
0x19a3   : > { %v4548_v34 = vpop.permute.xlu1 %4547 }
0x19a4   : > { %5403 = vmatpush.xpose.msk.msrb.mxu0 %vm2069_vm3, %v4548_v34 }
0x19fd   : > { %v4286_v35 = vpop.xlane.xlu2 %4285 }
0x19fe   : > { %v4287_v36 = vsub.f32 %v4283_v48, %v4286_v35  ;;  %v3652_v48 = vld [vmem:[%s8384_s20 + $0x18] sm:$0xff] }
0x1a00   : > { %v4288_v37 = vmul.f32 1.442695, %v4287_v36 }
0x1a02   : > { %5852 = vpow2.f32 %v4288_v37 }
0x1a08   : > { %v5853_v38 = vpop.eup %5852 }
0x1a09   : > { %v4290_v40 = vsel %vm2107_vm4, %v5853_v38, 0.0 }
0x1a0a   : > { %4291 = vadd.xlane.f32.xlu2 %v4290_v40 }
0x1a22   : > { %4350 = vrot.lane.b32.xlu2 %v4223_v28, %s6889_s6  ;;  %s8386_s6 = sld [smem:[#allocation71_spill]] }
0x1a7d   : > { %v4292_v44 = vpop.xlane.xlu2 %4291 }
0x1a7e   : > { %5854 = vrcp.f32 %v4292_v44 }
0x1a84   : > { %v5855_v59 = vpop.eup %5854 }
0x1a85   : > { %v4294_v46 = vmul.f32 %v5855_v59, %v5853_v38  ;;  %v4351_v41 = vpop.permute.xlu2 %4350 }
0x1a86   : > { %5391 = vmatpush.xpose.msk.msra.mxu2 %vm2069_vm3, %v4351_v41 }
0x1a87   : > { %5388 = vmatmul.msk.f32.vlgmr.msrb.gmra.mxu2 %vm2107_vm4, %v4294_v46 }
0x1a8f   : > { %5392 = vmatmul.msk.f32.vlgmr.msra.gmra.mxu2 %vm2069_vm3, %v4349_v25 }
0x1b0a   : > { %v4318_v43 = vpop.f32.mrf.mxu2 }
0x1b0b   : > { %5389 = vmatmul.msk.f32.vlgmr.msrb.gmra.mxu1 %vm2069_vm3, %v4318_v43  ;;  %v3690_v43 = vld [vmem:[#allocation28 + $0x18] sm:$0xff] }
0x1b12   : > { %v4377_v11 = vpop.f32.mrf.mxu2 }
0x1b13   : > { %v4380_v49 = vmul.f32 0.35355338, %v4377_v11  ;;  %v3689_v11 = vld [vmem:[#allocation28 + $0x10] sm:$0xff] }
0x1b15   : > { %v4381_v51 = vsel %vm2107_vm4, %v4380_v49, -inf }
0x1b16   : > { %4382 = vmax.xlane.f32.xlu0 %v4381_v51 }
0x1b2a   : > { %4449 = vrot.lane.b32.xlu0 %v4223_v28, %s8385_s28 }
0x1b32   : > { %4545 = vrot.lane.b32.xlu0 %v4194_v22, %s6891_s2 }
0x1b88   : > { %v4341_v47 = vpop.f32.mrf.mxu1 }
0x1b89   : > { %v4383_v52 = vpop.xlane.xlu0 %4382 }
0x1b8a   : > { %v4384_v53 = vsub.f32 %v4380_v49, %v4383_v52  ;;  %v3687_v49 = vld [vmem:[#allocation28] sm:$0xff] }
0x1b8c   : > { %v4385_v54 = vmul.f32 1.442695, %v4384_v53 }
0x1b8e   : > { %5856 = vpow2.f32 %v4385_v54 }
0x1b94   : > { %v5857_v56 = vpop.eup %5856 }
0x1b95   : > { %v4387_v17 = vsel %vm2107_vm4, %v5857_v56, 0.0 }
0x1b96   : > { %4388 = vadd.xlane.f32.xlu2 %v4387_v17 }
0x1b9c   : > { %v4450_v50 = vpop.permute.xlu0 %4449 }
0x1b9d   : > { %5397 = vmatpush.xpose.msk.msra.mxu1 %vm2069_vm3, %v4450_v50 }
0x1ba4   : > { %v4546_v62 = vpop.permute.xlu0 %4545 }
0x1bae   : > { %4447 = vrot.lane.b32.xlu2 %v4194_v22, %s8385_s28 }
0x1c09   : > { %v4389_v55 = vpop.xlane.xlu2 %4388 }
0x1c0a   : > { %5858 = vrcp.f32 %v4389_v55 }
0x1c10   : > { %v5859_v60 = vpop.eup %5858 }
0x1c11   : > { %v4391_v39 = vmul.f32 %v5859_v60, %v5857_v56  ;;  %v4448_v33 = vpop.permute.xlu2 %4447 }
0x1c12   : > { %5398 = vmatmul.msk.f32.vlgmr.msra.gmra.mxu1 %vm2069_vm3, %v4448_v33 }
0x1c13   : > { %5394 = vmatmul.msk.f32.vlgmr.msra.gmra.mxu3 %vm2107_vm4, %v4391_v39 }
0x1c14   : > { %4692 = vmatpush.msra.mxu3 %v3690_v43 }
0x1c16   : > { %4693 = vmatpush.msra.mxu3 %v3689_v11 }
0x1c8f   : > { %v4476_v45 = vpop.f32.mrf.mxu1 }
0x1c90   : > { %v4479_v57 = vmul.f32 0.35355338, %v4476_v45 }
0x1c92   : > { %v4480_v61 = vsel %vm2107_vm4, %v4479_v57, -inf }
0x1c93   : > { %4481 = vmax.xlane.f32.xlu1 %v4480_v61  ;;  %v5746_v61 = vld [vmem:[#allocation11] ss:$0 sm:$0xff] }
0x1c96   : > { %v4420_v19 = vpop.f32.mrf.mxu3 }
0x1c97   : > { %5395 = vmatmul.msk.f32.vlgmr.msra.gmra.mxu0 %vm2069_vm3, %v4420_v19 }
0x1c9f   : > { %5404 = vmatmul.msk.f32.vlgmr.msrb.gmra.mxu0 %vm2069_vm3, %v4546_v62  ;;  %v5747_v62 = vld [vmem:[#allocation10] ss:$0 sm:$0xff] }
0x1cac   : > { %4493 = vrot.lane.b32.xlu1 %v8113_v5, %s8385_s28 }
0x1cb4   : > { %4589 = vrot.lane.b32.xlu1 %v8115_v14, %s6891_s2 }
0x1d06   : > { %v4482_v63 = vpop.xlane.xlu1 %4481 }
0x1d07   : > { %v4483_v0 = vsub.f32 %v4479_v57, %v4482_v63 }
0x1d09   : > { %v4484_v1 = vmul.f32 1.442695, %v4483_v0 }
0x1d0b   : > { %5860 = vpow2.f32 %v4484_v1 }
0x1d11   : > { %v5861_v2 = vpop.eup %5860 }
0x1d12   : > { %v4486_v3 = vsel %vm2107_vm4, %v5861_v2, 0.0 }
0x1d13   : > { %4487 = vadd.xlane.f32.xlu2 %v4486_v3 }
0x1d14   : > { %v4443_v4 = vpop.f32.mrf.mxu0 }
0x1d1c   : > { %v4574_v6 = vpop.f32.mrf.mxu0 }
0x1d1d   : > { %v4577_v7 = vmul.f32 0.35355338, %v4574_v6  ;;  %v5748_v6 = vld [vmem:[%s8389_s26] ss:$0 sm:$0xff] }
0x1d1e   : > { %v4494_v9 = vpop.permute.xlu1 %4493 }
0x1d1f   : > { %5399 = vmatpush.msk.msrb.mxu2 %vm1919_vm0, %v4494_v9  ;;  %v4578_v10 = vsel %vm2107_vm4, %v4577_v7, -inf }
0x1d20   : > { %4579 = vmax.xlane.f32.xlu0 %v4578_v10 }
0x1d26   : > { %v4590_v26 = vpop.permute.xlu1 %4589 }
0x1d2b   : > { %4491 = vrot.lane.b32.xlu2 %v8115_v14, %s8385_s28  ;;  %s5234_s28 = sshll.u32 %s1893_s1, 3 }
0x1d86   : > { %v4488_v12 = vpop.xlane.xlu2 %4487 }
0x1d87   : > { %5862 = vrcp.f32 %v4488_v12  ;;  %v5749_v12 = vld [vmem:[%s8390_s16] ss:$0 sm:$0xff]  ;;  %s1895_s16 = scalar_lea.vmem [#allocation47], %s5234_s28 }
0x1d88   : > { %s4772_s3 = sshll.u32 %s1895_s16, 4  ;;  %s4773_s3 = int_to_ptr.vmem [resolvable:$true] %s4772_s3 }
0x1d8d   : > { %v5863_v13 = vpop.eup %5862 }
0x1d8e   : > { %v4490_v15 = vmul.f32 %v5863_v13, %v5861_v2  ;;  %v4492_v16 = vpop.permute.xlu2 %4491 }
0x1d8f   : > { %4516 = vmatpush.msrb.mxu2 %v4492_v16 }
0x1d90   : > { %5400 = vmatmul.msk.f32.vlgmr.msrb.gmra.mxu2 %vm2107_vm4, %v4490_v15 }
0x1d91   : > { %4637 = vmatpush.msra.mxu2 %v3652_v48 }
0x1d93   : > { %v4580_v18 = vpop.xlane.xlu0 %4579 }
0x1d94   : > { %v4581_v28 = vsub.f32 %v4577_v7, %v4580_v18 }
0x1d96   : > { %v4582_v21 = vmul.f32 1.442695, %v4581_v28 }
0x1d98   : > { %5864 = vpow2.f32 %v4582_v21 }
0x1d9e   : > { %v5865_v22 = vpop.eup %5864 }
0x1d9f   : > { %v4584_v23 = vsel %vm2107_vm4, %v5865_v22, 0.0 }
0x1da0   : > { %4585 = vadd.xlane.f32.xlu0 %v4584_v23 }
0x1db4   : > { %4591 = vrot.lane.b32.xlu0 %v8113_v5, %s6891_s2  ;;  %v5745_v5 = vld [vmem:[%s8386_s6] ss:$0 sm:$0xff]  ;;  %s8387_s2 = sld [smem:[#allocation89_spill]]  ;;  %s5411_s6 = sshll.u32 %s7164_s7, 3 }
0x1db5   : > { %v4347_v29 = vadd.f32 %v5745_v5, %v4341_v47  ;;  %s4760_s7 = scalar_lea.sflag [#allocation4], %s1893_s1 }
0x1db7   : > { %v4446_v31 = vadd.f32 %v4443_v4, %v4347_v29  ;;  %v5750_v29 = vld [vmem:[#allocation14] ss:$0 sm:$0xff] }
0x1dba   : > { %s8388_s11 = smov %s8387_s2  ;;  %v3698_v51 = vld [vmem:[%s8387_s2 + $0x38] sm:$0xff]  ;;  %s4770_s2 = scalar_lea.hbm %s7141_s9, %s5411_s6 }
0x1dbb   : > { %v3697_v52 = vld [vmem:[%s8388_s11 + $0x30] sm:$0xff]  ;;  %4715 = vmatpush.msra.mxu0 %v3698_v51  ;;  %v3696_v53 = vld [vmem:[%s8388_s11 + $0x28] sm:$0xff]  ;;  %v3695_v17 = vld [vmem:[%s8388_s11 + $0x20] sm:$0xff]  ;;  %s4774_s4 = sshll.u32 %s4770_s2, 4  ;;  %s6704_s6 = scalar_lea.hbm %s7141_s9, 16  ;;  %s4775_s4 = int_to_ptr.hbm [resolvable:$true] %s4774_s4 }
0x1dbc   : > { %v3694_v55 = vld [vmem:[%s8388_s11 + $0x18] sm:$0xff]  ;;  %v3693_v2 = vld [vmem:[%s8388_s11 + $0x10] sm:$0xff]  ;;  %v3692_v3 = vld [vmem:[%s8388_s11 + $0x8] sm:$0xff]  ;;  %s6698_s5 = sshra.s32 %s4775_s4, 4  ;;  %s6699_s5 = int_to_ptr.hbm [resolvable:$true] %s6698_s5 }
0x1dbd   : > { %4716 = vmatpush.msra.mxu0 %v3697_v52  ;;  %v3691_v4 = vld [vmem:[%s8388_s11] sm:$0xff]  ;;  %s6700_s8 = scalar_lea.hbm %s6699_s5, 8  ;;  %p6705_p3 = scmp.lt.s32.totalorder %s6699_s5, %s7141_s9 }
0x1dbe   : > { %p6701_p10 = scmp.ne.s32.totalorder %s6699_s5, %s6700_s8  ;;  %p6706_p4 = scmp.lt.s32.totalorder %s6704_s6, %s6700_s8 }
0x1dbf   : > { %4717 = vmatpush.msra.mxu0 %v3696_v53 }
0x1dc0   : > { %p6702_p1 = pnand %p6701_p10, %p7181_p5  ;;  %p6707_p7 = por %p6706_p4, %p6705_p3 }
0x1dc1   : > { %4718 = vmatpush.msra.mxu0 %v3695_v17 }
0x1dc2   : > { %p6703_p2 = pneg %p6702_p1 }
0x1dc3   : > { %4719 = vmatpush.msra.mxu0 %v3694_v55 }
0x1dc4   : > { %p6708_p8 = pnand %p6707_p7, %p6703_p2 }
0x1dc5   : > { %4720 = vmatpush.msra.mxu0 %v3693_v2 }
0x1dc7   : > { %4721 = vmatpush.msra.mxu0 %v3692_v3 }
0x1dc9   : > { %4722 = vmatpush.msra.mxu0 %v3691_v4 }
0x1e13   : > { %v4518_v14 = vpop.f32.mrf.mxu2  ;;  %v4586_v24 = vpop.xlane.xlu0 %4585 }
0x1e14   : > { %5401 = vmatmul.msk.f32.vlgmr.msrb.gmra.mxu3 %vm2069_vm3, %v4518_v14  ;;  %5866 = vrcp.f32 %v4586_v24 }
0x1e1a   : > { %v5867_v42 = vpop.eup %5866 }
0x1e1b   : > { %v4588_v27 = vmul.f32 %v5867_v42, %v5865_v22 }
0x1e26   : > { %v4592_v25 = vpop.permute.xlu0 %4591 }
0x1e27   : > { %5405 = vmatpush.msk.msrb.mxu1 %vm1919_vm0, %v4592_v25 }
0x1e29   : > { %4614 = vmatpush.msrb.mxu1 %v4590_v26 }
0x1e2a   : > { %5406 = vmatmul.msk.f32.vlgmr.msrb.gmra.mxu1 %vm2107_vm4, %v4588_v27 }
0x1e97   : > { %v4541_v30 = vpop.f32.mrf.mxu3 }
0x1e98   : > { %v4544_v34 = vadd.f32 %v4541_v30, %v4446_v31  ;;  %v5751_v31 = vld [vmem:[#allocation13] ss:$0 sm:$0xff] }
0x1ea7   : > { %v4616_v32 = vpop.f32.mrf.mxu1 }
0x1ea8   : > { %5407 = vmatmul.msk.f32.vlgmr.msra.gmra.mxu2 %vm2069_vm3, %v4616_v32 }
0x1f2b   : > { %v4639_v35 = vpop.f32.mrf.mxu2 }
0x1f2c   : > { %v4642_v36 = vadd.f32 %v4639_v35, %v4544_v34 }
0x1f2e   : > { %v4643_v37 = vadd.f32 %v4642_v36, %v8108_v8  ;;  %v3688_v8 = vld [vmem:[#allocation28 + $0x8] sm:$0xff] }
0x1f2f   : > { %4694 = vmatpush.msra.mxu3 %v3688_v8 }
0x1f30   : > { %v4644_v38 = vsel %vm1987_vm2, %v4643_v37, 0.0 }
0x1f31   : > { %4645 = vadd.xlane.f32.xlu2 %v4644_v38  ;;  %4695 = vmatpush.msra.mxu3 %v3687_v49 }
0x1fa4   : > { %v4646_v40 = vpop.xlane.xlu2 %4645 }
0x1fa5   : > { %v4647_v44 = vmul.f32 %v4646_v40, %v7778_v58 }
0x1fa7   : > { %v4648_v59 = vsub.f32 %v4643_v37, %v4647_v44 }
0x1fa9   : > { %v4649_v46 = vmul.f32 %v4648_v59, %v4648_v59 }
0x1fab   : > { %v4650_v41 = vsel %vm1987_vm2, %v4649_v46, 0.0 }
0x1fac   : > { %4651 = vadd.xlane.f32.xlu1 %v4650_v41 }
0x201f   : > { %v4652_v54 = vpop.xlane.xlu1 %4651 }
0x2020   : > { %v4653_v56 = vmul.f32 %v4652_v54, %v7778_v58 }
0x2022   : > { %v4654_v50 = vadd.f32 1e-05, %v4653_v56 }
0x2024   : > { %5868 = vrsqrt.f32 %v4654_v50  ;;  %vm4661_vm3 = vweird.f32 %v4654_v50 }
0x202a   : > { %v5869_v60 = vpop.eup %5868 }
0x202b   : > { %v4656_v39 = vmul.f32 %v5869_v60, %v4654_v50  ;;  %vm4662_vm0 = vweird.f32 %v5869_v60 }
0x202c   : > { %vm4663_vm4 = vmor %vm4661_vm3, %vm4662_vm0 }
0x202d   : > { %v4657_v33 = vmul.f32 %v5869_v60, %v4656_v39 }
0x202f   : > { %v4658_v47 = vmul.f32 0.5, %v4657_v33 }
0x2031   : > { %v4659_v45 = vsub.f32 1.5, %v4658_v47 }
0x2033   : > { %v4660_v57 = vmul.f32 %v5869_v60, %v4659_v45 }
0x2035   : > { %v4664_v19 = vsel %vm4663_vm4, %v5869_v60, %v4660_v57 }
0x2036   : > { %v4665_v63 = vmul.f32 %v4664_v19, %v4648_v59 }
0x2038   : > { %v4669_v0 = vmul.f32 %v5746_v61, %v4665_v63 }
0x203a   : > { %v4673_v1 = vadd.f32 %v5747_v62, %v4669_v0 }
0x203c   : > { %5408 = vmatmul.msk.f32.vlgmr.msra.gmra.mxu3 %vm1987_vm2, %v4673_v1 }
0x20bf   : > { %v4697_v7 = vpop.f32.mrf.mxu3 }
0x20c0   : > { %v4698_v9 = vadd.f32 %v5748_v6, %v4697_v7 }
0x20c2   : > { %v4700_v10 = vmax.f32 %v4698_v9, 0.0 }
0x20c4   : > { %5409 = vmatmul.msk.f32.vlgmr.msra.gmra.mxu0 %vm2689_vm14, %v4700_v10 }
0x2141   : > { %v4724_v13 = vpop.f32.mrf.mxu0 }
0x2142   : > { %v4725_v15 = vadd.f32 %v5749_v12, %v4724_v13 }
0x2144   : > { %v4727_v16 = vadd.f32 %v4725_v15, %v4673_v1 }
0x2146   : > { %v4728_v18 = vsel %vm1987_vm2, %v4727_v16, 0.0 }
0x2147   : > { %4729 = vadd.xlane.f32.xlu0 %v4728_v18 }
0x21ba   : > { %v4730_v28 = vpop.xlane.xlu0 %4729 }
0x21bb   : > { %v4731_v20 = vmul.f32 %v4730_v28, %v7778_v58 }
0x21bd   : > { %v4732_v21 = vsub.f32 %v4727_v16, %v4731_v20 }
0x21bf   : > { %v4733_v22 = vmul.f32 %v4732_v21, %v4732_v21 }
0x21c1   : > { %v4734_v23 = vsel %vm1987_vm2, %v4733_v22, 0.0 }
0x21c2   : > { %4735 = vadd.xlane.f32.xlu2 %v4734_v23 }
0x2235   : > { %v4736_v14 = vpop.xlane.xlu2 %4735 }
0x2236   : > { %v4737_v24 = vmul.f32 %v4736_v14, %v7778_v58 }
0x2238   : > { %v4738_v42 = vadd.f32 1e-05, %v4737_v24 }
0x223a   : > { %5870 = vrsqrt.f32 %v4738_v42  ;;  %vm4745_vm7 = vweird.f32 %v4738_v42 }
0x2240   : > { %v5871_v25 = vpop.eup %5870 }
0x2241   : > { %v4740_v26 = vmul.f32 %v5871_v25, %v4738_v42  ;;  %vm4746_vm14 = vweird.f32 %v5871_v25 }
0x2242   : > { %vm4747_vm8 = vmor %vm4745_vm7, %vm4746_vm14 }
0x2243   : > { %v4741_v27 = vmul.f32 %v5871_v25, %v4740_v26 }
0x2245   : > { %v4742_v48 = vmul.f32 0.5, %v4741_v27 }
0x2247   : > { %v4743_v32 = vsub.f32 1.5, %v4742_v48 }
0x2249   : > { %v4744_v5 = vmul.f32 %v5871_v25, %v4743_v32 }
0x224b   : > { %v4748_v30 = vsel %vm4747_vm8, %v5871_v25, %v4744_v5 }
0x224c   : > { %v4749_v58 = vmul.f32 %v4748_v30, %v4732_v21 }
0x224e   : > { %v4753_v34 = vmul.f32 %v5750_v29, %v4749_v58 }
0x2250   : > { %v4757_v35 = vadd.f32 %v5751_v31, %v4753_v34 }
0x2252   : > { %4758 = vst.msk [vmem:[%s1895_s16] sm:$0xff] %vm1987_vm2, %v4757_v35 }
0x2253   : > { %6711 = shalt.err (!%p6708_p8)
}
0x2254   : > { %5532 = dma.vmem_to_hbm [thread:$0]  (%p7181_p5), %s4773_s3, 128, %s4775_s4, %s4760_s7  }
0x2255 PF: > { %s8392_s28 = sld [smem:[#allocation107_spill]] }
0x2256   : > { %s8393_s2 = sld [smem:[#allocation105_spill]] }
0x225b   : > { %p5596_p11 = scmp.ge.s32.totalorder %s8392_s28, 2 }
0x225c   : > { %s4786_s16 = sand.u32 1, %s8393_s2  }
0x225d   : > { %p5535_p12 = pnand %p5596_p11, %p7185_p6  ;;  %s4787_s10 = scalar_lea.sflag [#allocation4], %s4786_s16 }
0x225f   : > { %p5536_p13 = pneg %p5535_p12 }
0x2261   : > { %6789 = dma.done.wait (%p5536_p13), %s4787_s10, 128  }
0x2262   : > { %6791 = vsyncadd (%p5536_p13), %s4787_s10, 4294967168  ;;  %s8395_s2 = sld [smem:[#allocation108_spill]]  ;;  %s8398_s28 = smov %s6798_s0 }
0x2263   : > { %s8396_s8 = sld [smem:[#allocation106_spill]] }
0x2264   : > { %s8397_s1 = sld [smem:[#allocation109_spill]] }
0x2268   : > { %p122_p0 = scmp.ge.s32.totalorder %s8395_s2, 4  }
0x2269   : > { %s8399_s0 = smov %s8396_s8 }
0x226a   :  { %124 = sbr.rel (!%p122_p0) target bundleno = 111 (0x6f), region = 431 }
0x226f   :  { %4793 = vsyncpa [#allocation3], 1 }
0x2270   :  { %4795 = vsyncpa [#allocation3 + $0x1], 1 }
0x2271   :  { %4796 = vsyncpa [#allocation6], 1 }
0x2272   :  { %4797 = vsyncpa [#allocation9], 1 }
0x2273   :  { %4798 = vsyncpa [#allocation12], 1 }
0x2274   :  { %4799 = vsyncpa [#allocation15], 1 }
0x2275   :  { %4800 = vsyncpa [#allocation18], 1 }
0x2276   :  { %4801 = vsyncpa [#allocation21], 1 }
0x2277   :  { %4802 = vsyncpa [#allocation24], 1 }
0x2278   :  { %4803 = vsyncpa [#allocation27], 1 }
0x2279   :  { %4804 = vsyncpa [#allocation30], 1 }
0x227a   :  { %4805 = vsyncpa [#allocation33], 1 }
0x227b   :  { %4806 = vsyncpa [#allocation36], 1 }
0x227c   :  { %4807 = vsyncpa [#allocation39], 1 }
0x227d   :  { %4808 = vsyncpa [#allocation42], 1 }
0x227e   :  { %4809 = vsyncpa [#allocation45], 1 }
0x227f   :  { %4810 = vsyncpa [#allocation4], 1 }
0x2280   :  { %4812 = vsyncpa [#allocation4 + $0x1], 1 }

</bundles_post_ra>
